<compile_context>
chip_gen: v7x
topology: tpu7x:2x2x1
jax: 0.10.0
libtpu: 0.0.40
codegen_flags: <defaults>
</compile_context>

<pallas_src>
import functools

import jax
import jax.numpy as jnp
from jax.experimental import pallas as pl
from jax.experimental.pallas import tpu as pltpu

BN_EPS = 1e-5
K = 4                      # kernel_size everywhere in this generator
DEFAULT_TILE_M = 512       # lane tile: multiple of 128
VMEM_LIMIT = 48 * 1024 * 1024


# ---------------------------------------------------------------------------
# Pallas kernels
# ---------------------------------------------------------------------------
def matmul_stats_kernel(w_ref, p_ref, y_ref, sum_ref, sq_ref):
    """Y tile = W_stack @ P tile (bf16 in, f32 MXU acc, bf16 out) plus
    per-row (phase*channel) sum / sum-of-squares accumulated per core."""
    y = jnp.dot(w_ref[...], p_ref[...], preferred_element_type=jnp.float32)
    y_ref[...] = y.astype(y_ref.dtype)

    @pl.when(pl.program_id(1) == 0)
    def _():
        sum_ref[...] = jnp.zeros_like(sum_ref)
        sq_ref[...] = jnp.zeros_like(sq_ref)

    sum_ref[...] += jnp.sum(y, axis=1, keepdims=True)[None]
    sq_ref[...] += jnp.sum(y * y, axis=1, keepdims=True)[None]


def matmul_bias_tanh_kernel(w_ref, p_ref, b_ref, o_ref):
    """Final stride-phase ConvTranspose2d (with bias) + Tanh."""
    y = jnp.dot(w_ref[...], p_ref[...], preferred_element_type=jnp.float32)
    o_ref[...] = jnp.tanh(y + b_ref[...])


def dense_matmul_kernel(w_ref, x_ref, o_ref):
    """Small dense matmul (layer 0: 1x1 spatial input)."""
    o_ref[...] = jnp.dot(w_ref[...], x_ref[...],
                         preferred_element_type=jnp.float32)


# ---------------------------------------------------------------------------
# pallas_call wrappers
# ---------------------------------------------------------------------------
def _round_up(x, m):
    return (x + m - 1) // m * m


def _tile_plan(m, max_tile=DEFAULT_TILE_M):
    """Return (m_pad, tile, split): tile is a multiple of 128, m_pad a multiple
    of split*tile.  split=2 exposes a 'parallel' grid axis (v7x megacore)."""
    m128 = _round_up(m, 128)
    if m128 <= max_tile:
        if m128 % 256 == 0:
            return m128, m128 // 2, 2
        return m128, m128, 1
    m_pad = _round_up(m, 2 * max_tile)
    return m_pad, max_tile, 2


def _matmul_phase_stats(w_stack, patches, *, tile, split):
    rows, ck4 = w_stack.shape
    m_pad = patches.shape[1]
    steps = m_pad // (split * tile)
    assert m_pad == split * steps * tile
    return pl.pallas_call(
        matmul_stats_kernel,
        grid=(split, steps),
        in_specs=[
            # Weights: VMEM-resident across the whole grid.
            pl.BlockSpec((rows, ck4), lambda c, i: (0, 0)),
            # Patches: tiled over M, split across cores on the leading axis.
            pl.BlockSpec((ck4, tile), lambda c, i: (0, c * steps + i)),
        ],
        out_specs=(
            pl.BlockSpec((rows, tile), lambda c, i: (0, c * steps + i)),
            pl.BlockSpec((1, rows, 1), lambda c, i: (c, 0, 0)),  # per-core sum
            pl.BlockSpec((1, rows, 1), lambda c, i: (c, 0, 0)),  # per-core sumsq
        ),
        out_shape=(
            jax.ShapeDtypeStruct((rows, m_pad), jnp.bfloat16),
            jax.ShapeDtypeStruct((split, rows, 1), jnp.float32),
            jax.ShapeDtypeStruct((split, rows, 1), jnp.float32),
        ),
        compiler_params=pltpu.CompilerParams(
            dimension_semantics=("parallel", "arbitrary"),
            vmem_limit_bytes=VMEM_LIMIT),
    )(w_stack, patches)


def _matmul_bias_tanh(w_stack, patches, bias_stack, *, tile):
    rows, ck4 = w_stack.shape
    m_pad = patches.shape[1]
    return pl.pallas_call(
        matmul_bias_tanh_kernel,
        grid=(m_pad // tile,),
        in_specs=[
            pl.BlockSpec((rows, ck4), lambda i: (0, 0)),
            pl.BlockSpec((ck4, tile), lambda i: (0, i)),
            pl.BlockSpec((rows, 1), lambda i: (0, 0)),
        ],
        out_specs=pl.BlockSpec((rows, tile), lambda i: (0, i)),
        out_shape=jax.ShapeDtypeStruct((rows, m_pad), jnp.float32),
        compiler_params=pltpu.CompilerParams(
            dimension_semantics=("parallel",),
            vmem_limit_bytes=VMEM_LIMIT),
    )(w_stack, patches, bias_stack)


def _dense_matmul(w2, x):
    return pl.pallas_call(
        dense_matmul_kernel,
        in_specs=[pl.BlockSpec(memory_space=pltpu.MemorySpace.VMEM)] * 2,
        out_specs=pl.BlockSpec(memory_space=pltpu.MemorySpace.VMEM),
        out_shape=jax.ShapeDtypeStruct((w2.shape[0], x.shape[1]), jnp.float32),
        compiler_params=pltpu.CompilerParams(vmem_limit_bytes=VMEM_LIMIT),
    )(w2, x)


# ---------------------------------------------------------------------------
# Stride-phase (sub-pixel) lowering helpers
#
# For ConvTranspose2d(K=4, stride=2, pad=1) with input x (Cin, N, H, W):
#   out[co, n, 2y+ry, 2x+rx] =
#       sum_{ci, a, b in {0,1}} xp[ci, n, y+ry+a, x+rx+b]
#                             * w_t[ci, co, 3-ry-2a, 3-rx-2b]
# where xp = x zero-padded by 1 on every side.  All four phases share one
# patch matrix built from the (H+1)x(W+1) window grid of 2x2 windows of xp.
# ---------------------------------------------------------------------------
def _convt_w_phase_stack(w_t):
    """(Cin, Cout, 4, 4) PyTorch ConvTranspose2d weight ->
    phase-stacked matmul weight (4*Cout, Cin*4), rows ordered p=2*ry+rx."""
    cin, cout, k, _ = w_t.shape
    assert k == K
    mats = []
    for ry in (0, 1):
        for rx in (0, 1):
            kh = [3 - ry, 1 - ry]            # taps a = 0, 1
            kw = [3 - rx, 1 - rx]            # taps b = 0, 1
            sub = w_t[:, :, kh, :][:, :, :, kw]          # (Cin, Cout, 2, 2)
            mats.append(sub.transpose(1, 0, 2, 3).reshape(cout, cin * 4))
    return jnp.concatenate(mats, axis=0).astype(jnp.bfloat16)


def _make_patches(act):
    """(C, N, H, W) bf16 -> (C*4, N*(H+1)*(W+1)) bf16; rows ordered (c, a, b),
    columns ordered (n, th, tw)."""
    c, n, h, w = act.shape
    xp = jnp.pad(act, ((0, 0), (0, 0), (1, 1), (1, 1)))
    th, tw = h + 1, w + 1
    wins = [xp[:, :, a:a + th, b:b + tw] for a in (0, 1) for b in (0, 1)]
    p = jnp.stack(wins, axis=1)                       # (C, 4, N, TH, TW)
    return p.reshape(c * 4, n * th * tw)


def _prep_patches(y_img, scale, shift):
    """Fold the previous layer's BatchNorm affine + ReLU (plain jnp so XLA
    fuses it with the pad/slice producers) and build the patch matrix."""
    act = jnp.maximum(
        y_img.astype(jnp.float32) * scale[:, None, None, None]
        + shift[:, None, None, None], 0.0).astype(jnp.bfloat16)
    return _make_patches(act)


def _interleave_phases(y_phase, cout, n, h, w):
    """(4*Cout, M_pad) phase-separated -> (Cout, N, 2H, 2W) spatial output."""
    th, tw = h + 1, w + 1
    m = n * th * tw
    y = y_phase[:, :m].reshape(2, 2, cout, n, th, tw)
    rows = []
    for ry in (0, 1):
        cols = [y[ry, rx, :, :, ry:ry + h, rx:rx + w] for rx in (0, 1)]
        rows.append(jnp.stack(cols, axis=-1))         # (Cout, N, H, W, 2)
    full = jnp.stack(rows, axis=-3)                   # (Cout, N, H, 2, W, 2)
    return full.reshape(cout, n, 2 * h, 2 * w)


def _bn_from_phase_stats(row_sum, row_sq, y_phase, gamma, beta, cout, n, h, w):
    """Global train-mode BN scale/shift from the kernel's per-row accumulators.

    The accumulators include each phase's single invalid border row/column of
    the shared window grid (zero-padded M columns contribute exactly 0); those
    borders are subtracted here from thin slices of the bf16 Y."""
    th, tw = h + 1, w + 1
    m = n * th * tw
    count = n * (2 * h) * (2 * w)
    s = row_sum.sum(axis=0).reshape(4, cout)
    q = row_sq.sum(axis=0).reshape(4, cout)
    yv = y_phase[:, :m].astype(jnp.float32).reshape(4, cout, n, th, tw)
    for p, (ry, rx) in enumerate(((0, 0), (0, 1), (1, 0), (1, 1))):
        ih = h if ry == 0 else 0
        iw = w if rx == 0 else 0
        row = yv[p, :, :, ih, :]        # (Cout, N, TW)
        col = yv[p, :, :, :, iw]        # (Cout, N, TH)
        cor = yv[p, :, :, ih, iw]       # (Cout, N)
        bs = row.sum((1, 2)) + col.sum((1, 2)) - cor.sum(1)
        bq = (jnp.square(row).sum((1, 2)) + jnp.square(col).sum((1, 2))
              - jnp.square(cor).sum(1))
        s = s.at[p].add(-bs)
        q = q.at[p].add(-bq)
    ch_sum = s.sum(axis=0)
    ch_sq = q.sum(axis=0)
    mean = ch_sum / count
    # E[y^2]-E[y]^2 with hierarchical (per-phase, per-core) f32 partials.
    var = jnp.maximum(ch_sq / count - mean * mean, 0.0)
    scale = gamma * jax.lax.rsqrt(var + BN_EPS)
    shift = beta - mean * scale
    return scale, shift


def _bn_scale_shift_image(y_img, gamma, beta):
    """Layer-0 BN (tiny tensor): centered two-pass variance in jnp."""
    mean = y_img.mean(axis=(1, 2, 3))
    var = jnp.square(y_img - mean[:, None, None, None]).mean(axis=(1, 2, 3))
    scale = gamma * jax.lax.rsqrt(var + BN_EPS)
    shift = beta - mean * scale
    return scale, shift


# ---------------------------------------------------------------------------
# Layers
# ---------------------------------------------------------------------------
def _first_layer(z, layer):
    # ConvTranspose2d on a 1x1 input (stride=1, pad=0) is a dense matmul:
    #   out[co, n, i, j] = sum_ci w_t[ci, co, i, j] * z[n, ci]
    n = z.shape[0]
    w2 = layer["w2"]                                    # (Cout*16, Cin) bf16
    cout = w2.shape[0] // (K * K)
    zt = z.reshape(n, -1).T.astype(jnp.bfloat16)        # (Cin, N)
    y0 = _dense_matmul(w2, zt)                          # (Cout*16, N) f32
    y_img = y0.reshape(cout, K, K, n).transpose(0, 3, 1, 2)  # (Cout, N, 4, 4)
    scale, shift = _bn_scale_shift_image(y_img, layer["gamma"], layer["beta"])
    return y_img, scale, shift


def _bn_convt_layer(y_img, scale, shift, layer):
    # y_img: previous layer's pre-BN output (C, N, H, W); the previous BN/ReLU
    # is applied here (fused into patch construction).
    cin, n, h, w = y_img.shape
    w_stack = layer["w_stack"]                          # (4*Cout, Cin*4)
    cout = w_stack.shape[0] // 4
    patches = _prep_patches(y_img, scale, shift)        # (Cin*4, M)
    m = patches.shape[1]
    m_pad, tile, split = _tile_plan(m)
    patches = jnp.pad(patches, ((0, 0), (0, m_pad - m)))
    y_phase, row_sum, row_sq = _matmul_phase_stats(
        w_stack, patches, tile=tile, split=split)
    scale2, shift2 = _bn_from_phase_stats(
        row_sum, row_sq, y_phase, layer["gamma"], layer["beta"], cout, n, h, w)
    y_img_next = _interleave_phases(y_phase, cout, n, h, w)
    return y_img_next, scale2, shift2


def _final_layer(y_img, scale, shift, layer):
    cin, n, h, w = y_img.shape
    w_stack = layer["w_stack"]                          # (4*Cout, Cin*4)
    cout = w_stack.shape[0] // 4
    patches = _prep_patches(y_img, scale, shift)
    m = patches.shape[1]
    m_pad, tile, _ = _tile_plan(m)
    patches = jnp.pad(patches, ((0, 0), (0, m_pad - m)))
    out_phase = _matmul_bias_tanh(w_stack, patches, layer["bias"], tile=tile)
    return _interleave_phases(out_phase, cout, n, h, w)


# ---------------------------------------------------------------------------
# Generator: parameters, one-time prepare, forward
# ---------------------------------------------------------------------------
def init_generator_params(key, z_dim, channels_img, features_g):
    fg = features_g
    spec = [
        (z_dim,   fg * 16, 1, 0, "first"),
        (fg * 16, fg * 8,  2, 1, "bn"),
        (fg * 8,  fg * 4,  2, 1, "bn"),
        (fg * 4,  fg * 2,  2, 1, "bn"),
        (fg * 2,  channels_img, 2, 1, "final"),
    ]
    params, cfg = [], []
    for cin, cout, stride, pad, kind in spec:
        key, wk, bk = jax.random.split(key, 3)
        layer = {"w": 0.02 * jax.random.normal(wk, (cin, cout, K, K), jnp.float32)}
        if kind == "final":
            layer["bias"] = 0.01 * jax.random.normal(bk, (cout,), jnp.float32)
        else:
            layer["gamma"] = jnp.ones((cout,), jnp.float32)
            layer["beta"] = jnp.zeros((cout,), jnp.float32)
        params.append(layer)
        cfg.append((kind, stride, pad))
    return params, tuple(cfg)


def prepare_generator_params(params, cfg):
    """One-time weight transforms, hoisted out of the forward pass."""
    prepared = []
    for layer, (kind, stride, pad) in zip(params, cfg):
        w_t = layer["w"]
        cin, cout = w_t.shape[0], w_t.shape[1]
        if kind == "first":
            assert stride == 1 and pad == 0
            w2 = w_t.transpose(1, 2, 3, 0).reshape(cout * K * K, cin)
            prepared.append({"w2": w2.astype(jnp.bfloat16),
                             "gamma": layer["gamma"], "beta": layer["beta"]})
        elif kind == "bn":
            assert stride == 2 and pad == 1
            prepared.append({"w_stack": _convt_w_phase_stack(w_t),
                             "gamma": layer["gamma"], "beta": layer["beta"]})
        else:  # "final"
            assert stride == 2 and pad == 1
            prepared.append({"w_stack": _convt_w_phase_stack(w_t),
                             "bias": jnp.tile(layer["bias"], 4)
                                        .reshape(4 * cout, 1)})
    return prepared


def generator_forward(prepared, z, cfg):
    # z: (N, z_dim, 1, 1) NCHW (PyTorch convention) -> NCHW f32 output.
    y_img, scale, shift, out_img = None, None, None, None
    for layer, (kind, stride, pad) in zip(prepared, cfg):
        if kind == "first":
            y_img, scale, shift = _first_layer(z, layer)
        elif kind == "bn":
            y_img, scale, shift = _bn_convt_layer(y_img, scale, shift, layer)
        else:  # "final"
            out_img = _final_layer(y_img, scale, shift, layer)
    return out_img.transpose(1, 0, 2, 3).astype(jnp.float32)   # back to NCHW


if __name__ == "__main__":
    z_dim, channels_img, features_g = 32, 3, 4
    batch = 2

    key = jax.random.PRNGKey(0)
    pkey, zkey = jax.random.split(key)
    params, cfg = init_generator_params(pkey, z_dim, channels_img, features_g)
    prepared = prepare_generator_params(params, cfg)
    z = jax.random.normal(zkey, (batch, z_dim, 1, 1), jnp.float32)

    fwd = jax.jit(functools.partial(generator_forward, cfg=cfg))
    out = jax.block_until_ready(fwd(prepared, z))

    assert out.shape == (batch, channels_img, 64, 64), out.shape
    assert bool(jnp.all(jnp.isfinite(out)))
    assert bool(jnp.all(jnp.abs(out) <= 1.0 + 1e-6))  # tanh range
    print("KERNEL_OK")
</pallas_src>

<mosaic_0001>
module attributes {stable_mosaic.version = 11 : i64} {
  func.func @dense_matmul_kernel(%arg0: memref<1024x32xbf16, #tpu.memory_space<vmem>>, %arg1: memref<32x2xbf16, #tpu.memory_space<vmem>>, %arg2: memref<1024x2xf32, #tpu.memory_space<vmem>>) attributes {dimension_semantics = [], scalar_prefetch = 0 : i64, scratch_operands = 0 : i64, tpu.core_type = #tpu.core_type<tc>} {
    %c0 = arith.constant 0 : index
    %c0_0 = arith.constant 0 : index
    %0 = vector.load %arg0[%c0, %c0_0] : memref<1024x32xbf16, #tpu.memory_space<vmem>>, vector<1024x32xbf16>
    %c0_1 = arith.constant 0 : index
    %c0_2 = arith.constant 0 : index
    %1 = vector.load %arg1[%c0_1, %c0_2] : memref<32x2xbf16, #tpu.memory_space<vmem>>, vector<32x2xbf16>
    %cst = arith.constant dense<0.000000e+00> : vector<1024x2xf32>
    %2 = tpu.matmul %0, %1, %cst {dimension_numbers = #tpu.dot_dimension_numbers<[1], [0], [0], [1], [0, 0, 1, 1], [], []>} : vector<1024x32xbf16>, vector<32x2xbf16>, vector<1024x2xf32> -> vector<1024x2xf32>
    %c0_3 = arith.constant 0 : index
    %c0_4 = arith.constant 0 : index
    %3 = vector.load %arg2[%c0_3, %c0_4] : memref<1024x2xf32, #tpu.memory_space<vmem>>, vector<1024x2xf32>
    tpu.vector_store %arg2[%c0_3, %c0_4], %2 {strides = array<i32>} : memref<1024x2xf32, #tpu.memory_space<vmem>>, vector<1024x2xf32>,
    return
  }
}

module attributes {stable_mosaic.version = 11 : i64} {
  func.func @matmul_stats_kernel(%arg0: i32, %arg1: i32, %arg2: memref<128x256xbf16, #tpu.memory_space<vmem>>, %arg3: memref<256x128xbf16, #tpu.memory_space<vmem>>, %arg4: memref<128x128xbf16, #tpu.memory_space<vmem>>, %arg5: memref<1x128x1xf32, #tpu.memory_space<vmem>>, %arg6: memref<1x128x1xf32, #tpu.memory_space<vmem>>) attributes {dimension_semantics = [#tpu.dimension_semantics<parallel>, #tpu.dimension_semantics<arbitrary>], iteration_bounds = array<i64: 1, 1>, scalar_prefetch = 0 : i64, scratch_operands = 0 : i64, tpu.core_type = #tpu.core_type<tc>, window_params = [{pipeline_mode = #tpu.pipeline_mode<synchronous>, transform_indices = @transform_0, window_bounds = array<i64: 128, 256>}, {transform_indices = @transform_1, window_bounds = array<i64: 256, 128>}, {transform_indices = @transform_2, window_bounds = array<i64: 128, 128>}, {transform_indices = @transform_3, window_bounds = array<i64: 1, 128, 1>}, {transform_indices = @transform_4, window_bounds = array<i64: 1, 128, 1>}]} {
    %c0 = arith.constant 0 : index
    %c0_0 = arith.constant 0 : index
    %0 = vector.load %arg2[%c0, %c0_0] : memref<128x256xbf16, #tpu.memory_space<vmem>>, vector<128x256xbf16>
    %c0_1 = arith.constant 0 : index
    %c0_2 = arith.constant 0 : index
    %1 = vector.load %arg3[%c0_1, %c0_2] : memref<256x128xbf16, #tpu.memory_space<vmem>>, vector<256x128xbf16>
    %cst = arith.constant dense<0.000000e+00> : vector<128x128xf32>
    %2 = tpu.matmul %0, %1, %cst {dimension_numbers = #tpu.dot_dimension_numbers<[1], [0], [0], [1], [0, 0, 1, 1], [], []>} : vector<128x256xbf16>, vector<256x128xbf16>, vector<128x128xf32> -> vector<128x128xf32>
    %3 = arith.truncf %2 : vector<128x128xf32> to vector<128x128xbf16>
    %c0_3 = arith.constant 0 : index
    %c0_4 = arith.constant 0 : index
    %4 = vector.load %arg4[%c0_3, %c0_4] : memref<128x128xbf16, #tpu.memory_space<vmem>>, vector<128x128xbf16>
    tpu.vector_store %arg4[%c0_3, %c0_4], %3 {strides = array<i32>} : memref<128x128xbf16, #tpu.memory_space<vmem>>, vector<128x128xbf16>,
    %c0_i32 = arith.constant 0 : i32
    %5 = arith.cmpi eq, %arg1, %c0_i32 : i32
    %6 = arith.extui %5 : i1 to i32
    %c0_i32_5 = arith.constant 0 : i32
    %7 = arith.cmpi ne, %6, %c0_i32_5 : i32
    scf.if %7 {
      %cst_20 = arith.constant 0.000000e+00 : f32
      %21 = vector.broadcast %cst_20 : f32 to vector<1x128x1xf32>
      %c0_21 = arith.constant 0 : index
      %c0_22 = arith.constant 0 : index
      %c0_23 = arith.constant 0 : index
      %22 = vector.load %arg5[%c0_21, %c0_22, %c0_23] : memref<1x128x1xf32, #tpu.memory_space<vmem>>, vector<1x128x1xf32>
      tpu.vector_store %arg5[%c0_21, %c0_22, %c0_23], %21 {strides = array<i32>} : memref<1x128x1xf32, #tpu.memory_space<vmem>>, vector<1x128x1xf32>,
      %cst_24 = arith.constant 0.000000e+00 : f32
      %23 = vector.broadcast %cst_24 : f32 to vector<1x128x1xf32>
      %c0_25 = arith.constant 0 : index
      %c0_26 = arith.constant 0 : index
      %c0_27 = arith.constant 0 : index
      %24 = vector.load %arg6[%c0_25, %c0_26, %c0_27] : memref<1x128x1xf32, #tpu.memory_space<vmem>>, vector<1x128x1xf32>
      tpu.vector_store %arg6[%c0_25, %c0_26, %c0_27], %23 {strides = array<i32>} : memref<1x128x1xf32, #tpu.memory_space<vmem>>, vector<1x128x1xf32>,
    } else {
    }
    %c0_6 = arith.constant 0 : index
    %c0_7 = arith.constant 0 : index
    %c0_8 = arith.constant 0 : index
    %8 = vector.load %arg5[%c0_6, %c0_7, %c0_8] : memref<1x128x1xf32, #tpu.memory_space<vmem>>, vector<1x128x1xf32>
    %cst_9 = arith.constant dense<0.000000e+00> : vector<128xf32>
    %9 = vector.multi_reduction <add>, %2, %cst_9 [1] : vector<128x128xf32> to vector<128xf32>
    %10 = vector.shape_cast %9 : vector<128xf32> to vector<128x1xf32>
    %11 = vector.shape_cast %10 : vector<128x1xf32> to vector<1x128x1xf32>
    %12 = arith.addf %8, %11 : vector<1x128x1xf32>
    %c0_10 = arith.constant 0 : index
    %c0_11 = arith.constant 0 : index
    %c0_12 = arith.constant 0 : index
    %13 = vector.load %arg5[%c0_10, %c0_11, %c0_12] : memref<1x128x1xf32, #tpu.memory_space<vmem>>, vector<1x128x1xf32>
    tpu.vector_store %arg5[%c0_10, %c0_11, %c0_12], %12 {strides = array<i32>} : memref<1x128x1xf32, #tpu.memory_space<vmem>>, vector<1x128x1xf32>,
    %c0_13 = arith.constant 0 : index
    %c0_14 = arith.constant 0 : index
    %c0_15 = arith.constant 0 : index
    %14 = vector.load %arg6[%c0_13, %c0_14, %c0_15] : memref<1x128x1xf32, #tpu.memory_space<vmem>>, vector<1x128x1xf32>
    %15 = arith.mulf %2, %2 : vector<128x128xf32>
    %cst_16 = arith.constant dense<0.000000e+00> : vector<128xf32>
    %16 = vector.multi_reduction <add>, %15, %cst_16 [1] : vector<128x128xf32> to vector<128xf32>
    %17 = vector.shape_cast %16 : vector<128xf32> to vector<128x1xf32>
    %18 = vector.shape_cast %17 : vector<128x1xf32> to vector<1x128x1xf32>
    %19 = arith.addf %14, %18 : vector<1x128x1xf32>
    %c0_17 = arith.constant 0 : index
    %c0_18 = arith.constant 0 : index
    %c0_19 = arith.constant 0 : index
    %20 = vector.load %arg6[%c0_17, %c0_18, %c0_19] : memref<1x128x1xf32, #tpu.memory_space<vmem>>, vector<1x128x1xf32>
    tpu.vector_store %arg6[%c0_17, %c0_18, %c0_19], %19 {strides = array<i32>} : memref<1x128x1xf32, #tpu.memory_space<vmem>>, vector<1x128x1xf32>,
    return
  }
  func.func @transform_0(%arg0: i32, %arg1: i32) -> (i32, i32) {
    %c0_i32 = arith.constant 0 : i32
    %c0_i32_0 = arith.constant 0 : i32
    %c0_i32_1 = arith.constant 0 : i32
    return %c0_i32, %c0_i32_0 : i32, i32
  }
  func.func @transform_1(%arg0: i32, %arg1: i32) -> (i32, i32) {
    %c1_i32 = arith.constant 1 : i32
    %0 = arith.muli %arg0, %c1_i32 : i32
    %1 = arith.addi %0, %arg1 : i32
    %c0_i32 = arith.constant 0 : i32
    %c0_i32_0 = arith.constant 0 : i32
    return %c0_i32, %1 : i32, i32
  }
  func.func @transform_2(%arg0: i32, %arg1: i32) -> (i32, i32) {
    %c1_i32 = arith.constant 1 : i32
    %0 = arith.muli %arg0, %c1_i32 : i32
    %1 = arith.addi %0, %arg1 : i32
    %c0_i32 = arith.constant 0 : i32
    %c0_i32_0 = arith.constant 0 : i32
    return %c0_i32, %1 : i32, i32
  }
  func.func @transform_3(%arg0: i32, %arg1: i32) -> (i32, i32, i32) {
    %c0_i32 = arith.constant 0 : i32
    %c0_i32_0 = arith.constant 0 : i32
    %c0_i32_1 = arith.constant 0 : i32
    return %arg0, %c0_i32, %c0_i32_0 : i32, i32, i32
  }
  func.func @transform_4(%arg0: i32, %arg1: i32) -> (i32, i32, i32) {
    %c0_i32 = arith.constant 0 : i32
    %c0_i32_0 = arith.constant 0 : i32
    %c0_i32_1 = arith.constant 0 : i32
    return %arg0, %c0_i32, %c0_i32_0 : i32, i32, i32
  }
}

module attributes {stable_mosaic.version = 11 : i64} {
  func.func @matmul_stats_kernel(%arg0: i32, %arg1: i32, %arg2: memref<64x128xbf16, #tpu.memory_space<vmem>>, %arg3: memref<128x128xbf16, #tpu.memory_space<vmem>>, %arg4: memref<64x128xbf16, #tpu.memory_space<vmem>>, %arg5: memref<1x64x1xf32, #tpu.memory_space<vmem>>, %arg6: memref<1x64x1xf32, #tpu.memory_space<vmem>>) attributes {dimension_semantics = [#tpu.dimension_semantics<parallel>, #tpu.dimension_semantics<arbitrary>], iteration_bounds = array<i64: 2, 1>, scalar_prefetch = 0 : i64, scratch_operands = 0 : i64, tpu.core_type = #tpu.core_type<tc>, window_params = [{pipeline_mode = #tpu.pipeline_mode<synchronous>, transform_indices = @transform_0, window_bounds = array<i64: 64, 128>}, {transform_indices = @transform_1, window_bounds = array<i64: 128, 128>}, {transform_indices = @transform_2, window_bounds = array<i64: 64, 128>}, {transform_indices = @transform_3, window_bounds = array<i64: 1, 64, 1>}, {transform_indices = @transform_4, window_bounds = array<i64: 1, 64, 1>}]} {
    %c0 = arith.constant 0 : index
    %c0_0 = arith.constant 0 : index
    %0 = vector.load %arg2[%c0, %c0_0] : memref<64x128xbf16, #tpu.memory_space<vmem>>, vector<64x128xbf16>
    %c0_1 = arith.constant 0 : index
    %c0_2 = arith.constant 0 : index
    %1 = vector.load %arg3[%c0_1, %c0_2] : memref<128x128xbf16, #tpu.memory_space<vmem>>, vector<128x128xbf16>
    %cst = arith.constant dense<0.000000e+00> : vector<64x128xf32>
    %2 = tpu.matmul %0, %1, %cst {dimension_numbers = #tpu.dot_dimension_numbers<[1], [0], [0], [1], [0, 0, 1, 1], [], []>} : vector<64x128xbf16>, vector<128x128xbf16>, vector<64x128xf32> -> vector<64x128xf32>
    %3 = arith.truncf %2 : vector<64x128xf32> to vector<64x128xbf16>
    %c0_3 = arith.constant 0 : index
    %c0_4 = arith.constant 0 : index
    %4 = vector.load %arg4[%c0_3, %c0_4] : memref<64x128xbf16, #tpu.memory_space<vmem>>, vector<64x128xbf16>
    tpu.vector_store %arg4[%c0_3, %c0_4], %3 {strides = array<i32>} : memref<64x128xbf16, #tpu.memory_space<vmem>>, vector<64x128xbf16>,
    %c0_i32 = arith.constant 0 : i32
    %5 = arith.cmpi eq, %arg1, %c0_i32 : i32
    %6 = arith.extui %5 : i1 to i32
    %c0_i32_5 = arith.constant 0 : i32
    %7 = arith.cmpi ne, %6, %c0_i32_5 : i32
    scf.if %7 {
      %cst_20 = arith.constant 0.000000e+00 : f32
      %21 = vector.broadcast %cst_20 : f32 to vector<1x64x1xf32>
      %c0_21 = arith.constant 0 : index
      %c0_22 = arith.constant 0 : index
      %c0_23 = arith.constant 0 : index
      %22 = vector.load %arg5[%c0_21, %c0_22, %c0_23] : memref<1x64x1xf32, #tpu.memory_space<vmem>>, vector<1x64x1xf32>
      tpu.vector_store %arg5[%c0_21, %c0_22, %c0_23], %21 {strides = array<i32>} : memref<1x64x1xf32, #tpu.memory_space<vmem>>, vector<1x64x1xf32>,
      %cst_24 = arith.constant 0.000000e+00 : f32
      %23 = vector.broadcast %cst_24 : f32 to vector<1x64x1xf32>
      %c0_25 = arith.constant 0 : index
      %c0_26 = arith.constant 0 : index
      %c0_27 = arith.constant 0 : index
      %24 = vector.load %arg6[%c0_25, %c0_26, %c0_27] : memref<1x64x1xf32, #tpu.memory_space<vmem>>, vector<1x64x1xf32>
      tpu.vector_store %arg6[%c0_25, %c0_26, %c0_27], %23 {strides = array<i32>} : memref<1x64x1xf32, #tpu.memory_space<vmem>>, vector<1x64x1xf32>,
    } else {
    }
    %c0_6 = arith.constant 0 : index
    %c0_7 = arith.constant 0 : index
    %c0_8 = arith.constant 0 : index
    %8 = vector.load %arg5[%c0_6, %c0_7, %c0_8] : memref<1x64x1xf32, #tpu.memory_space<vmem>>, vector<1x64x1xf32>
    %cst_9 = arith.constant dense<0.000000e+00> : vector<64xf32>
    %9 = vector.multi_reduction <add>, %2, %cst_9 [1] : vector<64x128xf32> to vector<64xf32>
    %10 = vector.shape_cast %9 : vector<64xf32> to vector<64x1xf32>
    %11 = vector.shape_cast %10 : vector<64x1xf32> to vector<1x64x1xf32>
    %12 = arith.addf %8, %11 : vector<1x64x1xf32>
    %c0_10 = arith.constant 0 : index
    %c0_11 = arith.constant 0 : index
    %c0_12 = arith.constant 0 : index
    %13 = vector.load %arg5[%c0_10, %c0_11, %c0_12] : memref<1x64x1xf32, #tpu.memory_space<vmem>>, vector<1x64x1xf32>
    tpu.vector_store %arg5[%c0_10, %c0_11, %c0_12], %12 {strides = array<i32>} : memref<1x64x1xf32, #tpu.memory_space<vmem>>, vector<1x64x1xf32>,
    %c0_13 = arith.constant 0 : index
    %c0_14 = arith.constant 0 : index
    %c0_15 = arith.constant 0 : index
    %14 = vector.load %arg6[%c0_13, %c0_14, %c0_15] : memref<1x64x1xf32, #tpu.memory_space<vmem>>, vector<1x64x1xf32>
    %15 = arith.mulf %2, %2 : vector<64x128xf32>
    %cst_16 = arith.constant dense<0.000000e+00> : vector<64xf32>
    %16 = vector.multi_reduction <add>, %15, %cst_16 [1] : vector<64x128xf32> to vector<64xf32>
    %17 = vector.shape_cast %16 : vector<64xf32> to vector<64x1xf32>
    %18 = vector.shape_cast %17 : vector<64x1xf32> to vector<1x64x1xf32>
    %19 = arith.addf %14, %18 : vector<1x64x1xf32>
    %c0_17 = arith.constant 0 : index
    %c0_18 = arith.constant 0 : index
    %c0_19 = arith.constant 0 : index
    %20 = vector.load %arg6[%c0_17, %c0_18, %c0_19] : memref<1x64x1xf32, #tpu.memory_space<vmem>>, vector<1x64x1xf32>
    tpu.vector_store %arg6[%c0_17, %c0_18, %c0_19], %19 {strides = array<i32>} : memref<1x64x1xf32, #tpu.memory_space<vmem>>, vector<1x64x1xf32>,
    return
  }
  func.func @transform_0(%arg0: i32, %arg1: i32) -> (i32, i32) {
    %c0_i32 = arith.constant 0 : i32
    %c0_i32_0 = arith.constant 0 : i32
    %c0_i32_1 = arith.constant 0 : i32
    return %c0_i32, %c0_i32_0 : i32, i32
  }
  func.func @transform_1(%arg0: i32, %arg1: i32) -> (i32, i32) {
    %c1_i32 = arith.constant 1 : i32
    %0 = arith.muli %arg0, %c1_i32 : i32
    %1 = arith.addi %0, %arg1 : i32
    %c0_i32 = arith.constant 0 : i32
    %c0_i32_0 = arith.constant 0 : i32
    return %c0_i32, %1 : i32, i32
  }
  func.func @transform_2(%arg0: i32, %arg1: i32) -> (i32, i32) {
    %c1_i32 = arith.constant 1 : i32
    %0 = arith.muli %arg0, %c1_i32 : i32
    %1 = arith.addi %0, %arg1 : i32
    %c0_i32 = arith.constant 0 : i32
    %c0_i32_0 = arith.constant 0 : i32
    return %c0_i32, %1 : i32, i32
  }
  func.func @transform_3(%arg0: i32, %arg1: i32) -> (i32, i32, i32) {
    %c0_i32 = arith.constant 0 : i32
    %c0_i32_0 = arith.constant 0 : i32
    %c0_i32_1 = arith.constant 0 : i32
    return %arg0, %c0_i32, %c0_i32_0 : i32, i32, i32
  }
  func.func @transform_4(%arg0: i32, %arg1: i32) -> (i32, i32, i32) {
    %c0_i32 = arith.constant 0 : i32
    %c0_i32_0 = arith.constant 0 : i32
    %c0_i32_1 = arith.constant 0 : i32
    return %arg0, %c0_i32, %c0_i32_0 : i32, i32, i32
  }
}

module attributes {stable_mosaic.version = 11 : i64} {
  func.func @matmul_stats_kernel(%arg0: i32, %arg1: i32, %arg2: memref<32x64xbf16, #tpu.memory_space<vmem>>, %arg3: memref<64x512xbf16, #tpu.memory_space<vmem>>, %arg4: memref<32x512xbf16, #tpu.memory_space<vmem>>, %arg5: memref<1x32x1xf32, #tpu.memory_space<vmem>>, %arg6: memref<1x32x1xf32, #tpu.memory_space<vmem>>) attributes {dimension_semantics = [#tpu.dimension_semantics<parallel>, #tpu.dimension_semantics<arbitrary>], iteration_bounds = array<i64: 2, 1>, scalar_prefetch = 0 : i64, scratch_operands = 0 : i64, tpu.core_type = #tpu.core_type<tc>, window_params = [{pipeline_mode = #tpu.pipeline_mode<synchronous>, transform_indices = @transform_0, window_bounds = array<i64: 32, 64>}, {transform_indices = @transform_1, window_bounds = array<i64: 64, 512>}, {transform_indices = @transform_2, window_bounds = array<i64: 32, 512>}, {transform_indices = @transform_3, window_bounds = array<i64: 1, 32, 1>}, {transform_indices = @transform_4, window_bounds = array<i64: 1, 32, 1>}]} {
    %c0 = arith.constant 0 : index
    %c0_0 = arith.constant 0 : index
    %0 = vector.load %arg2[%c0, %c0_0] : memref<32x64xbf16, #tpu.memory_space<vmem>>, vector<32x64xbf16>
    %c0_1 = arith.constant 0 : index
    %c0_2 = arith.constant 0 : index
    %1 = vector.load %arg3[%c0_1, %c0_2] : memref<64x512xbf16, #tpu.memory_space<vmem>>, vector<64x512xbf16>
    %cst = arith.constant dense<0.000000e+00> : vector<32x512xf32>
    %2 = tpu.matmul %0, %1, %cst {dimension_numbers = #tpu.dot_dimension_numbers<[1], [0], [0], [1], [0, 0, 1, 1], [], []>} : vector<32x64xbf16>, vector<64x512xbf16>, vector<32x512xf32> -> vector<32x512xf32>
    %3 = arith.truncf %2 : vector<32x512xf32> to vector<32x512xbf16>
    %c0_3 = arith.constant 0 : index
    %c0_4 = arith.constant 0 : index
    %4 = vector.load %arg4[%c0_3, %c0_4] : memref<32x512xbf16, #tpu.memory_space<vmem>>, vector<32x512xbf16>
    tpu.vector_store %arg4[%c0_3, %c0_4], %3 {strides = array<i32>} : memref<32x512xbf16, #tpu.memory_space<vmem>>, vector<32x512xbf16>,
    %c0_i32 = arith.constant 0 : i32
    %5 = arith.cmpi eq, %arg1, %c0_i32 : i32
    %6 = arith.extui %5 : i1 to i32
    %c0_i32_5 = arith.constant 0 : i32
    %7 = arith.cmpi ne, %6, %c0_i32_5 : i32
    scf.if %7 {
      %cst_20 = arith.constant 0.000000e+00 : f32
      %21 = vector.broadcast %cst_20 : f32 to vector<1x32x1xf32>
      %c0_21 = arith.constant 0 : index
      %c0_22 = arith.constant 0 : index
      %c0_23 = arith.constant 0 : index
      %22 = vector.load %arg5[%c0_21, %c0_22, %c0_23] : memref<1x32x1xf32, #tpu.memory_space<vmem>>, vector<1x32x1xf32>
      tpu.vector_store %arg5[%c0_21, %c0_22, %c0_23], %21 {strides = array<i32>} : memref<1x32x1xf32, #tpu.memory_space<vmem>>, vector<1x32x1xf32>,
      %cst_24 = arith.constant 0.000000e+00 : f32
      %23 = vector.broadcast %cst_24 : f32 to vector<1x32x1xf32>
      %c0_25 = arith.constant 0 : index
      %c0_26 = arith.constant 0 : index
      %c0_27 = arith.constant 0 : index
      %24 = vector.load %arg6[%c0_25, %c0_26, %c0_27] : memref<1x32x1xf32, #tpu.memory_space<vmem>>, vector<1x32x1xf32>
      tpu.vector_store %arg6[%c0_25, %c0_26, %c0_27], %23 {strides = array<i32>} : memref<1x32x1xf32, #tpu.memory_space<vmem>>, vector<1x32x1xf32>,
    } else {
    }
    %c0_6 = arith.constant 0 : index
    %c0_7 = arith.constant 0 : index
    %c0_8 = arith.constant 0 : index
    %8 = vector.load %arg5[%c0_6, %c0_7, %c0_8] : memref<1x32x1xf32, #tpu.memory_space<vmem>>, vector<1x32x1xf32>
    %cst_9 = arith.constant dense<0.000000e+00> : vector<32xf32>
    %9 = vector.multi_reduction <add>, %2, %cst_9 [1] : vector<32x512xf32> to vector<32xf32>
    %10 = vector.shape_cast %9 : vector<32xf32> to vector<32x1xf32>
    %11 = vector.shape_cast %10 : vector<32x1xf32> to vector<1x32x1xf32>
    %12 = arith.addf %8, %11 : vector<1x32x1xf32>
    %c0_10 = arith.constant 0 : index
    %c0_11 = arith.constant 0 : index
    %c0_12 = arith.constant 0 : index
    %13 = vector.load %arg5[%c0_10, %c0_11, %c0_12] : memref<1x32x1xf32, #tpu.memory_space<vmem>>, vector<1x32x1xf32>
    tpu.vector_store %arg5[%c0_10, %c0_11, %c0_12], %12 {strides = array<i32>} : memref<1x32x1xf32, #tpu.memory_space<vmem>>, vector<1x32x1xf32>,
    %c0_13 = arith.constant 0 : index
    %c0_14 = arith.constant 0 : index
    %c0_15 = arith.constant 0 : index
    %14 = vector.load %arg6[%c0_13, %c0_14, %c0_15] : memref<1x32x1xf32, #tpu.memory_space<vmem>>, vector<1x32x1xf32>
    %15 = arith.mulf %2, %2 : vector<32x512xf32>
    %cst_16 = arith.constant dense<0.000000e+00> : vector<32xf32>
    %16 = vector.multi_reduction <add>, %15, %cst_16 [1] : vector<32x512xf32> to vector<32xf32>
    %17 = vector.shape_cast %16 : vector<32xf32> to vector<32x1xf32>
    %18 = vector.shape_cast %17 : vector<32x1xf32> to vector<1x32x1xf32>
    %19 = arith.addf %14, %18 : vector<1x32x1xf32>
    %c0_17 = arith.constant 0 : index
    %c0_18 = arith.constant 0 : index
    %c0_19 = arith.constant 0 : index
    %20 = vector.load %arg6[%c0_17, %c0_18, %c0_19] : memref<1x32x1xf32, #tpu.memory_space<vmem>>, vector<1x32x1xf32>
    tpu.vector_store %arg6[%c0_17, %c0_18, %c0_19], %19 {strides = array<i32>} : memref<1x32x1xf32, #tpu.memory_space<vmem>>, vector<1x32x1xf32>,
    return
  }
  func.func @transform_0(%arg0: i32, %arg1: i32) -> (i32, i32) {
    %c0_i32 = arith.constant 0 : i32
    %c0_i32_0 = arith.constant 0 : i32
    %c0_i32_1 = arith.constant 0 : i32
    return %c0_i32, %c0_i32_0 : i32, i32
  }
  func.func @transform_1(%arg0: i32, %arg1: i32) -> (i32, i32) {
    %c1_i32 = arith.constant 1 : i32
    %0 = arith.muli %arg0, %c1_i32 : i32
    %1 = arith.addi %0, %arg1 : i32
    %c0_i32 = arith.constant 0 : i32
    %c0_i32_0 = arith.constant 0 : i32
    return %c0_i32, %1 : i32, i32
  }
  func.func @transform_2(%arg0: i32, %arg1: i32) -> (i32, i32) {
    %c1_i32 = arith.constant 1 : i32
    %0 = arith.muli %arg0, %c1_i32 : i32
    %1 = arith.addi %0, %arg1 : i32
    %c0_i32 = arith.constant 0 : i32
    %c0_i32_0 = arith.constant 0 : i32
    return %c0_i32, %1 : i32, i32
  }
  func.func @transform_3(%arg0: i32, %arg1: i32) -> (i32, i32, i32) {
    %c0_i32 = arith.constant 0 : i32
    %c0_i32_0 = arith.constant 0 : i32
    %c0_i32_1 = arith.constant 0 : i32
    return %arg0, %c0_i32, %c0_i32_0 : i32, i32, i32
  }
  func.func @transform_4(%arg0: i32, %arg1: i32) -> (i32, i32, i32) {
    %c0_i32 = arith.constant 0 : i32
    %c0_i32_0 = arith.constant 0 : i32
    %c0_i32_1 = arith.constant 0 : i32
    return %arg0, %c0_i32, %c0_i32_0 : i32, i32, i32
  }
}

module attributes {stable_mosaic.version = 11 : i64} {
  func.func @matmul_bias_tanh_kernel(%arg0: i32, %arg1: memref<12x32xbf16, #tpu.memory_space<vmem>>, %arg2: memref<32x512xbf16, #tpu.memory_space<vmem>>, %arg3: memref<12x1xf32, #tpu.memory_space<vmem>>, %arg4: memref<12x512xf32, #tpu.memory_space<vmem>>) attributes {dimension_semantics = [#tpu.dimension_semantics<parallel>], iteration_bounds = array<i64: 6>, scalar_prefetch = 0 : i64, scratch_operands = 0 : i64, tpu.core_type = #tpu.core_type<tc>, window_params = [{pipeline_mode = #tpu.pipeline_mode<synchronous>, transform_indices = @transform_0, window_bounds = array<i64: 12, 32>}, {transform_indices = @transform_1, window_bounds = array<i64: 32, 512>}, {pipeline_mode = #tpu.pipeline_mode<synchronous>, transform_indices = @transform_2, window_bounds = array<i64: 12, 1>}, {transform_indices = @transform_3, window_bounds = array<i64: 12, 512>}]} {
    %c0 = arith.constant 0 : index
    %c0_0 = arith.constant 0 : index
    %0 = vector.load %arg1[%c0, %c0_0] : memref<12x32xbf16, #tpu.memory_space<vmem>>, vector<12x32xbf16>
    %c0_1 = arith.constant 0 : index
    %c0_2 = arith.constant 0 : index
    %1 = vector.load %arg2[%c0_1, %c0_2] : memref<32x512xbf16, #tpu.memory_space<vmem>>, vector<32x512xbf16>
    %cst = arith.constant dense<0.000000e+00> : vector<12x512xf32>
    %2 = tpu.matmul %0, %1, %cst {dimension_numbers = #tpu.dot_dimension_numbers<[1], [0], [0], [1], [0, 0, 1, 1], [], []>} : vector<12x32xbf16>, vector<32x512xbf16>, vector<12x512xf32> -> vector<12x512xf32>
    %c0_3 = arith.constant 0 : index
    %c0_4 = arith.constant 0 : index
    %3 = vector.load %arg3[%c0_3, %c0_4] : memref<12x1xf32, #tpu.memory_space<vmem>>, vector<12x1xf32>
    %4 = vector.broadcast %3 : vector<12x1xf32> to vector<12x512xf32>
    %5 = arith.addf %2, %4 : vector<12x512xf32>
    %6 = math.tanh %5 : vector<12x512xf32>
    %c0_5 = arith.constant 0 : index
    %c0_6 = arith.constant 0 : index
    %7 = vector.load %arg4[%c0_5, %c0_6] : memref<12x512xf32, #tpu.memory_space<vmem>>, vector<12x512xf32>
    tpu.vector_store %arg4[%c0_5, %c0_6], %6 {strides = array<i32>} : memref<12x512xf32, #tpu.memory_space<vmem>>, vector<12x512xf32>,
    return
  }
  func.func @transform_0(%arg0: i32) -> (i32, i32) {
    %c0_i32 = arith.constant 0 : i32
    %c0_i32_0 = arith.constant 0 : i32
    %c0_i32_1 = arith.constant 0 : i32
    return %c0_i32, %c0_i32_0 : i32, i32
  }
  func.func @transform_1(%arg0: i32) -> (i32, i32) {
    %c0_i32 = arith.constant 0 : i32
    %c0_i32_0 = arith.constant 0 : i32
    return %c0_i32, %arg0 : i32, i32
  }
  func.func @transform_2(%arg0: i32) -> (i32, i32) {
    %c0_i32 = arith.constant 0 : i32
    %c0_i32_0 = arith.constant 0 : i32
    %c0_i32_1 = arith.constant 0 : i32
    return %c0_i32, %c0_i32_0 : i32, i32
  }
  func.func @transform_3(%arg0: i32) -> (i32, i32) {
    %c0_i32 = arith.constant 0 : i32
    %c0_i32_0 = arith.constant 0 : i32
    return %c0_i32, %arg0 : i32, i32
  }
}

</mosaic_0001>

<bundles_post_ra>
// kernel: generator_forward.5
= control target key start
LH: loop header
LB: loop body
LE: loop exit
PB: predicated region body
PF: predicated region fallthrough
CT: control target
= control target key end

     0   :  { %vm476_vm0 = vcmask 261120   ;;  %vm1214_vm1 = vcmask 15360   ;;  %s2534_s1 = inlined_call_operand.vmem [shape: bf16[32,2], index: 1, kind: input, shape index: {}]   ;;  %s2535_s0 = inlined_call_operand.vmem [shape: bf16[1024,32], index: 0, kind: input, shape index: {}]   ;;  %s2536_s2 = inlined_call_operand.vmem [shape: f32[1024,2], index: 2, kind: output, shape index: {}]  }
   0x1   :  { %v1679_v0 = vld [vmem:[%s2534_s1] sm:$0xff]   ;;  %v1680_v1 = vld [vmem:[%s2534_s1 + $0x8] sm:$0xff]   ;;  %v1685_v6 = vld [vmem:[%s2535_s0 + $0x10] sm:$0xff]  }
   0x2   :  { %1543 = vmatprep.subr.bf16.mxu0 %v1679_v0  ;;  %1675 = vmatprep.subr.bf16.mxu1 %v1679_v0  ;;  %v1681_v2 = vld [vmem:[%s2535_s0] sm:$0xff]   ;;  %v1683_v4 = vld [vmem:[%s2535_s0 + $0x8] sm:$0xff]   ;;  %v1686_v7 = vld [vmem:[%s2535_s0 + $0x110] sm:$0xff]  }
   0x3   :  { %1544 = vmatpush3.bf16.msra.mxu0 %v1679_v0  ;;  %1677 = vmatpush3.bf16.msra.mxu1 %v1679_v0  ;;  %v1682_v3 = vld [vmem:[%s2535_s0 + $0x100] sm:$0xff]   ;;  %v1684_v5 = vld [vmem:[%s2535_s0 + $0x108] sm:$0xff]   ;;  %v1687_v8 = vld [vmem:[%s2535_s0 + $0x18] sm:$0xff]  }
   0x4   :  { %1545 = vmatprep.subr.bf16.mxu0 %v1680_v1  ;;  %1676 = vmatprep.subr.bf16.mxu1 %v1680_v1  ;;  %v1688_v9 = vld [vmem:[%s2535_s0 + $0x118] sm:$0xff]   ;;  %v1689_v10 = vld [vmem:[%s2535_s0 + $0x20] sm:$0xff]   ;;  %v1691_v12 = vld [vmem:[%s2535_s0 + $0x28] sm:$0xff]  }
   0x5   :  { %1547 = vmatprep.mubr.msk.bf16.mxu0 %vm476_vm0, %v1681_v2  ;;  %1611 = vmatprep.mubr.msk.bf16.mxu1 %vm476_vm0, %v1682_v3  ;;  %v1690_v11 = vld [vmem:[%s2535_s0 + $0x120] sm:$0xff]   ;;  %v1692_v13 = vld [vmem:[%s2535_s0 + $0x128] sm:$0xff]   ;;  %v1693_v14 = vld [vmem:[%s2535_s0 + $0x30] sm:$0xff]  }
   0x6   :  { %v1694_v15 = vld [vmem:[%s2535_s0 + $0x130] sm:$0xff]   ;;  %v1695_v16 = vld [vmem:[%s2535_s0 + $0x38] sm:$0xff]   ;;  %v1697_v18 = vld [vmem:[%s2535_s0 + $0x40] sm:$0xff]  }
   0x7   :  { %1546 = vmatpush3.bf16.msra.mxu0 %v1680_v1  ;;  %1678 = vmatpush3.bf16.msra.mxu1 %v1680_v1  ;;  %v1696_v17 = vld [vmem:[%s2535_s0 + $0x138] sm:$0xff]   ;;  %v1698_v19 = vld [vmem:[%s2535_s0 + $0x140] sm:$0xff]   ;;  %v1699_v20 = vld [vmem:[%s2535_s0 + $0x48] sm:$0xff]  }
   0x8   :  { %v1700_v21 = vld [vmem:[%s2535_s0 + $0x148] sm:$0xff]   ;;  %v1701_v22 = vld [vmem:[%s2535_s0 + $0x50] sm:$0xff]   ;;  %v1703_v24 = vld [vmem:[%s2535_s0 + $0x58] sm:$0xff]  }
   0x9   :  { %v1702_v23 = vld [vmem:[%s2535_s0 + $0x150] sm:$0xff]   ;;  %v1704_v25 = vld [vmem:[%s2535_s0 + $0x158] sm:$0xff]   ;;  %v1705_v26 = vld [vmem:[%s2535_s0 + $0x60] sm:$0xff]  }
   0xa   :  { %1548 = vmatmul.mubr.msk.bf16.vlgmr.msra.gmra.mrb[0].mxu0 %vm476_vm0, %v1683_v4  ;;  %1612 = vmatmul.mubr.msk.bf16.vlgmr.msra.gmra.mrb[0].mxu1 %vm476_vm0, %v1684_v5  ;;  %v1706_v27 = vld [vmem:[%s2535_s0 + $0x160] sm:$0xff]   ;;  %v1707_v28 = vld [vmem:[%s2535_s0 + $0x68] sm:$0xff]   ;;  %v1709_v30 = vld [vmem:[%s2535_s0 + $0x70] sm:$0xff]  }
   0xb   :  { %1551 = vmatprep.mubr.msk.bf16.mxu0 %vm476_vm0, %v1685_v6  ;;  %1615 = vmatprep.mubr.msk.bf16.mxu1 %vm476_vm0, %v1686_v7  ;;  %v1708_v29 = vld [vmem:[%s2535_s0 + $0x168] sm:$0xff]   ;;  %v1710_v31 = vld [vmem:[%s2535_s0 + $0x170] sm:$0xff]   ;;  %v1711_v32 = vld [vmem:[%s2535_s0 + $0x78] sm:$0xff]  }
   0xc   :  { %v1712_v33 = vld [vmem:[%s2535_s0 + $0x178] sm:$0xff]   ;;  %v1713_v34 = vld [vmem:[%s2535_s0 + $0x80] sm:$0xff]   ;;  %v1715_v36 = vld [vmem:[%s2535_s0 + $0x88] sm:$0xff]  }
   0xd   :  { %v1714_v35 = vld [vmem:[%s2535_s0 + $0x180] sm:$0xff]   ;;  %v1716_v37 = vld [vmem:[%s2535_s0 + $0x188] sm:$0xff]   ;;  %v1717_v38 = vld [vmem:[%s2535_s0 + $0x90] sm:$0xff]  }
   0xe   :  { %v1718_v39 = vld [vmem:[%s2535_s0 + $0x190] sm:$0xff]   ;;  %v1719_v40 = vld [vmem:[%s2535_s0 + $0x98] sm:$0xff]   ;;  %v1721_v42 = vld [vmem:[%s2535_s0 + $0xa0] sm:$0xff]  }
   0xf   :  { %v1720_v41 = vld [vmem:[%s2535_s0 + $0x198] sm:$0xff]   ;;  %v1722_v43 = vld [vmem:[%s2535_s0 + $0x1a0] sm:$0xff]   ;;  %v1723_v44 = vld [vmem:[%s2535_s0 + $0xa8] sm:$0xff]  }
  0x10   :  { %v1724_v45 = vld [vmem:[%s2535_s0 + $0x1a8] sm:$0xff]   ;;  %v1725_v46 = vld [vmem:[%s2535_s0 + $0xb0] sm:$0xff]   ;;  %v1727_v48 = vld [vmem:[%s2535_s0 + $0xb8] sm:$0xff]  }
  0x11   :  { %v1726_v47 = vld [vmem:[%s2535_s0 + $0x1b0] sm:$0xff]   ;;  %v1728_v49 = vld [vmem:[%s2535_s0 + $0x1b8] sm:$0xff]   ;;  %v1729_v50 = vld [vmem:[%s2535_s0 + $0xc0] sm:$0xff]  }
  0x12   :  { %1552 = vmatmul.mubr.msk.bf16.gmra.mrb[4].mxu0 %vm476_vm0, %v1687_v8  ;;  %1616 = vmatmul.mubr.msk.bf16.gmra.mrb[4].mxu1 %vm476_vm0, %v1688_v9  ;;  %v1730_v51 = vld [vmem:[%s2535_s0 + $0x1c0] sm:$0xff]   ;;  %v1731_v52 = vld [vmem:[%s2535_s0 + $0xc8] sm:$0xff]   ;;  %v1733_v54 = vld [vmem:[%s2535_s0 + $0xd0] sm:$0xff]  }
  0x13   :  { %1555 = vmatprep.mubr.msk.bf16.mxu0 %vm476_vm0, %v1689_v10  ;;  %1619 = vmatprep.mubr.msk.bf16.mxu1 %vm476_vm0, %v1690_v11  ;;  %v1732_v53 = vld [vmem:[%s2535_s0 + $0x1c8] sm:$0xff]   ;;  %v1734_v55 = vld [vmem:[%s2535_s0 + $0x1d0] sm:$0xff]   ;;  %v1735_v56 = vld [vmem:[%s2535_s0 + $0xd8] sm:$0xff]  }
  0x14   :  { %v1736_v57 = vld [vmem:[%s2535_s0 + $0x1d8] sm:$0xff]   ;;  %v1737_v58 = vld [vmem:[%s2535_s0 + $0xe0] sm:$0xff]   ;;  %v1739_v60 = vld [vmem:[%s2535_s0 + $0xe8] sm:$0xff]  }
  0x15   :  { %v1738_v59 = vld [vmem:[%s2535_s0 + $0x1e0] sm:$0xff]   ;;  %v1740_v61 = vld [vmem:[%s2535_s0 + $0x1e8] sm:$0xff]   ;;  %v1741_v62 = vld [vmem:[%s2535_s0 + $0xf0] sm:$0xff]  }
  0x16   :  { %v1742_v63 = vld [vmem:[%s2535_s0 + $0x1f0] sm:$0xff]   ;;  %v1743_v0 = vld [vmem:[%s2535_s0 + $0xf8] sm:$0xff]  }
  0x17   :  { %v1744_v1 = vld [vmem:[%s2535_s0 + $0x1f8] sm:$0xff]  }
  0x1a   :  { %1556 = vmatmul.mubr.msk.bf16.gmra.mrb[8].mxu0 %vm476_vm0, %v1691_v12  ;;  %1620 = vmatmul.mubr.msk.bf16.gmra.mrb[8].mxu1 %vm476_vm0, %v1692_v13 }
  0x1b   :  { %1559 = vmatprep.mubr.msk.bf16.mxu0 %vm476_vm0, %v1693_v14  ;;  %1623 = vmatprep.mubr.msk.bf16.mxu1 %vm476_vm0, %v1694_v15 }
  0x22   :  { %1560 = vmatmul.mubr.msk.bf16.gmra.mrb[12].mxu0 %vm476_vm0, %v1695_v16  ;;  %1624 = vmatmul.mubr.msk.bf16.gmra.mrb[12].mxu1 %vm476_vm0, %v1696_v17 }
  0x23   :  { %1563 = vmatprep.mubr.msk.bf16.mxu0 %vm476_vm0, %v1697_v18  ;;  %1627 = vmatprep.mubr.msk.bf16.mxu1 %vm476_vm0, %v1698_v19 }
  0x2a   :  { %1564 = vmatmul.mubr.msk.bf16.gmra.mrb[16].mxu0 %vm476_vm0, %v1699_v20  ;;  %1628 = vmatmul.mubr.msk.bf16.gmra.mrb[16].mxu1 %vm476_vm0, %v1700_v21 }
  0x2b   :  { %1567 = vmatprep.mubr.msk.bf16.mxu0 %vm476_vm0, %v1701_v22  ;;  %1631 = vmatprep.mubr.msk.bf16.mxu1 %vm476_vm0, %v1702_v23 }
  0x32   :  { %1568 = vmatmul.mubr.msk.bf16.gmra.mrb[20].mxu0 %vm476_vm0, %v1703_v24  ;;  %1632 = vmatmul.mubr.msk.bf16.gmra.mrb[20].mxu1 %vm476_vm0, %v1704_v25 }
  0x33   :  { %1571 = vmatprep.mubr.msk.bf16.mxu0 %vm476_vm0, %v1705_v26  ;;  %1635 = vmatprep.mubr.msk.bf16.mxu1 %vm476_vm0, %v1706_v27 }
  0x3a   :  { %1572 = vmatmul.mubr.msk.bf16.gmra.mrb[24].mxu0 %vm476_vm0, %v1707_v28  ;;  %1636 = vmatmul.mubr.msk.bf16.gmra.mrb[24].mxu1 %vm476_vm0, %v1708_v29 }
  0x3b   :  { %1575 = vmatprep.mubr.msk.bf16.mxu0 %vm476_vm0, %v1709_v30  ;;  %1639 = vmatprep.mubr.msk.bf16.mxu1 %vm476_vm0, %v1710_v31 }
  0x42   :  { %1576 = vmatmul.mubr.msk.bf16.gmra.mrb[28].mxu0 %vm476_vm0, %v1711_v32  ;;  %1640 = vmatmul.mubr.msk.bf16.gmra.mrb[28].mxu1 %vm476_vm0, %v1712_v33 }
  0x43   :  { %1579 = vmatprep.mubr.msk.bf16.mxu0 %vm476_vm0, %v1713_v34  ;;  %1643 = vmatprep.mubr.msk.bf16.mxu1 %vm476_vm0, %v1714_v35 }
  0x4a   :  { %1580 = vmatmul.mubr.msk.bf16.gmra.mrb[32].mxu0 %vm476_vm0, %v1715_v36  ;;  %1644 = vmatmul.mubr.msk.bf16.gmra.mrb[32].mxu1 %vm476_vm0, %v1716_v37 }
  0x4b   :  { %1583 = vmatprep.mubr.msk.bf16.mxu0 %vm476_vm0, %v1717_v38  ;;  %1647 = vmatprep.mubr.msk.bf16.mxu1 %vm476_vm0, %v1718_v39 }
  0x52   :  { %1584 = vmatmul.mubr.msk.bf16.gmra.mrb[36].mxu0 %vm476_vm0, %v1719_v40  ;;  %1648 = vmatmul.mubr.msk.bf16.gmra.mrb[36].mxu1 %vm476_vm0, %v1720_v41 }
  0x53   :  { %1587 = vmatprep.mubr.msk.bf16.mxu0 %vm476_vm0, %v1721_v42  ;;  %1651 = vmatprep.mubr.msk.bf16.mxu1 %vm476_vm0, %v1722_v43 }
  0x5a   :  { %1588 = vmatmul.mubr.msk.bf16.gmra.mrb[40].mxu0 %vm476_vm0, %v1723_v44  ;;  %1652 = vmatmul.mubr.msk.bf16.gmra.mrb[40].mxu1 %vm476_vm0, %v1724_v45 }
  0x5b   :  { %1591 = vmatprep.mubr.msk.bf16.mxu0 %vm476_vm0, %v1725_v46  ;;  %1655 = vmatprep.mubr.msk.bf16.mxu1 %vm476_vm0, %v1726_v47 }
  0x62   :  { %1592 = vmatmul.mubr.msk.bf16.gmra.mrb[44].mxu0 %vm476_vm0, %v1727_v48  ;;  %1656 = vmatmul.mubr.msk.bf16.gmra.mrb[44].mxu1 %vm476_vm0, %v1728_v49 }
  0x63   :  { %1595 = vmatprep.mubr.msk.bf16.mxu0 %vm476_vm0, %v1729_v50  ;;  %1659 = vmatprep.mubr.msk.bf16.mxu1 %vm476_vm0, %v1730_v51 }
  0x6a   :  { %1596 = vmatmul.mubr.msk.bf16.gmra.mrb[48].mxu0 %vm476_vm0, %v1731_v52  ;;  %1660 = vmatmul.mubr.msk.bf16.gmra.mrb[48].mxu1 %vm476_vm0, %v1732_v53 }
  0x6b   :  { %1599 = vmatprep.mubr.msk.bf16.mxu0 %vm476_vm0, %v1733_v54  ;;  %1663 = vmatprep.mubr.msk.bf16.mxu1 %vm476_vm0, %v1734_v55 }
  0x72   :  { %1600 = vmatmul.mubr.msk.bf16.gmra.mrb[52].mxu0 %vm476_vm0, %v1735_v56  ;;  %1664 = vmatmul.mubr.msk.bf16.gmra.mrb[52].mxu1 %vm476_vm0, %v1736_v57 }
  0x73   :  { %1603 = vmatprep.mubr.msk.bf16.mxu0 %vm476_vm0, %v1737_v58  ;;  %1667 = vmatprep.mubr.msk.bf16.mxu1 %vm476_vm0, %v1738_v59 }
  0x7a   :  { %1604 = vmatmul.mubr.msk.bf16.gmra.mrb[56].mxu0 %vm476_vm0, %v1739_v60  ;;  %1668 = vmatmul.mubr.msk.bf16.gmra.mrb[56].mxu1 %vm476_vm0, %v1740_v61 }
  0x7b   :  { %1607 = vmatprep.mubr.msk.bf16.mxu0 %vm476_vm0, %v1741_v62  ;;  %1671 = vmatprep.mubr.msk.bf16.mxu1 %vm476_vm0, %v1742_v63 }
  0x82   :  { %1608 = vmatmul.mubr.msk.bf16.gmra.mrb[60].mxu0 %vm476_vm0, %v1743_v0  ;;  %1672 = vmatmul.mubr.msk.bf16.gmra.mrb[60].mxu1 %vm476_vm0, %v1744_v1 }
  0xdd   :  { %v1549_v2 = vpop.f32.mrb[0].mxu0  ;;  %v1613_v3 = vpop.f32.mrb[0].mxu1 }
  0xde   :  { %1217 = vst.msk [vmem:[%s2536_s2 + $0x10] sm:$0xff] %vm1214_vm1, %v1549_v2  ;;  %1281 = vst.msk [vmem:[%s2536_s2 + $0x210] sm:$0xff] %vm1214_vm1, %v1613_v3  ;;  %v703_v4 = vpop.f32.mrb[1].mxu0  ;;  %v959_v5 = vpop.f32.mrb[1].mxu1 }
  0xdf   :  { %1215 = vst.msk [vmem:[%s2536_s2] sm:$0xff] %vm1214_vm1, %v703_v4  ;;  %1279 = vst.msk [vmem:[%s2536_s2 + $0x200] sm:$0xff] %vm1214_vm1, %v959_v5  ;;  %v1550_v6 = vpop.f32.mrb[2].mxu0  ;;  %v1614_v7 = vpop.f32.mrb[2].mxu1 }
  0xe0   :  { %1218 = vst.msk [vmem:[%s2536_s2 + $0x18] sm:$0xff] %vm1214_vm1, %v1550_v6  ;;  %1282 = vst.msk [vmem:[%s2536_s2 + $0x218] sm:$0xff] %vm1214_vm1, %v1614_v7  ;;  %v706_v8 = vpop.f32.mrb[3].mxu0  ;;  %v962_v9 = vpop.f32.mrb[3].mxu1 }
  0xe1   :  { %1216 = vst.msk [vmem:[%s2536_s2 + $0x8] sm:$0xff] %vm1214_vm1, %v706_v8  ;;  %1280 = vst.msk [vmem:[%s2536_s2 + $0x208] sm:$0xff] %vm1214_vm1, %v962_v9 }
  0xe5   :  { %v1553_v10 = vpop.f32.mrb[4].mxu0  ;;  %v1617_v11 = vpop.f32.mrb[4].mxu1 }
  0xe6   :  { %1221 = vst.msk [vmem:[%s2536_s2 + $0x30] sm:$0xff] %vm1214_vm1, %v1553_v10  ;;  %1285 = vst.msk [vmem:[%s2536_s2 + $0x230] sm:$0xff] %vm1214_vm1, %v1617_v11  ;;  %v719_v12 = vpop.f32.mrb[5].mxu0  ;;  %v975_v13 = vpop.f32.mrb[5].mxu1 }
  0xe7   :  { %1219 = vst.msk [vmem:[%s2536_s2 + $0x20] sm:$0xff] %vm1214_vm1, %v719_v12  ;;  %1283 = vst.msk [vmem:[%s2536_s2 + $0x220] sm:$0xff] %vm1214_vm1, %v975_v13  ;;  %v1554_v14 = vpop.f32.mrb[6].mxu0  ;;  %v1618_v15 = vpop.f32.mrb[6].mxu1 }
  0xe8   :  { %1222 = vst.msk [vmem:[%s2536_s2 + $0x38] sm:$0xff] %vm1214_vm1, %v1554_v14  ;;  %1286 = vst.msk [vmem:[%s2536_s2 + $0x238] sm:$0xff] %vm1214_vm1, %v1618_v15  ;;  %v722_v16 = vpop.f32.mrb[7].mxu0  ;;  %v978_v17 = vpop.f32.mrb[7].mxu1 }
  0xe9   :  { %1220 = vst.msk [vmem:[%s2536_s2 + $0x28] sm:$0xff] %vm1214_vm1, %v722_v16  ;;  %1284 = vst.msk [vmem:[%s2536_s2 + $0x228] sm:$0xff] %vm1214_vm1, %v978_v17 }
  0xed   :  { %v1557_v18 = vpop.f32.mrb[8].mxu0  ;;  %v1621_v19 = vpop.f32.mrb[8].mxu1 }
  0xee   :  { %1225 = vst.msk [vmem:[%s2536_s2 + $0x50] sm:$0xff] %vm1214_vm1, %v1557_v18  ;;  %1289 = vst.msk [vmem:[%s2536_s2 + $0x250] sm:$0xff] %vm1214_vm1, %v1621_v19  ;;  %v735_v20 = vpop.f32.mrb[9].mxu0  ;;  %v991_v21 = vpop.f32.mrb[9].mxu1 }
  0xef   :  { %1223 = vst.msk [vmem:[%s2536_s2 + $0x40] sm:$0xff] %vm1214_vm1, %v735_v20  ;;  %1287 = vst.msk [vmem:[%s2536_s2 + $0x240] sm:$0xff] %vm1214_vm1, %v991_v21  ;;  %v1558_v22 = vpop.f32.mrb[10].mxu0  ;;  %v1622_v23 = vpop.f32.mrb[10].mxu1 }
  0xf0   :  { %1226 = vst.msk [vmem:[%s2536_s2 + $0x58] sm:$0xff] %vm1214_vm1, %v1558_v22  ;;  %1290 = vst.msk [vmem:[%s2536_s2 + $0x258] sm:$0xff] %vm1214_vm1, %v1622_v23  ;;  %v738_v24 = vpop.f32.mrb[11].mxu0  ;;  %v994_v25 = vpop.f32.mrb[11].mxu1 }
  0xf1   :  { %1224 = vst.msk [vmem:[%s2536_s2 + $0x48] sm:$0xff] %vm1214_vm1, %v738_v24  ;;  %1288 = vst.msk [vmem:[%s2536_s2 + $0x248] sm:$0xff] %vm1214_vm1, %v994_v25 }
  0xf5   :  { %v1561_v26 = vpop.f32.mrb[12].mxu0  ;;  %v1625_v27 = vpop.f32.mrb[12].mxu1 }
  0xf6   :  { %1229 = vst.msk [vmem:[%s2536_s2 + $0x70] sm:$0xff] %vm1214_vm1, %v1561_v26  ;;  %1293 = vst.msk [vmem:[%s2536_s2 + $0x270] sm:$0xff] %vm1214_vm1, %v1625_v27  ;;  %v751_v28 = vpop.f32.mrb[13].mxu0  ;;  %v1007_v29 = vpop.f32.mrb[13].mxu1 }
  0xf7   :  { %1227 = vst.msk [vmem:[%s2536_s2 + $0x60] sm:$0xff] %vm1214_vm1, %v751_v28  ;;  %1291 = vst.msk [vmem:[%s2536_s2 + $0x260] sm:$0xff] %vm1214_vm1, %v1007_v29  ;;  %v1562_v30 = vpop.f32.mrb[14].mxu0  ;;  %v1626_v31 = vpop.f32.mrb[14].mxu1 }
  0xf8   :  { %1230 = vst.msk [vmem:[%s2536_s2 + $0x78] sm:$0xff] %vm1214_vm1, %v1562_v30  ;;  %1294 = vst.msk [vmem:[%s2536_s2 + $0x278] sm:$0xff] %vm1214_vm1, %v1626_v31  ;;  %v754_v32 = vpop.f32.mrb[15].mxu0  ;;  %v1010_v33 = vpop.f32.mrb[15].mxu1 }
  0xf9   :  { %1228 = vst.msk [vmem:[%s2536_s2 + $0x68] sm:$0xff] %vm1214_vm1, %v754_v32  ;;  %1292 = vst.msk [vmem:[%s2536_s2 + $0x268] sm:$0xff] %vm1214_vm1, %v1010_v33 }
  0xfd   :  { %v1565_v34 = vpop.f32.mrb[16].mxu0  ;;  %v1629_v35 = vpop.f32.mrb[16].mxu1 }
  0xfe   :  { %1233 = vst.msk [vmem:[%s2536_s2 + $0x90] sm:$0xff] %vm1214_vm1, %v1565_v34  ;;  %1297 = vst.msk [vmem:[%s2536_s2 + $0x290] sm:$0xff] %vm1214_vm1, %v1629_v35  ;;  %v767_v36 = vpop.f32.mrb[17].mxu0  ;;  %v1023_v37 = vpop.f32.mrb[17].mxu1 }
  0xff   :  { %1231 = vst.msk [vmem:[%s2536_s2 + $0x80] sm:$0xff] %vm1214_vm1, %v767_v36  ;;  %1295 = vst.msk [vmem:[%s2536_s2 + $0x280] sm:$0xff] %vm1214_vm1, %v1023_v37  ;;  %v1566_v38 = vpop.f32.mrb[18].mxu0  ;;  %v1630_v39 = vpop.f32.mrb[18].mxu1 }
 0x100   :  { %1234 = vst.msk [vmem:[%s2536_s2 + $0x98] sm:$0xff] %vm1214_vm1, %v1566_v38  ;;  %1298 = vst.msk [vmem:[%s2536_s2 + $0x298] sm:$0xff] %vm1214_vm1, %v1630_v39  ;;  %v770_v40 = vpop.f32.mrb[19].mxu0  ;;  %v1026_v41 = vpop.f32.mrb[19].mxu1 }
 0x101   :  { %1232 = vst.msk [vmem:[%s2536_s2 + $0x88] sm:$0xff] %vm1214_vm1, %v770_v40  ;;  %1296 = vst.msk [vmem:[%s2536_s2 + $0x288] sm:$0xff] %vm1214_vm1, %v1026_v41 }
 0x105   :  { %v1569_v42 = vpop.f32.mrb[20].mxu0  ;;  %v1633_v43 = vpop.f32.mrb[20].mxu1 }
 0x106   :  { %1237 = vst.msk [vmem:[%s2536_s2 + $0xb0] sm:$0xff] %vm1214_vm1, %v1569_v42  ;;  %1301 = vst.msk [vmem:[%s2536_s2 + $0x2b0] sm:$0xff] %vm1214_vm1, %v1633_v43  ;;  %v783_v44 = vpop.f32.mrb[21].mxu0  ;;  %v1039_v45 = vpop.f32.mrb[21].mxu1 }
 0x107   :  { %1235 = vst.msk [vmem:[%s2536_s2 + $0xa0] sm:$0xff] %vm1214_vm1, %v783_v44  ;;  %1299 = vst.msk [vmem:[%s2536_s2 + $0x2a0] sm:$0xff] %vm1214_vm1, %v1039_v45  ;;  %v1570_v46 = vpop.f32.mrb[22].mxu0  ;;  %v1634_v47 = vpop.f32.mrb[22].mxu1 }
 0x108   :  { %1238 = vst.msk [vmem:[%s2536_s2 + $0xb8] sm:$0xff] %vm1214_vm1, %v1570_v46  ;;  %1302 = vst.msk [vmem:[%s2536_s2 + $0x2b8] sm:$0xff] %vm1214_vm1, %v1634_v47  ;;  %v786_v48 = vpop.f32.mrb[23].mxu0  ;;  %v1042_v49 = vpop.f32.mrb[23].mxu1 }
 0x109   :  { %1236 = vst.msk [vmem:[%s2536_s2 + $0xa8] sm:$0xff] %vm1214_vm1, %v786_v48  ;;  %1300 = vst.msk [vmem:[%s2536_s2 + $0x2a8] sm:$0xff] %vm1214_vm1, %v1042_v49 }
 0x10d   :  { %v1573_v50 = vpop.f32.mrb[24].mxu0  ;;  %v1637_v51 = vpop.f32.mrb[24].mxu1 }
 0x10e   :  { %1241 = vst.msk [vmem:[%s2536_s2 + $0xd0] sm:$0xff] %vm1214_vm1, %v1573_v50  ;;  %1305 = vst.msk [vmem:[%s2536_s2 + $0x2d0] sm:$0xff] %vm1214_vm1, %v1637_v51  ;;  %v799_v52 = vpop.f32.mrb[25].mxu0  ;;  %v1055_v53 = vpop.f32.mrb[25].mxu1 }
 0x10f   :  { %1239 = vst.msk [vmem:[%s2536_s2 + $0xc0] sm:$0xff] %vm1214_vm1, %v799_v52  ;;  %1303 = vst.msk [vmem:[%s2536_s2 + $0x2c0] sm:$0xff] %vm1214_vm1, %v1055_v53  ;;  %v1574_v54 = vpop.f32.mrb[26].mxu0  ;;  %v1638_v55 = vpop.f32.mrb[26].mxu1 }
 0x110   :  { %1242 = vst.msk [vmem:[%s2536_s2 + $0xd8] sm:$0xff] %vm1214_vm1, %v1574_v54  ;;  %1306 = vst.msk [vmem:[%s2536_s2 + $0x2d8] sm:$0xff] %vm1214_vm1, %v1638_v55  ;;  %v802_v56 = vpop.f32.mrb[27].mxu0  ;;  %v1058_v57 = vpop.f32.mrb[27].mxu1 }
 0x111   :  { %1240 = vst.msk [vmem:[%s2536_s2 + $0xc8] sm:$0xff] %vm1214_vm1, %v802_v56  ;;  %1304 = vst.msk [vmem:[%s2536_s2 + $0x2c8] sm:$0xff] %vm1214_vm1, %v1058_v57 }
 0x115   :  { %v1577_v58 = vpop.f32.mrb[28].mxu0  ;;  %v1641_v59 = vpop.f32.mrb[28].mxu1 }
 0x116   :  { %1245 = vst.msk [vmem:[%s2536_s2 + $0xf0] sm:$0xff] %vm1214_vm1, %v1577_v58  ;;  %1309 = vst.msk [vmem:[%s2536_s2 + $0x2f0] sm:$0xff] %vm1214_vm1, %v1641_v59  ;;  %v815_v60 = vpop.f32.mrb[29].mxu0  ;;  %v1071_v61 = vpop.f32.mrb[29].mxu1 }
 0x117   :  { %1243 = vst.msk [vmem:[%s2536_s2 + $0xe0] sm:$0xff] %vm1214_vm1, %v815_v60  ;;  %1307 = vst.msk [vmem:[%s2536_s2 + $0x2e0] sm:$0xff] %vm1214_vm1, %v1071_v61  ;;  %v1578_v62 = vpop.f32.mrb[30].mxu0  ;;  %v1642_v63 = vpop.f32.mrb[30].mxu1 }
 0x118   :  { %1246 = vst.msk [vmem:[%s2536_s2 + $0xf8] sm:$0xff] %vm1214_vm1, %v1578_v62  ;;  %1310 = vst.msk [vmem:[%s2536_s2 + $0x2f8] sm:$0xff] %vm1214_vm1, %v1642_v63  ;;  %v818_v0 = vpop.f32.mrb[31].mxu0  ;;  %v1074_v1 = vpop.f32.mrb[31].mxu1 }
 0x119   :  { %1244 = vst.msk [vmem:[%s2536_s2 + $0xe8] sm:$0xff] %vm1214_vm1, %v818_v0  ;;  %1308 = vst.msk [vmem:[%s2536_s2 + $0x2e8] sm:$0xff] %vm1214_vm1, %v1074_v1 }
 0x11d   :  { %v1581_v2 = vpop.f32.mrb[32].mxu0  ;;  %v1645_v3 = vpop.f32.mrb[32].mxu1 }
 0x11e   :  { %1249 = vst.msk [vmem:[%s2536_s2 + $0x110] sm:$0xff] %vm1214_vm1, %v1581_v2  ;;  %1313 = vst.msk [vmem:[%s2536_s2 + $0x310] sm:$0xff] %vm1214_vm1, %v1645_v3  ;;  %v831_v4 = vpop.f32.mrb[33].mxu0  ;;  %v1087_v5 = vpop.f32.mrb[33].mxu1 }
 0x11f   :  { %1247 = vst.msk [vmem:[%s2536_s2 + $0x100] sm:$0xff] %vm1214_vm1, %v831_v4  ;;  %1311 = vst.msk [vmem:[%s2536_s2 + $0x300] sm:$0xff] %vm1214_vm1, %v1087_v5  ;;  %v1582_v6 = vpop.f32.mrb[34].mxu0  ;;  %v1646_v7 = vpop.f32.mrb[34].mxu1 }
 0x120   :  { %1250 = vst.msk [vmem:[%s2536_s2 + $0x118] sm:$0xff] %vm1214_vm1, %v1582_v6  ;;  %1314 = vst.msk [vmem:[%s2536_s2 + $0x318] sm:$0xff] %vm1214_vm1, %v1646_v7  ;;  %v834_v8 = vpop.f32.mrb[35].mxu0  ;;  %v1090_v9 = vpop.f32.mrb[35].mxu1 }
 0x121   :  { %1248 = vst.msk [vmem:[%s2536_s2 + $0x108] sm:$0xff] %vm1214_vm1, %v834_v8  ;;  %1312 = vst.msk [vmem:[%s2536_s2 + $0x308] sm:$0xff] %vm1214_vm1, %v1090_v9 }
 0x125   :  { %v1585_v10 = vpop.f32.mrb[36].mxu0  ;;  %v1649_v11 = vpop.f32.mrb[36].mxu1 }
 0x126   :  { %1253 = vst.msk [vmem:[%s2536_s2 + $0x130] sm:$0xff] %vm1214_vm1, %v1585_v10  ;;  %1317 = vst.msk [vmem:[%s2536_s2 + $0x330] sm:$0xff] %vm1214_vm1, %v1649_v11  ;;  %v847_v12 = vpop.f32.mrb[37].mxu0  ;;  %v1103_v13 = vpop.f32.mrb[37].mxu1 }
 0x127   :  { %1251 = vst.msk [vmem:[%s2536_s2 + $0x120] sm:$0xff] %vm1214_vm1, %v847_v12  ;;  %1315 = vst.msk [vmem:[%s2536_s2 + $0x320] sm:$0xff] %vm1214_vm1, %v1103_v13  ;;  %v1586_v14 = vpop.f32.mrb[38].mxu0  ;;  %v1650_v15 = vpop.f32.mrb[38].mxu1 }
 0x128   :  { %1254 = vst.msk [vmem:[%s2536_s2 + $0x138] sm:$0xff] %vm1214_vm1, %v1586_v14  ;;  %1318 = vst.msk [vmem:[%s2536_s2 + $0x338] sm:$0xff] %vm1214_vm1, %v1650_v15  ;;  %v850_v16 = vpop.f32.mrb[39].mxu0  ;;  %v1106_v17 = vpop.f32.mrb[39].mxu1 }
 0x129   :  { %1252 = vst.msk [vmem:[%s2536_s2 + $0x128] sm:$0xff] %vm1214_vm1, %v850_v16  ;;  %1316 = vst.msk [vmem:[%s2536_s2 + $0x328] sm:$0xff] %vm1214_vm1, %v1106_v17 }
 0x12d   :  { %v1589_v18 = vpop.f32.mrb[40].mxu0  ;;  %v1653_v19 = vpop.f32.mrb[40].mxu1 }
 0x12e   :  { %1257 = vst.msk [vmem:[%s2536_s2 + $0x150] sm:$0xff] %vm1214_vm1, %v1589_v18  ;;  %1321 = vst.msk [vmem:[%s2536_s2 + $0x350] sm:$0xff] %vm1214_vm1, %v1653_v19  ;;  %v863_v20 = vpop.f32.mrb[41].mxu0  ;;  %v1119_v21 = vpop.f32.mrb[41].mxu1 }
 0x12f   :  { %1255 = vst.msk [vmem:[%s2536_s2 + $0x140] sm:$0xff] %vm1214_vm1, %v863_v20  ;;  %1319 = vst.msk [vmem:[%s2536_s2 + $0x340] sm:$0xff] %vm1214_vm1, %v1119_v21  ;;  %v1590_v22 = vpop.f32.mrb[42].mxu0  ;;  %v1654_v23 = vpop.f32.mrb[42].mxu1 }
 0x130   :  { %1258 = vst.msk [vmem:[%s2536_s2 + $0x158] sm:$0xff] %vm1214_vm1, %v1590_v22  ;;  %1322 = vst.msk [vmem:[%s2536_s2 + $0x358] sm:$0xff] %vm1214_vm1, %v1654_v23  ;;  %v866_v24 = vpop.f32.mrb[43].mxu0  ;;  %v1122_v25 = vpop.f32.mrb[43].mxu1 }
 0x131   :  { %1256 = vst.msk [vmem:[%s2536_s2 + $0x148] sm:$0xff] %vm1214_vm1, %v866_v24  ;;  %1320 = vst.msk [vmem:[%s2536_s2 + $0x348] sm:$0xff] %vm1214_vm1, %v1122_v25 }
 0x135   :  { %v1593_v26 = vpop.f32.mrb[44].mxu0  ;;  %v1657_v27 = vpop.f32.mrb[44].mxu1 }
 0x136   :  { %1261 = vst.msk [vmem:[%s2536_s2 + $0x170] sm:$0xff] %vm1214_vm1, %v1593_v26  ;;  %1325 = vst.msk [vmem:[%s2536_s2 + $0x370] sm:$0xff] %vm1214_vm1, %v1657_v27  ;;  %v879_v28 = vpop.f32.mrb[45].mxu0  ;;  %v1135_v29 = vpop.f32.mrb[45].mxu1 }
 0x137   :  { %1259 = vst.msk [vmem:[%s2536_s2 + $0x160] sm:$0xff] %vm1214_vm1, %v879_v28  ;;  %1323 = vst.msk [vmem:[%s2536_s2 + $0x360] sm:$0xff] %vm1214_vm1, %v1135_v29  ;;  %v1594_v30 = vpop.f32.mrb[46].mxu0  ;;  %v1658_v31 = vpop.f32.mrb[46].mxu1 }
 0x138   :  { %1262 = vst.msk [vmem:[%s2536_s2 + $0x178] sm:$0xff] %vm1214_vm1, %v1594_v30  ;;  %1326 = vst.msk [vmem:[%s2536_s2 + $0x378] sm:$0xff] %vm1214_vm1, %v1658_v31  ;;  %v882_v32 = vpop.f32.mrb[47].mxu0  ;;  %v1138_v33 = vpop.f32.mrb[47].mxu1 }
 0x139   :  { %1260 = vst.msk [vmem:[%s2536_s2 + $0x168] sm:$0xff] %vm1214_vm1, %v882_v32  ;;  %1324 = vst.msk [vmem:[%s2536_s2 + $0x368] sm:$0xff] %vm1214_vm1, %v1138_v33 }
 0x13d   :  { %v1597_v34 = vpop.f32.mrb[48].mxu0  ;;  %v1661_v35 = vpop.f32.mrb[48].mxu1 }
 0x13e   :  { %1265 = vst.msk [vmem:[%s2536_s2 + $0x190] sm:$0xff] %vm1214_vm1, %v1597_v34  ;;  %1329 = vst.msk [vmem:[%s2536_s2 + $0x390] sm:$0xff] %vm1214_vm1, %v1661_v35  ;;  %v895_v36 = vpop.f32.mrb[49].mxu0  ;;  %v1151_v37 = vpop.f32.mrb[49].mxu1 }
 0x13f   :  { %1263 = vst.msk [vmem:[%s2536_s2 + $0x180] sm:$0xff] %vm1214_vm1, %v895_v36  ;;  %1327 = vst.msk [vmem:[%s2536_s2 + $0x380] sm:$0xff] %vm1214_vm1, %v1151_v37  ;;  %v1598_v38 = vpop.f32.mrb[50].mxu0  ;;  %v1662_v39 = vpop.f32.mrb[50].mxu1 }
 0x140   :  { %1266 = vst.msk [vmem:[%s2536_s2 + $0x198] sm:$0xff] %vm1214_vm1, %v1598_v38  ;;  %1330 = vst.msk [vmem:[%s2536_s2 + $0x398] sm:$0xff] %vm1214_vm1, %v1662_v39  ;;  %v898_v40 = vpop.f32.mrb[51].mxu0  ;;  %v1154_v41 = vpop.f32.mrb[51].mxu1 }
 0x141   :  { %1264 = vst.msk [vmem:[%s2536_s2 + $0x188] sm:$0xff] %vm1214_vm1, %v898_v40  ;;  %1328 = vst.msk [vmem:[%s2536_s2 + $0x388] sm:$0xff] %vm1214_vm1, %v1154_v41 }
 0x145   :  { %v1601_v42 = vpop.f32.mrb[52].mxu0  ;;  %v1665_v43 = vpop.f32.mrb[52].mxu1 }
 0x146   :  { %1269 = vst.msk [vmem:[%s2536_s2 + $0x1b0] sm:$0xff] %vm1214_vm1, %v1601_v42  ;;  %1333 = vst.msk [vmem:[%s2536_s2 + $0x3b0] sm:$0xff] %vm1214_vm1, %v1665_v43  ;;  %v911_v44 = vpop.f32.mrb[53].mxu0  ;;  %v1167_v45 = vpop.f32.mrb[53].mxu1 }
 0x147   :  { %1267 = vst.msk [vmem:[%s2536_s2 + $0x1a0] sm:$0xff] %vm1214_vm1, %v911_v44  ;;  %1331 = vst.msk [vmem:[%s2536_s2 + $0x3a0] sm:$0xff] %vm1214_vm1, %v1167_v45  ;;  %v1602_v46 = vpop.f32.mrb[54].mxu0  ;;  %v1666_v47 = vpop.f32.mrb[54].mxu1 }
 0x148   :  { %1270 = vst.msk [vmem:[%s2536_s2 + $0x1b8] sm:$0xff] %vm1214_vm1, %v1602_v46  ;;  %1334 = vst.msk [vmem:[%s2536_s2 + $0x3b8] sm:$0xff] %vm1214_vm1, %v1666_v47  ;;  %v914_v48 = vpop.f32.mrb[55].mxu0  ;;  %v1170_v49 = vpop.f32.mrb[55].mxu1 }
 0x149   :  { %1268 = vst.msk [vmem:[%s2536_s2 + $0x1a8] sm:$0xff] %vm1214_vm1, %v914_v48  ;;  %1332 = vst.msk [vmem:[%s2536_s2 + $0x3a8] sm:$0xff] %vm1214_vm1, %v1170_v49 }
 0x14d   :  { %v1605_v50 = vpop.f32.mrb[56].mxu0  ;;  %v1669_v51 = vpop.f32.mrb[56].mxu1 }
 0x14e   :  { %1273 = vst.msk [vmem:[%s2536_s2 + $0x1d0] sm:$0xff] %vm1214_vm1, %v1605_v50  ;;  %1337 = vst.msk [vmem:[%s2536_s2 + $0x3d0] sm:$0xff] %vm1214_vm1, %v1669_v51  ;;  %v927_v52 = vpop.f32.mrb[57].mxu0  ;;  %v1183_v53 = vpop.f32.mrb[57].mxu1 }
 0x14f   :  { %1271 = vst.msk [vmem:[%s2536_s2 + $0x1c0] sm:$0xff] %vm1214_vm1, %v927_v52  ;;  %1335 = vst.msk [vmem:[%s2536_s2 + $0x3c0] sm:$0xff] %vm1214_vm1, %v1183_v53  ;;  %v1606_v54 = vpop.f32.mrb[58].mxu0  ;;  %v1670_v55 = vpop.f32.mrb[58].mxu1 }
 0x150   :  { %1274 = vst.msk [vmem:[%s2536_s2 + $0x1d8] sm:$0xff] %vm1214_vm1, %v1606_v54  ;;  %1338 = vst.msk [vmem:[%s2536_s2 + $0x3d8] sm:$0xff] %vm1214_vm1, %v1670_v55  ;;  %v930_v56 = vpop.f32.mrb[59].mxu0  ;;  %v1186_v57 = vpop.f32.mrb[59].mxu1 }
 0x151   :  { %1272 = vst.msk [vmem:[%s2536_s2 + $0x1c8] sm:$0xff] %vm1214_vm1, %v930_v56  ;;  %1336 = vst.msk [vmem:[%s2536_s2 + $0x3c8] sm:$0xff] %vm1214_vm1, %v1186_v57 }
 0x155   :  { %v1609_v58 = vpop.f32.mrb[60].mxu0  ;;  %v1673_v59 = vpop.f32.mrb[60].mxu1 }
 0x156   :  { %1277 = vst.msk [vmem:[%s2536_s2 + $0x1f0] sm:$0xff] %vm1214_vm1, %v1609_v58  ;;  %1341 = vst.msk [vmem:[%s2536_s2 + $0x3f0] sm:$0xff] %vm1214_vm1, %v1673_v59  ;;  %v943_v60 = vpop.f32.mrb[61].mxu0  ;;  %v1199_v61 = vpop.f32.mrb[61].mxu1 }
 0x157   :  { %1275 = vst.msk [vmem:[%s2536_s2 + $0x1e0] sm:$0xff] %vm1214_vm1, %v943_v60  ;;  %1339 = vst.msk [vmem:[%s2536_s2 + $0x3e0] sm:$0xff] %vm1214_vm1, %v1199_v61  ;;  %v1610_v62 = vpop.f32.mrb[62].mxu0  ;;  %v1674_v63 = vpop.f32.mrb[62].mxu1 }
 0x158   :  { %1278 = vst.msk [vmem:[%s2536_s2 + $0x1f8] sm:$0xff] %vm1214_vm1, %v1610_v62  ;;  %1342 = vst.msk [vmem:[%s2536_s2 + $0x3f8] sm:$0xff] %vm1214_vm1, %v1674_v63  ;;  %v946_v0 = vpop.f32.mrb[63].mxu0  ;;  %v1202_v1 = vpop.f32.mrb[63].mxu1 }
 0x159   :  { %1276 = vst.msk [vmem:[%s2536_s2 + $0x1e8] sm:$0xff] %vm1214_vm1, %v946_v0  ;;  %1340 = vst.msk [vmem:[%s2536_s2 + $0x3e8] sm:$0xff] %vm1214_vm1, %v1202_v1 }

// kernel: generator_forward.6
= control target key start
LH: loop header
LB: loop body
LE: loop exit
PB: predicated region body
PF: predicated region fallthrough
CT: control target
= control target key end

     0   :  { %vm448_vm0 = vcmask 7168   ;;  %v927_v32 = vmov 0.0   ;;  %s1469_s1 = inlined_call_operand.vmem [shape: bf16[256,128], index: 1, kind: input, shape index: {}]   ;;  %s1470_s0 = inlined_call_operand.vmem [shape: bf16[128,256], index: 0, kind: input, shape index: {}]   ;;  %s1471_s3 = inlined_call_operand.vmem [shape: f32[1,128,1], index: 3, kind: output, shape index: {1}]   ;;  %s1472_s2 = inlined_call_operand.vmem [shape: bf16[128,128], index: 2, kind: output, shape index: {0}]   ;;  %s1473_s4 = inlined_call_operand.vmem [shape: f32[1,128,1], index: 4, kind: output, shape index: {2}]  }
   0x1   :  { %v887_v0 = vld [vmem:[%s1469_s1 + $0x40] sm:$0xff]   ;;  %v889_v2 = vld [vmem:[%s1469_s1 + $0x48] sm:$0xff]   ;;  %v891_v4 = vld [vmem:[%s1469_s1 + $0x50] sm:$0xff]   ;;  %449 = vst.msk [vmem:[%s1471_s3] sm:$0xff] %vm448_vm0, %v927_v32 }
   0x2   :  { %v888_v1 = vld [vmem:[%s1469_s1] sm:$0xff]   ;;  %806 = vmatprep.subr.bf16.mxu0 %v887_v0  ;;  %870 = vmatprep.subr.bf16.mxu1 %v887_v0  ;;  %v890_v3 = vld [vmem:[%s1469_s1 + $0x8] sm:$0xff]   ;;  %v892_v5 = vld [vmem:[%s1469_s1 + $0x10] sm:$0xff]   ;;  %450 = vst.msk [vmem:[%s1471_s3 + $0x8] sm:$0xff] %vm448_vm0, %v927_v32 }
   0x3   :  { %807 = vmatpush3.bf16.msra.mxu0 %v888_v1  ;;  %878 = vmatpush3.bf16.msra.mxu1 %v888_v1  ;;  %v893_v6 = vld [vmem:[%s1469_s1 + $0x58] sm:$0xff]   ;;  %v895_v8 = vld [vmem:[%s1469_s1 + $0x60] sm:$0xff]   ;;  %v897_v10 = vld [vmem:[%s1469_s1 + $0x68] sm:$0xff]   ;;  %451 = vst.msk [vmem:[%s1471_s3 + $0x10] sm:$0xff] %vm448_vm0, %v927_v32 }
   0x4   :  { %808 = vmatprep.subr.bf16.mxu0 %v889_v2  ;;  %871 = vmatprep.subr.bf16.mxu1 %v889_v2  ;;  %v894_v7 = vld [vmem:[%s1469_s1 + $0x18] sm:$0xff]   ;;  %v896_v9 = vld [vmem:[%s1469_s1 + $0x20] sm:$0xff]   ;;  %v898_v13 = vld [vmem:[%s1469_s1 + $0x28] sm:$0xff]   ;;  %452 = vst.msk [vmem:[%s1471_s3 + $0x18] sm:$0xff] %vm448_vm0, %v927_v32 }
   0x5   :  { %v905_v11 = vld [vmem:[%s1470_s0 + $0x4] ss:$8 sps:$4 sm:$0xff]   ;;  %v899_v14 = vld [vmem:[%s1469_s1 + $0x70] sm:$0xff]   ;;  %v901_v16 = vld [vmem:[%s1469_s1 + $0x78] sm:$0xff]   ;;  %453 = vst.msk [vmem:[%s1471_s3 + $0x20] sm:$0xff] %vm448_vm0, %v927_v32 }
   0x6   :  { %v908_v12 = vld [vmem:[%s1470_s0 + $0x44] ss:$8 sps:$4 sm:$0xff]   ;;  %299 = vmatprep.mubr.bf16.mxu0 %v905_v11  ;;  %v900_v15 = vld [vmem:[%s1469_s1 + $0x30] sm:$0xff]   ;;  %v902_v17 = vld [vmem:[%s1469_s1 + $0x38] sm:$0xff]   ;;  %454 = vst.msk [vmem:[%s1471_s3 + $0x28] sm:$0xff] %vm448_vm0, %v927_v32 }
   0x7   :  { %809 = vmatpush3.bf16.msra.mxu0 %v890_v3  ;;  %879 = vmatpush3.bf16.msra.mxu1 %v890_v3  ;;  %v903_v18 = vld [vmem:[%s1470_s0] ss:$8 sps:$4 sm:$0xff]   ;;  %v909_v20 = vld [vmem:[%s1470_s0 + $0x14] ss:$8 sps:$4 sm:$0xff]   ;;  %v911_v22 = vld [vmem:[%s1470_s0 + $0x10] ss:$8 sps:$4 sm:$0xff]  }
   0x8   :  { %810 = vmatprep.subr.bf16.mxu0 %v891_v4  ;;  %872 = vmatprep.subr.bf16.mxu1 %v891_v4  ;;  %v906_v19 = vld [vmem:[%s1470_s0 + $0x40] ss:$8 sps:$4 sm:$0xff]   ;;  %v912_v21 = vld [vmem:[%s1470_s0 + $0x54] ss:$8 sps:$4 sm:$0xff]   ;;  %v914_v23 = vld [vmem:[%s1470_s0 + $0x50] ss:$8 sps:$4 sm:$0xff]  }
   0x9   :  { %331 = vmatprep.mubr.bf16.mxu1 %v908_v12  ;;  %v915_v24 = vld [vmem:[%s1470_s0 + $0x24] ss:$8 sps:$4 sm:$0xff]   ;;  %v917_v26 = vld [vmem:[%s1470_s0 + $0x20] ss:$8 sps:$4 sm:$0xff]   ;;  %v921_v28 = vld [vmem:[%s1470_s0 + $0x34] ss:$8 sps:$4 sm:$0xff]  }
   0xa   :  { %v918_v25 = vld [vmem:[%s1470_s0 + $0x64] ss:$8 sps:$4 sm:$0xff]   ;;  %v920_v27 = vld [vmem:[%s1470_s0 + $0x60] ss:$8 sps:$4 sm:$0xff]   ;;  %v924_v29 = vld [vmem:[%s1470_s0 + $0x74] ss:$8 sps:$4 sm:$0xff]  }
   0xb   :  { %811 = vmatpush3.bf16.msra.mxu0 %v892_v5  ;;  %880 = vmatpush3.bf16.msra.mxu1 %v892_v5  ;;  %v923_v30 = vld [vmem:[%s1470_s0 + $0x30] ss:$8 sps:$4 sm:$0xff]   ;;  %455 = vst.msk [vmem:[%s1471_s3 + $0x30] sm:$0xff] %vm448_vm0, %v927_v32  ;;  %456 = vst.msk [vmem:[%s1471_s3 + $0x38] sm:$0xff] %vm448_vm0, %v927_v32 }
   0xc   :  { %812 = vmatprep.subr.bf16.mxu0 %v893_v6  ;;  %873 = vmatprep.subr.bf16.mxu1 %v893_v6  ;;  %v926_v31 = vld [vmem:[%s1470_s0 + $0x70] ss:$8 sps:$4 sm:$0xff]   ;;  %457 = vst.msk [vmem:[%s1471_s3 + $0x40] sm:$0xff] %vm448_vm0, %v927_v32  ;;  %458 = vst.msk [vmem:[%s1471_s3 + $0x48] sm:$0xff] %vm448_vm0, %v927_v32 }
   0xd   :  { %459 = vst.msk [vmem:[%s1471_s3 + $0x50] sm:$0xff] %vm448_vm0, %v927_v32  ;;  %460 = vst.msk [vmem:[%s1471_s3 + $0x58] sm:$0xff] %vm448_vm0, %v927_v32 }
   0xe   :  { %461 = vst.msk [vmem:[%s1471_s3 + $0x60] sm:$0xff] %vm448_vm0, %v927_v32  ;;  %462 = vst.msk [vmem:[%s1471_s3 + $0x68] sm:$0xff] %vm448_vm0, %v927_v32 }
   0xf   :  { %813 = vmatpush3.bf16.msra.mxu0 %v894_v7  ;;  %881 = vmatpush3.bf16.msra.mxu1 %v894_v7  ;;  %463 = vst.msk [vmem:[%s1471_s3 + $0x70] sm:$0xff] %vm448_vm0, %v927_v32  ;;  %464 = vst.msk [vmem:[%s1471_s3 + $0x78] sm:$0xff] %vm448_vm0, %v927_v32 }
  0x10   :  { %814 = vmatprep.subr.bf16.mxu0 %v895_v8  ;;  %874 = vmatprep.subr.bf16.mxu1 %v895_v8  ;;  %466 = vst.msk [vmem:[%s1473_s4 + $0x8] sm:$0xff] %vm448_vm0, %v927_v32  ;;  %465 = vst.msk [vmem:[%s1473_s4] sm:$0xff] %vm448_vm0, %v927_v32 }
  0x11   :  { %467 = vst.msk [vmem:[%s1473_s4 + $0x10] sm:$0xff] %vm448_vm0, %v927_v32  ;;  %468 = vst.msk [vmem:[%s1473_s4 + $0x18] sm:$0xff] %vm448_vm0, %v927_v32 }
  0x12   :  { %469 = vst.msk [vmem:[%s1473_s4 + $0x20] sm:$0xff] %vm448_vm0, %v927_v32  ;;  %470 = vst.msk [vmem:[%s1473_s4 + $0x28] sm:$0xff] %vm448_vm0, %v927_v32 }
  0x13   :  { %815 = vmatpush3.bf16.msra.mxu0 %v896_v9  ;;  %882 = vmatpush3.bf16.msra.mxu1 %v896_v9  ;;  %471 = vst.msk [vmem:[%s1473_s4 + $0x30] sm:$0xff] %vm448_vm0, %v927_v32  ;;  %472 = vst.msk [vmem:[%s1473_s4 + $0x38] sm:$0xff] %vm448_vm0, %v927_v32 }
  0x14   :  { %816 = vmatprep.subr.bf16.mxu0 %v897_v10  ;;  %875 = vmatprep.subr.bf16.mxu1 %v897_v10  ;;  %473 = vst.msk [vmem:[%s1473_s4 + $0x40] sm:$0xff] %vm448_vm0, %v927_v32  ;;  %474 = vst.msk [vmem:[%s1473_s4 + $0x48] sm:$0xff] %vm448_vm0, %v927_v32 }
  0x15   :  { %475 = vst.msk [vmem:[%s1473_s4 + $0x50] sm:$0xff] %vm448_vm0, %v927_v32  ;;  %476 = vst.msk [vmem:[%s1473_s4 + $0x58] sm:$0xff] %vm448_vm0, %v927_v32 }
  0x16   :  { %477 = vst.msk [vmem:[%s1473_s4 + $0x60] sm:$0xff] %vm448_vm0, %v927_v32  ;;  %478 = vst.msk [vmem:[%s1473_s4 + $0x68] sm:$0xff] %vm448_vm0, %v927_v32 }
  0x17   :  { %817 = vmatpush3.bf16.msra.mxu0 %v898_v13  ;;  %883 = vmatpush3.bf16.msra.mxu1 %v898_v13  ;;  %479 = vst.msk [vmem:[%s1473_s4 + $0x70] sm:$0xff] %vm448_vm0, %v927_v32  ;;  %480 = vst.msk [vmem:[%s1473_s4 + $0x78] sm:$0xff] %vm448_vm0, %v927_v32 }
  0x18   :  { %818 = vmatprep.subr.bf16.mxu0 %v899_v14  ;;  %876 = vmatprep.subr.bf16.mxu1 %v899_v14 }
  0x1b   :  { %819 = vmatpush3.bf16.msra.mxu0 %v900_v15  ;;  %884 = vmatpush3.bf16.msra.mxu1 %v900_v15 }
  0x1c   :  { %820 = vmatprep.subr.bf16.mxu0 %v901_v16  ;;  %877 = vmatprep.subr.bf16.mxu1 %v901_v16 }
  0x1f   :  { %821 = vmatpush3.bf16.msra.mxu0 %v902_v17  ;;  %885 = vmatpush3.bf16.msra.mxu1 %v902_v17 }
  0x22   :  { %300 = vmatmul.mubr.bf16.vlgmr.msra.gmra.mrb[0].mxu0 %v903_v18  ;;  %332 = vmatmul.mubr.bf16.vlgmr.msra.gmra.mrb[0].mxu1 %v906_v19 }
  0x23   :  { %307 = vmatprep.mubr.bf16.mxu0 %v909_v20  ;;  %339 = vmatprep.mubr.bf16.mxu1 %v912_v21 }
  0x2a   :  { %308 = vmatmul.mubr.bf16.gmra.mrb[4].mxu0 %v911_v22  ;;  %340 = vmatmul.mubr.bf16.gmra.mrb[4].mxu1 %v914_v23 }
  0x2b   :  { %315 = vmatprep.mubr.bf16.mxu0 %v915_v24  ;;  %347 = vmatprep.mubr.bf16.mxu1 %v918_v25 }
  0x32   :  { %316 = vmatmul.mubr.bf16.gmra.mrb[8].mxu0 %v917_v26  ;;  %348 = vmatmul.mubr.bf16.gmra.mrb[8].mxu1 %v920_v27 }
  0x33   :  { %323 = vmatprep.mubr.bf16.mxu0 %v921_v28  ;;  %355 = vmatprep.mubr.bf16.mxu1 %v924_v29 }
  0x3a   :  { %324 = vmatmul.mubr.bf16.gmra.mrb[12].mxu0 %v923_v30  ;;  %356 = vmatmul.mubr.bf16.gmra.mrb[12].mxu1 %v926_v31 }
  0xf5   :  { %v822_v33 = vpop.f32.mrb[0].mxu0  ;;  %v846_v34 = vpop.f32.mrb[0].mxu1 }
  0xf6   :  { %v823_v35 = vpop.f32.mrb[1].mxu0  ;;  %v847_v36 = vpop.f32.mrb[1].mxu1 }
  0xf7   :  { %v824_v37 = vadd.f32 %v823_v35, %v822_v33  ;;  %v848_v38 = vadd.f32 %v847_v36, %v846_v34  ;;  %v825_v39 = vpop.f32.mrb[2].mxu0  ;;  %v849_v40 = vpop.f32.mrb[2].mxu1 }
  0xf8   :  { %v826_v41 = vpop.f32.mrb[3].mxu0  ;;  %v850_v42 = vpop.f32.mrb[3].mxu1 }
  0xf9   :  { %v827_v43 = vadd.f32 %v826_v41, %v825_v39  ;;  %v851_v44 = vadd.f32 %v850_v42, %v849_v40  ;;  %497 = vadd.xlane.f32.xlu0 %v824_v37  ;;  %v578_v62 = vmul.f32 %v824_v37, %v824_v37  ;;  %v586_v4 = vmul.f32 %v848_v38, %v848_v38  ;;  %v481_v41 = vld [vmem:[%s1471_s3] sm:$0xff] }
  0xfb   :  { %v762_v45 = vpack.c.bf16 %v827_v43, %v824_v37  ;;  %v782_v46 = vpack.c.bf16 %v851_v44, %v848_v38  ;;  %515 = vadd.xlane.f32.xlu1 %v851_v44  ;;  %v579_v47 = vmul.f32 %v827_v43, %v827_v43  ;;  %v587_v59 = vmul.f32 %v851_v44, %v851_v44 }
  0xfd   :  { %763 = vst [vmem:[%s1472_s2] sm:$0xff] %v762_v45   ;;  %802 = vst [vmem:[%s1472_s2 + $0x20] sm:$0xff] %v782_v46   ;;  %513 = vadd.xlane.f32.xlu0 %v848_v38  ;;  %v828_v48 = vpop.f32.mrb[4].mxu0  ;;  %v852_v49 = vpop.f32.mrb[4].mxu1  ;;  %v489_v46 = vld [vmem:[%s1471_s3 + $0x40] sm:$0xff] }
  0xfe   :  { %v829_v50 = vpop.f32.mrb[5].mxu0  ;;  %v853_v51 = vpop.f32.mrb[5].mxu1 }
  0xff   :  { %596 = vadd.xlane.f32.xlu1 %v579_v47  ;;  %v830_v52 = vadd.f32 %v829_v50, %v828_v48  ;;  %v831_v53 = vpop.f32.mrb[6].mxu0  ;;  %v1135_v54 = vadd.f32 %v853_v51, %v852_v49  ;;  %v855_v55 = vpop.f32.mrb[6].mxu1  ;;  %v563_v49 = vld [vmem:[%s1473_s4 + $0x8] sm:$0xff] }
 0x100   :  { %v832_v56 = vpop.f32.mrb[7].mxu0  ;;  %v856_v57 = vpop.f32.mrb[7].mxu1 }
 0x101   :  { %499 = vadd.xlane.f32.xlu0 %v827_v43  ;;  %v833_v58 = vadd.f32 %v832_v56, %v831_v53  ;;  %v1137_v60 = vadd.f32 %v856_v57, %v855_v55  ;;  %v580_v19 = vmul.f32 %v830_v52, %v830_v52  ;;  %v588_v29 = vmul.f32 %v1135_v54, %v1135_v54  ;;  %v490_v43 = vld [vmem:[%s1471_s3 + $0x48] sm:$0xff] }
 0x102   :  { %v571_v55 = vld [vmem:[%s1473_s4 + $0x48] sm:$0xff] }
 0x103   :  { %v767_v61 = vpack.c.bf16 %v833_v58, %v830_v52  ;;  %612 = vadd.xlane.f32.xlu1 %v587_v59  ;;  %v787_v63 = vpack.c.bf16 %v1137_v60, %v1135_v54  ;;  %v581_v26 = vmul.f32 %v833_v58, %v833_v58  ;;  %v589_v32 = vmul.f32 %v1137_v60, %v1137_v60 }
 0x105   :  { %799 = vst [vmem:[%s1472_s2 + $0x8] sm:$0xff] %v767_v61   ;;  %594 = vadd.xlane.f32.xlu0 %v578_v62  ;;  %803 = vst [vmem:[%s1472_s2 + $0x28] sm:$0xff] %v787_v63   ;;  %v834_v0 = vpop.f32.mrb[8].mxu0  ;;  %v858_v1 = vpop.f32.mrb[8].mxu1  ;;  %v483_v61 = vld [vmem:[%s1471_s3 + $0x10] sm:$0xff] }
 0x106   :  { %v835_v2 = vpop.f32.mrb[9].mxu0  ;;  %v859_v3 = vpop.f32.mrb[9].mxu1 }
 0x107   :  { %501 = vadd.xlane.f32.xlu1 %v830_v52  ;;  %v836_v5 = vadd.f32 %v835_v2, %v834_v0  ;;  %v837_v6 = vpop.f32.mrb[10].mxu0  ;;  %v860_v7 = vadd.f32 %v859_v3, %v858_v1  ;;  %v861_v8 = vpop.f32.mrb[10].mxu1  ;;  %v482_v52 = vld [vmem:[%s1471_s3 + $0x8] sm:$0xff]  ;;  %v570_v0 = vld [vmem:[%s1473_s4 + $0x40] sm:$0xff]  ;;  %v484_v3 = vld [vmem:[%s1471_s3 + $0x18] sm:$0xff] }
 0x108   :  { %v838_v9 = vpop.f32.mrb[11].mxu0  ;;  %v862_v10 = vpop.f32.mrb[11].mxu1 }
 0x109   :  { %610 = vadd.xlane.f32.xlu0 %v586_v4  ;;  %v839_v11 = vadd.f32 %v838_v9, %v837_v6  ;;  %v863_v12 = vadd.f32 %v862_v10, %v861_v8  ;;  %v582_v33 = vmul.f32 %v836_v5, %v836_v5  ;;  %v590_v35 = vmul.f32 %v860_v7, %v860_v7  ;;  %v491_v6 = vld [vmem:[%s1471_s3 + $0x50] sm:$0xff]  ;;  %v492_v9 = vld [vmem:[%s1471_s3 + $0x58] sm:$0xff] }
 0x10b   :  { %503 = vadd.xlane.f32.xlu1 %v833_v58  ;;  %v772_v13 = vpack.c.bf16 %v839_v11, %v836_v5  ;;  %v792_v14 = vpack.c.bf16 %v863_v12, %v860_v7  ;;  %v583_v34 = vmul.f32 %v839_v11, %v839_v11  ;;  %v591_v36 = vmul.f32 %v863_v12, %v863_v12  ;;  %v562_v58 = vld [vmem:[%s1473_s4] sm:$0xff] }
 0x10d   :  { %517 = vadd.xlane.f32.xlu0 %v1135_v54  ;;  %800 = vst [vmem:[%s1472_s2 + $0x10] sm:$0xff] %v772_v13   ;;  %804 = vst [vmem:[%s1472_s2 + $0x30] sm:$0xff] %v792_v14   ;;  %v840_v15 = vpop.f32.mrb[12].mxu0  ;;  %v864_v16 = vpop.f32.mrb[12].mxu1 }
 0x10e   :  { %v841_v17 = vpop.f32.mrb[13].mxu0  ;;  %v865_v18 = vpop.f32.mrb[13].mxu1 }
 0x10f   :  { %519 = vadd.xlane.f32.xlu1 %v1137_v60  ;;  %v842_v20 = vadd.f32 %v841_v17, %v840_v15  ;;  %v843_v21 = vpop.f32.mrb[14].mxu0  ;;  %v866_v22 = vadd.f32 %v865_v18, %v864_v16  ;;  %v867_v23 = vpop.f32.mrb[14].mxu1  ;;  %v565_v15 = vld [vmem:[%s1473_s4 + $0x18] sm:$0xff]  ;;  %v572_v18 = vld [vmem:[%s1473_s4 + $0x50] sm:$0xff] }
 0x110   :  { %v844_v24 = vpop.f32.mrb[15].mxu0  ;;  %v868_v25 = vpop.f32.mrb[15].mxu1 }
 0x111   :  { %598 = vadd.xlane.f32.xlu0 %v580_v19  ;;  %v845_v27 = vadd.f32 %v844_v24, %v843_v21  ;;  %v869_v28 = vadd.f32 %v868_v25, %v867_v23  ;;  %v584_v37 = vmul.f32 %v842_v20, %v842_v20  ;;  %v592_v39 = vmul.f32 %v866_v22, %v866_v22  ;;  %v573_v21 = vld [vmem:[%s1473_s4 + $0x58] sm:$0xff]  ;;  %v485_v24 = vld [vmem:[%s1471_s3 + $0x20] sm:$0xff] }
 0x113   :  { %600 = vadd.xlane.f32.xlu1 %v581_v26  ;;  %v777_v30 = vpack.c.bf16 %v845_v27, %v842_v20  ;;  %v797_v31 = vpack.c.bf16 %v869_v28, %v866_v22  ;;  %v585_v38 = vmul.f32 %v845_v27, %v845_v27  ;;  %v593_v40 = vmul.f32 %v869_v28, %v869_v28 }
 0x115   :  { %614 = vadd.xlane.f32.xlu0 %v588_v29  ;;  %801 = vst [vmem:[%s1472_s2 + $0x18] sm:$0xff] %v777_v30   ;;  %805 = vst [vmem:[%s1472_s2 + $0x38] sm:$0xff] %v797_v31   ;;  %v493_v30 = vld [vmem:[%s1471_s3 + $0x60] sm:$0xff] }
 0x117   :  { %616 = vadd.xlane.f32.xlu1 %v589_v32 }
 0x119   :  { %505 = vadd.xlane.f32.xlu0 %v836_v5 }
 0x11b   :  { %507 = vadd.xlane.f32.xlu1 %v839_v11 }
 0x11d   :  { %521 = vadd.xlane.f32.xlu0 %v860_v7 }
 0x11f   :  { %523 = vadd.xlane.f32.xlu1 %v863_v12  ;;  %v564_v12 = vld [vmem:[%s1473_s4 + $0x10] sm:$0xff] }
 0x121   :  { %602 = vadd.xlane.f32.xlu0 %v582_v33  ;;  %v494_v33 = vld [vmem:[%s1471_s3 + $0x68] sm:$0xff] }
 0x123   :  { %604 = vadd.xlane.f32.xlu1 %v583_v34 }
 0x125   :  { %618 = vadd.xlane.f32.xlu0 %v590_v35 }
 0x127   :  { %620 = vadd.xlane.f32.xlu1 %v591_v36  ;;  %v566_v36 = vld [vmem:[%s1473_s4 + $0x20] sm:$0xff] }
 0x129   :  { %509 = vadd.xlane.f32.xlu0 %v842_v20 }
 0x12b   :  { %511 = vadd.xlane.f32.xlu1 %v845_v27  ;;  %v486_v27 = vld [vmem:[%s1471_s3 + $0x28] sm:$0xff] }
 0x12d   :  { %525 = vadd.xlane.f32.xlu0 %v866_v22 }
 0x12f   :  { %527 = vadd.xlane.f32.xlu1 %v869_v28 }
 0x131   :  { %606 = vadd.xlane.f32.xlu0 %v584_v37 }
 0x133   :  { %608 = vadd.xlane.f32.xlu1 %v585_v38 }
 0x135   :  { %622 = vadd.xlane.f32.xlu0 %v592_v39  ;;  %v567_v39 = vld [vmem:[%s1473_s4 + $0x28] sm:$0xff] }
 0x137   :  { %624 = vadd.xlane.f32.xlu1 %v593_v40 }
 0x186   :  { %v498_v42 = vpop.xlane.xlu0 %497 }
 0x187   :  { %v529_v44 = vadd.f32 %v498_v42, %v481_v41  ;;  %v574_v42 = vld [vmem:[%s1473_s4 + $0x60] sm:$0xff] }
 0x188   :  { %v516_v45 = vpop.xlane.xlu1 %515 }
 0x189   :  { %546 = vst.msk [vmem:[%s1471_s3] sm:$0xff] %vm448_vm0, %v529_v44  ;;  %v538_v47 = vadd.f32 %v516_v45, %v490_v43  ;;  %v575_v45 = vld [vmem:[%s1473_s4 + $0x68] sm:$0xff] }
 0x18a   :  { %v514_v48 = vpop.xlane.xlu0 %513 }
 0x18b   :  { %555 = vst.msk [vmem:[%s1471_s3 + $0x48] sm:$0xff] %vm448_vm0, %v538_v47  ;;  %v537_v50 = vadd.f32 %v514_v48, %v489_v46  ;;  %v487_v48 = vld [vmem:[%s1471_s3 + $0x30] sm:$0xff] }
 0x18c   :  { %v597_v51 = vpop.xlane.xlu1 %596 }
 0x18d   :  { %554 = vst.msk [vmem:[%s1471_s3 + $0x40] sm:$0xff] %vm448_vm0, %v537_v50  ;;  %v627_v53 = vadd.f32 %v597_v51, %v563_v49  ;;  %v488_v51 = vld [vmem:[%s1471_s3 + $0x38] sm:$0xff] }
 0x18e   :  { %v500_v54 = vpop.xlane.xlu0 %499 }
 0x18f   :  { %643 = vst.msk [vmem:[%s1473_s4 + $0x8] sm:$0xff] %vm448_vm0, %v627_v53  ;;  %v530_v56 = vadd.f32 %v500_v54, %v482_v52  ;;  %v495_v54 = vld [vmem:[%s1471_s3 + $0x70] sm:$0xff] }
 0x190   :  { %v613_v57 = vpop.xlane.xlu1 %612 }
 0x191   :  { %547 = vst.msk [vmem:[%s1471_s3 + $0x8] sm:$0xff] %vm448_vm0, %v530_v56  ;;  %v635_v59 = vadd.f32 %v613_v57, %v571_v55  ;;  %v496_v57 = vld [vmem:[%s1471_s3 + $0x78] sm:$0xff] }
 0x192   :  { %v595_v60 = vpop.xlane.xlu0 %594 }
 0x193   :  { %651 = vst.msk [vmem:[%s1473_s4 + $0x48] sm:$0xff] %vm448_vm0, %v635_v59  ;;  %v626_v62 = vadd.f32 %v595_v60, %v562_v58  ;;  %v568_v60 = vld [vmem:[%s1473_s4 + $0x30] sm:$0xff] }
 0x194   :  { %v502_v63 = vpop.xlane.xlu1 %501 }
 0x195   :  { %642 = vst.msk [vmem:[%s1473_s4] sm:$0xff] %vm448_vm0, %v626_v62  ;;  %v531_v1 = vadd.f32 %v502_v63, %v483_v61  ;;  %v569_v63 = vld [vmem:[%s1473_s4 + $0x38] sm:$0xff] }
 0x196   :  { %v611_v2 = vpop.xlane.xlu0 %610 }
 0x197   :  { %548 = vst.msk [vmem:[%s1471_s3 + $0x10] sm:$0xff] %vm448_vm0, %v531_v1  ;;  %v634_v4 = vadd.f32 %v611_v2, %v570_v0  ;;  %v576_v2 = vld [vmem:[%s1473_s4 + $0x70] sm:$0xff] }
 0x198   :  { %v504_v5 = vpop.xlane.xlu1 %503 }
 0x199   :  { %650 = vst.msk [vmem:[%s1473_s4 + $0x40] sm:$0xff] %vm448_vm0, %v634_v4  ;;  %v532_v7 = vadd.f32 %v504_v5, %v484_v3  ;;  %v577_v5 = vld [vmem:[%s1473_s4 + $0x78] sm:$0xff] }
 0x19a   :  { %v518_v8 = vpop.xlane.xlu0 %517 }
 0x19b   :  { %549 = vst.msk [vmem:[%s1471_s3 + $0x18] sm:$0xff] %vm448_vm0, %v532_v7  ;;  %v539_v10 = vadd.f32 %v518_v8, %v491_v6 }
 0x19c   :  { %v520_v11 = vpop.xlane.xlu1 %519 }
 0x19d   :  { %556 = vst.msk [vmem:[%s1471_s3 + $0x50] sm:$0xff] %vm448_vm0, %v539_v10  ;;  %v540_v13 = vadd.f32 %v520_v11, %v492_v9 }
 0x19e   :  { %v599_v14 = vpop.xlane.xlu0 %598 }
 0x19f   :  { %557 = vst.msk [vmem:[%s1471_s3 + $0x58] sm:$0xff] %vm448_vm0, %v540_v13  ;;  %v628_v16 = vadd.f32 %v599_v14, %v564_v12 }
 0x1a0   :  { %v601_v17 = vpop.xlane.xlu1 %600 }
 0x1a1   :  { %644 = vst.msk [vmem:[%s1473_s4 + $0x10] sm:$0xff] %vm448_vm0, %v628_v16  ;;  %v629_v19 = vadd.f32 %v601_v17, %v565_v15 }
 0x1a2   :  { %v615_v20 = vpop.xlane.xlu0 %614 }
 0x1a3   :  { %645 = vst.msk [vmem:[%s1473_s4 + $0x18] sm:$0xff] %vm448_vm0, %v629_v19  ;;  %v636_v22 = vadd.f32 %v615_v20, %v572_v18 }
 0x1a4   :  { %v617_v23 = vpop.xlane.xlu1 %616 }
 0x1a5   :  { %652 = vst.msk [vmem:[%s1473_s4 + $0x50] sm:$0xff] %vm448_vm0, %v636_v22  ;;  %v637_v25 = vadd.f32 %v617_v23, %v573_v21 }
 0x1a6   :  { %v506_v26 = vpop.xlane.xlu0 %505 }
 0x1a7   :  { %653 = vst.msk [vmem:[%s1473_s4 + $0x58] sm:$0xff] %vm448_vm0, %v637_v25  ;;  %v533_v28 = vadd.f32 %v506_v26, %v485_v24 }
 0x1a8   :  { %v508_v29 = vpop.xlane.xlu1 %507 }
 0x1a9   :  { %550 = vst.msk [vmem:[%s1471_s3 + $0x20] sm:$0xff] %vm448_vm0, %v533_v28  ;;  %v534_v31 = vadd.f32 %v508_v29, %v486_v27 }
 0x1aa   :  { %v522_v32 = vpop.xlane.xlu0 %521 }
 0x1ab   :  { %551 = vst.msk [vmem:[%s1471_s3 + $0x28] sm:$0xff] %vm448_vm0, %v534_v31  ;;  %v541_v34 = vadd.f32 %v522_v32, %v493_v30 }
 0x1ac   :  { %v524_v35 = vpop.xlane.xlu1 %523 }
 0x1ad   :  { %558 = vst.msk [vmem:[%s1471_s3 + $0x60] sm:$0xff] %vm448_vm0, %v541_v34  ;;  %v542_v37 = vadd.f32 %v524_v35, %v494_v33 }
 0x1ae   :  { %v603_v38 = vpop.xlane.xlu0 %602 }
 0x1af   :  { %559 = vst.msk [vmem:[%s1471_s3 + $0x68] sm:$0xff] %vm448_vm0, %v542_v37  ;;  %v630_v40 = vadd.f32 %v603_v38, %v566_v36 }
 0x1b0   :  { %v605_v41 = vpop.xlane.xlu1 %604 }
 0x1b1   :  { %646 = vst.msk [vmem:[%s1473_s4 + $0x20] sm:$0xff] %vm448_vm0, %v630_v40  ;;  %v631_v43 = vadd.f32 %v605_v41, %v567_v39 }
 0x1b2   :  { %v619_v44 = vpop.xlane.xlu0 %618 }
 0x1b3   :  { %647 = vst.msk [vmem:[%s1473_s4 + $0x28] sm:$0xff] %vm448_vm0, %v631_v43  ;;  %v638_v46 = vadd.f32 %v619_v44, %v574_v42 }
 0x1b4   :  { %v621_v47 = vpop.xlane.xlu1 %620 }
 0x1b5   :  { %654 = vst.msk [vmem:[%s1473_s4 + $0x60] sm:$0xff] %vm448_vm0, %v638_v46  ;;  %v639_v49 = vadd.f32 %v621_v47, %v575_v45 }
 0x1b6   :  { %v510_v50 = vpop.xlane.xlu0 %509 }
 0x1b7   :  { %655 = vst.msk [vmem:[%s1473_s4 + $0x68] sm:$0xff] %vm448_vm0, %v639_v49  ;;  %v535_v52 = vadd.f32 %v510_v50, %v487_v48 }
 0x1b8   :  { %v512_v53 = vpop.xlane.xlu1 %511 }
 0x1b9   :  { %552 = vst.msk [vmem:[%s1471_s3 + $0x30] sm:$0xff] %vm448_vm0, %v535_v52  ;;  %v536_v55 = vadd.f32 %v512_v53, %v488_v51 }
 0x1ba   :  { %v526_v56 = vpop.xlane.xlu0 %525 }
 0x1bb   :  { %553 = vst.msk [vmem:[%s1471_s3 + $0x38] sm:$0xff] %vm448_vm0, %v536_v55  ;;  %v543_v58 = vadd.f32 %v526_v56, %v495_v54 }
 0x1bc   :  { %v528_v59 = vpop.xlane.xlu1 %527 }
 0x1bd   :  { %560 = vst.msk [vmem:[%s1471_s3 + $0x70] sm:$0xff] %vm448_vm0, %v543_v58  ;;  %v544_v61 = vadd.f32 %v528_v59, %v496_v57 }
 0x1be   :  { %v607_v62 = vpop.xlane.xlu0 %606 }
 0x1bf   :  { %561 = vst.msk [vmem:[%s1471_s3 + $0x78] sm:$0xff] %vm448_vm0, %v544_v61  ;;  %v632_v0 = vadd.f32 %v607_v62, %v568_v60 }
 0x1c0   :  { %v609_v1 = vpop.xlane.xlu1 %608 }
 0x1c1   :  { %648 = vst.msk [vmem:[%s1473_s4 + $0x30] sm:$0xff] %vm448_vm0, %v632_v0  ;;  %v633_v3 = vadd.f32 %v609_v1, %v569_v63 }
 0x1c2   :  { %v623_v4 = vpop.xlane.xlu0 %622 }
 0x1c3   :  { %649 = vst.msk [vmem:[%s1473_s4 + $0x38] sm:$0xff] %vm448_vm0, %v633_v3  ;;  %v640_v6 = vadd.f32 %v623_v4, %v576_v2 }
 0x1c4   :  { %v625_v7 = vpop.xlane.xlu1 %624 }
 0x1c5   :  { %656 = vst.msk [vmem:[%s1473_s4 + $0x70] sm:$0xff] %vm448_vm0, %v640_v6  ;;  %v641_v8 = vadd.f32 %v625_v7, %v577_v5 }
 0x1c7   :  { %657 = vst.msk [vmem:[%s1473_s4 + $0x78] sm:$0xff] %vm448_vm0, %v641_v8 }

// kernel: generator_forward.7
= control target key start
LH: loop header
LB: loop body
LE: loop exit
PB: predicated region body
PF: predicated region fallthrough
CT: control target
= control target key end

     0   :  { %s1100_s15 = smov 0   ;;  %s1102_s16 = smov 0   ;;  %s1329_s0 = inlined_call_operand.vmem [shape: bf16[64,128], index: 0, kind: input, shape index: {}]   ;;  %s1330_s1 = inlined_call_operand.vmem [shape: bf16[128,256], index: 1, kind: input, shape index: {}]   ;;  %s1331_s2 = inlined_call_operand.vmem [shape: bf16[64,256], index: 2, kind: output, shape index: {0}]   ;;  %s1332_s3 = inlined_call_operand.vmem [shape: f32[2,64,1], index: 3, kind: output, shape index: {1}]   ;;  %s1333_s4 = inlined_call_operand.vmem [shape: f32[2,64,1], index: 4, kind: output, shape index: {2}]  }
   0x1   :  { %s1104_s17 = smov 0   ;;  %s1106_s18 = smov 0  }
   0x2   :  { %s1108_s19 = smov 0  }
   0x3 LB: > { %s27_s20 = sadd.s32 1, %s1068_s18  ;;  %s859_s21 = sadd.s32 4294967295, %s1072_s19   ;;  %s1072_s19 = sphi %s1108_s19, %s15_s19   ;;  %s1068_s18 = sphi %s1106_s18, %s1338_s18   ;;  %s1064_s17 = sphi %s1104_s17, %s1337_s17   ;;  %s1060_s16 = sphi %s1102_s16, %s1336_s16   ;;  %s1056_s15 = sphi %s1100_s15, %s1335_s15  }
   0x4   : > { %p29_p0 = scmp.ge.s32.totalorder %s27_s20, 2  ;;  %p64_p1 = scmp.ne.s32.totalorder %s1060_s16, %s1056_s15 }
   0x5   : > { %p65_p2 = scmp.eq.s32.totalorder %s1072_s19, 0  ;;  %p96_p4 = scmp.eq.s32.totalorder %s859_s21, 1 }
   0x6   : > { %s1340_s20 = smov (%p29_p0, %s27_s20), 0  ;;  %s57_s23 = sadd.s32 1, %s1060_s16 }
   0x7   : > { %p66_p3 = por %p65_p2, %p64_p1  ;;  %s54_s22 = ssub.s32 %s1068_s18, %s1340_s20 }
   0x8   : > { %p55_p5 = scmp.eq.s32.totalorder %s54_s22, 0  ;;  %p1135_p6 = por %p96_p4, %p64_p1 }
   0x9   : > { %p862_p7 = scmp.ge.s32.totalorder %s1072_s19, 2 }
   0xa   : > { %s1140_s25 = scalar_select %p55_p5, %s1060_s16, %s57_s23  }
   0xb   : > { %173 = sbr.rel (%p862_p7) target bundleno = 32 (0x20), region = 20 }
  0x12   : > { %176 = sbr.rel (!%p66_p3) target bundleno = 32 (0x20), region = 24  ;;  %s178_s26 = sand.u32 (%p66_p3), 1, %s1060_s16  }
  0x13   : > { %s864_s27 = sshll.u32 (%p66_p3), %s1068_s18, 2  ;;  %s863_s28 = sshll.u32 (%p66_p3), %s178_s26, 6 }
  0x14   : > { %s1148_s5 = scalar_lea.vmem (%p66_p3), %s1330_s1, %s864_s27  ;;  %s180_s6 = scalar_lea.vmem (%p66_p3), [#allocation2], %s863_s28 }
  0x15   : > { %v199_v0 = vld [vmem:[%s1148_s5] sm:$0xf] (%p66_p3)  ;;  %v201_v1 = vld [vmem:[%s1148_s5 + $0x8] sm:$0xf] (%p66_p3)  ;;  %v203_v2 = vld [vmem:[%s1148_s5 + $0x10] sm:$0xf] (%p66_p3) }
  0x16   : > { %200 = vst [vmem:[%s180_s6] sm:$0xf] (%p66_p3), %v199_v0  ;;  %202 = vst [vmem:[%s180_s6 + $0x4] sm:$0xf] (%p66_p3), %v201_v1  ;;  %v205_v3 = vld [vmem:[%s1148_s5 + $0x18] sm:$0xf] (%p66_p3) }
  0x17   : > { %v207_v4 = vld [vmem:[%s1148_s5 + $0x20] sm:$0xf] (%p66_p3)  ;;  %204 = vst [vmem:[%s180_s6 + $0x8] sm:$0xf] (%p66_p3), %v203_v2  ;;  %206 = vst [vmem:[%s180_s6 + $0xc] sm:$0xf] (%p66_p3), %v205_v3 }
  0x18   : > { %208 = vst [vmem:[%s180_s6 + $0x10] sm:$0xf] (%p66_p3), %v207_v4  ;;  %v209_v5 = vld [vmem:[%s1148_s5 + $0x28] sm:$0xf] (%p66_p3)  ;;  %v211_v6 = vld [vmem:[%s1148_s5 + $0x30] sm:$0xf] (%p66_p3) }
  0x19   : > { %v213_v7 = vld [vmem:[%s1148_s5 + $0x38] sm:$0xf]  ;;  %210 = vst [vmem:[%s180_s6 + $0x14] sm:$0xf] %v209_v5  ;;  %212 = vst [vmem:[%s180_s6 + $0x18] sm:$0xf] %v211_v6 }
  0x1a   : > { %214 = vst [vmem:[%s180_s6 + $0x1c] sm:$0xf] %v213_v7  ;;  %v215_v8 = vld [vmem:[%s1148_s5 + $0x40] sm:$0xf]  ;;  %v217_v9 = vld [vmem:[%s1148_s5 + $0x48] sm:$0xf] }
  0x1b   : > { %v219_v10 = vld [vmem:[%s1148_s5 + $0x50] sm:$0xf]  ;;  %216 = vst [vmem:[%s180_s6 + $0x20] sm:$0xf] %v215_v8  ;;  %218 = vst [vmem:[%s180_s6 + $0x24] sm:$0xf] %v217_v9 }
  0x1c   : > { %220 = vst [vmem:[%s180_s6 + $0x28] sm:$0xf] %v219_v10  ;;  %v221_v11 = vld [vmem:[%s1148_s5 + $0x58] sm:$0xf]  ;;  %v223_v12 = vld [vmem:[%s1148_s5 + $0x60] sm:$0xf] }
  0x1d   : > { %v225_v13 = vld [vmem:[%s1148_s5 + $0x68] sm:$0xf]  ;;  %222 = vst [vmem:[%s180_s6 + $0x2c] sm:$0xf] %v221_v11  ;;  %224 = vst [vmem:[%s180_s6 + $0x30] sm:$0xf] %v223_v12 }
  0x1e   : > { %226 = vst [vmem:[%s180_s6 + $0x34] sm:$0xf] %v225_v13  ;;  %v227_v14 = vld [vmem:[%s1148_s5 + $0x70] sm:$0xf]  ;;  %v229_v15 = vld [vmem:[%s1148_s5 + $0x78] sm:$0xf] }
  0x1f   : > { %228 = vst [vmem:[%s180_s6 + $0x38] sm:$0xf] %v227_v14  ;;  %230 = vst [vmem:[%s180_s6 + $0x3c] sm:$0xf] %v229_v15 }
  0x20 PF: > { %p865_p8 = scmp.ge.s32.totalorder %s1072_s19, 1  ;;  %p284_p9 = scmp.lt.s32.totalorder %s1072_s19, 3 }
  0x22   : > { %p285_p10 = pnand %p865_p8, %p284_p9 }
  0x23   : > { %s291_s7 = sand.u32 (!%p285_p10), 1, %s1056_s15   ;;  %v1030_v16 = vld [vmem:[%s1329_s0] sm:$0xff] (!%p285_p10)   ;;  %v1031_v17 = vld [vmem:[%s1329_s0 + $0x10] sm:$0xff] (!%p285_p10)   ;;  %v1032_v26 = vld [vmem:[%s1329_s0 + $0x8] sm:$0xff] (!%p285_p10)   ;;  %p327_p11 = scmp.lt.s32.totalorder (!%p285_p10), %s1064_s17, 1  ;;  %vm543_vm0 = vcmask (!%p285_p10), 7168  }
  0x24   : > { %288 = sbr.rel (%p285_p10) target bundleno = 456 (0x1c8), region = 65  ;;  %s866_s10 = sshll.u32 (!%p285_p10), %s291_s7, 6  ;;  %957 = vmatprep.mubr.bf16.mxu0 (!%p285_p10), %v1030_v16  ;;  %961 = vmatprep.mubr.bf16.mxu1 (!%p285_p10), %v1031_v17  ;;  %v1033_v27 = vld [vmem:[%s1329_s0 + $0x18] sm:$0xff] (!%p285_p10)   ;;  %v1074_v28 = vmov (!%p285_p10), 0.0  }
  0x25   : > { %s1177_s13 = scalar_lea.vmem (!%p285_p10), [#allocation2], %s866_s10  ;;  %s867_s5 = sshll.u32 (!%p285_p10), %s291_s7, 5 }
  0x26   : > { %v1022_v18 = vld [vmem:[%s1177_s13] sm:$0xff] (!%p285_p10)   ;;  %v1023_v19 = vld [vmem:[%s1177_s13 + $0x8] sm:$0xff] (!%p285_p10)   ;;  %v1024_v20 = vld [vmem:[%s1177_s13 + $0x10] sm:$0xff] (!%p285_p10)   ;;  %s1223_s6 = scalar_lea.vmem (!%p285_p10), [#allocation3], %s867_s5 }
  0x27   : > { %941 = vmatprep.subr.bf16.mxu0 (!%p285_p10), %v1022_v18  ;;  %965 = vmatprep.subr.bf16.mxu1 (!%p285_p10), %v1022_v18  ;;  %v1025_v21 = vld [vmem:[%s1177_s13 + $0x18] sm:$0xff] (!%p285_p10)   ;;  %v1026_v22 = vld [vmem:[%s1177_s13 + $0x20] sm:$0xff] (!%p285_p10)   ;;  %v1027_v23 = vld [vmem:[%s1177_s13 + $0x28] sm:$0xff] (!%p285_p10)  }
  0x28   : > { %942 = vmatpush3.bf16.msra.mxu0 (!%p285_p10), %v1022_v18  ;;  %973 = vmatpush3.bf16.msra.mxu1 (!%p285_p10), %v1022_v18  ;;  %v1028_v24 = vld [vmem:[%s1177_s13 + $0x30] sm:$0xff] (!%p285_p10)   ;;  %v1029_v25 = vld [vmem:[%s1177_s13 + $0x38] sm:$0xff] (!%p285_p10)  }
  0x29   : > { %943 = vmatprep.subr.bf16.mxu0 (!%p285_p10), %v1023_v19  ;;  %966 = vmatprep.subr.bf16.mxu1 (!%p285_p10), %v1023_v19 }
  0x2b   : > { %s1195_s26 = scalar_select %p327_p11, %s1064_s17, 1 }
  0x2c   : > { %944 = vmatpush3.bf16.msra.mxu0 %v1023_v19  ;;  %974 = vmatpush3.bf16.msra.mxu1 %v1023_v19  ;;  %s893_s9 = sshll.u32 (%p1135_p6), %s1064_s17, 2 }
  0x2d   : > { %945 = vmatprep.subr.bf16.mxu0 %v1024_v20  ;;  %967 = vmatprep.subr.bf16.mxu1 %v1024_v20  ;;  %s896_s27 = sshll.u32 %s1195_s26, 6  ;;  %s668_s12 = scalar_lea.vmem (%p1135_p6), %s1331_s2, %s893_s9 }
  0x2e   : > { %s1203_s30 = scalar_lea.vmem %s1332_s3, %s896_s27  ;;  %s1234_s8 = scalar_lea.vmem %s1333_s4, %s896_s27 }
  0x2f   : > { %550 = vst.msk [vmem:[%s1203_s30 + $0x30] sm:$0xff] %vm543_vm0, %v1074_v28  ;;  %544 = vst.msk [vmem:[%s1203_s30] sm:$0xff] %vm543_vm0, %v1074_v28 }
  0x30   : > { %946 = vmatpush3.bf16.msra.mxu0 %v1024_v20  ;;  %975 = vmatpush3.bf16.msra.mxu1 %v1024_v20  ;;  %545 = vst.msk [vmem:[%s1203_s30 + $0x8] sm:$0xff] %vm543_vm0, %v1074_v28  ;;  %546 = vst.msk [vmem:[%s1203_s30 + $0x10] sm:$0xff] %vm543_vm0, %v1074_v28 }
  0x31   : > { %947 = vmatprep.subr.bf16.mxu0 %v1025_v21  ;;  %968 = vmatprep.subr.bf16.mxu1 %v1025_v21  ;;  %547 = vst.msk [vmem:[%s1203_s30 + $0x18] sm:$0xff] %vm543_vm0, %v1074_v28  ;;  %548 = vst.msk [vmem:[%s1203_s30 + $0x20] sm:$0xff] %vm543_vm0, %v1074_v28 }
  0x32   : > { %549 = vst.msk [vmem:[%s1203_s30 + $0x28] sm:$0xff] %vm543_vm0, %v1074_v28  ;;  %551 = vst.msk [vmem:[%s1203_s30 + $0x38] sm:$0xff] %vm543_vm0, %v1074_v28 }
  0x33   : > { %554 = vst.msk [vmem:[%s1234_s8 + $0x10] sm:$0xff] %vm543_vm0, %v1074_v28  ;;  %552 = vst.msk [vmem:[%s1234_s8] sm:$0xff] %vm543_vm0, %v1074_v28 }
  0x34   : > { %948 = vmatpush3.bf16.msra.mxu0 %v1025_v21  ;;  %976 = vmatpush3.bf16.msra.mxu1 %v1025_v21  ;;  %553 = vst.msk [vmem:[%s1234_s8 + $0x8] sm:$0xff] %vm543_vm0, %v1074_v28  ;;  %555 = vst.msk [vmem:[%s1234_s8 + $0x18] sm:$0xff] %vm543_vm0, %v1074_v28 }
  0x35   : > { %949 = vmatprep.subr.bf16.mxu0 %v1026_v22  ;;  %969 = vmatprep.subr.bf16.mxu1 %v1026_v22  ;;  %556 = vst.msk [vmem:[%s1234_s8 + $0x20] sm:$0xff] %vm543_vm0, %v1074_v28  ;;  %557 = vst.msk [vmem:[%s1234_s8 + $0x28] sm:$0xff] %vm543_vm0, %v1074_v28 }
  0x36   : > { %558 = vst.msk [vmem:[%s1234_s8 + $0x30] sm:$0xff] %vm543_vm0, %v1074_v28  ;;  %559 = vst.msk [vmem:[%s1234_s8 + $0x38] sm:$0xff] %vm543_vm0, %v1074_v28  ;;  %v566_v49 = vld [vmem:[%s1203_s30 + $0x30] sm:$0xff]  ;;  %v560_v55 = vld [vmem:[%s1203_s30] sm:$0xff] }
  0x37   : > { %v562_v50 = vld [vmem:[%s1203_s30 + $0x10] sm:$0xff]  ;;  %v561_v10 = vld [vmem:[%s1203_s30 + $0x8] sm:$0xff] }
  0x38   : > { %950 = vmatpush3.bf16.msra.mxu0 %v1026_v22  ;;  %977 = vmatpush3.bf16.msra.mxu1 %v1026_v22  ;;  %v563_v56 = vld [vmem:[%s1203_s30 + $0x18] sm:$0xff]  ;;  %v564_v61 = vld [vmem:[%s1203_s30 + $0x20] sm:$0xff] }
  0x39   : > { %951 = vmatprep.subr.bf16.mxu0 %v1027_v23  ;;  %970 = vmatprep.subr.bf16.mxu1 %v1027_v23  ;;  %v567_v62 = vld [vmem:[%s1203_s30 + $0x38] sm:$0xff]  ;;  %v565_v4 = vld [vmem:[%s1203_s30 + $0x28] sm:$0xff] }
  0x3a   : > { %v603_v3 = vld [vmem:[%s1234_s8 + $0x10] sm:$0xff]  ;;  %v601_v15 = vld [vmem:[%s1234_s8] sm:$0xff] }
  0x3b   : > { %v604_v9 = vld [vmem:[%s1234_s8 + $0x18] sm:$0xff]  ;;  %v602_v16 = vld [vmem:[%s1234_s8 + $0x8] sm:$0xff] }
  0x3c   : > { %952 = vmatpush3.bf16.msra.mxu0 %v1027_v23  ;;  %978 = vmatpush3.bf16.msra.mxu1 %v1027_v23  ;;  %v605_v21 = vld [vmem:[%s1234_s8 + $0x20] sm:$0xff]  ;;  %v606_v22 = vld [vmem:[%s1234_s8 + $0x28] sm:$0xff] }
  0x3d   : > { %953 = vmatprep.subr.bf16.mxu0 %v1028_v24  ;;  %971 = vmatprep.subr.bf16.mxu1 %v1028_v24  ;;  %v608_v28 = vld [vmem:[%s1234_s8 + $0x38] sm:$0xff] }
  0x40   : > { %954 = vmatpush3.bf16.msra.mxu0 %v1028_v24  ;;  %979 = vmatpush3.bf16.msra.mxu1 %v1028_v24 }
  0x41   : > { %955 = vmatprep.subr.bf16.mxu0 %v1029_v25  ;;  %972 = vmatprep.subr.bf16.mxu1 %v1029_v25 }
  0x44   : > { %956 = vmatpush3.bf16.msra.mxu0 %v1029_v25  ;;  %980 = vmatpush3.bf16.msra.mxu1 %v1029_v25 }
  0x47   : > { %958 = vmatmul.mubr.bf16.vlgmr.msra.gmra.mrb[0].mxu0 %v1032_v26  ;;  %962 = vmatmul.mubr.bf16.vlgmr.msra.gmra.mrb[0].mxu1 %v1033_v27  ;;  %v607_v27 = vld [vmem:[%s1234_s8 + $0x30] sm:$0xff] }
 0x11a   : > { %v959_v29 = vpop.f32.mrb[0].mxu0  ;;  %v963_v30 = vpop.f32.mrb[0].mxu1 }
 0x11b   : > { %580 = vadd.xlane.f32.xlu0 %v963_v30  ;;  %v484_v31 = vpop.f32.mrb[1].mxu1  ;;  %572 = vadd.xlane.f32.xlu1 %v959_v29  ;;  %v468_v32 = vpop.f32.mrb[1].mxu0  ;;  %v611_v41 = vmul.f32 %v959_v29, %v959_v29  ;;  %v615_v47 = vmul.f32 %v963_v30, %v963_v30 }
 0x11c   : > { %v960_v33 = vpop.f32.mrb[2].mxu0  ;;  %v964_v34 = vpop.f32.mrb[2].mxu1  ;;  %v609_v43 = vmul.f32 %v468_v32, %v468_v32  ;;  %v613_v45 = vmul.f32 %v484_v31, %v484_v31 }
 0x11d   : > { %v914_v35 = vpack.c.bf16 %v960_v33, %v959_v29  ;;  %v924_v36 = vpack.c.bf16 %v964_v34, %v963_v30  ;;  %v471_v37 = vpop.f32.mrb[3].mxu0  ;;  %v487_v38 = vpop.f32.mrb[3].mxu1  ;;  %v612_v42 = vmul.f32 %v960_v33, %v960_v33  ;;  %v616_v48 = vmul.f32 %v964_v34, %v964_v34 }
 0x11e   : > { %v909_v39 = vpack.c.bf16 %v471_v37, %v468_v32  ;;  %v919_v40 = vpack.c.bf16 %v487_v38, %v484_v31  ;;  %v610_v44 = vmul.f32 %v471_v37, %v471_v37  ;;  %v614_v46 = vmul.f32 %v487_v38, %v487_v38 }
 0x11f   : > { %926 = vst [vmem:[%s1223_s6 + $0x8] sm:$0xff] %v914_v35   ;;  %928 = vst [vmem:[%s1223_s6 + $0x18] sm:$0xff] %v924_v36   ;;  %568 = vadd.xlane.f32.xlu0 %v468_v32  ;;  %574 = vadd.xlane.f32.xlu1 %v960_v33 }
 0x120   : > { %910 = vst [vmem:[%s1223_s6] sm:$0xff] %v909_v39   ;;  %927 = vst [vmem:[%s1223_s6 + $0x10] sm:$0xff] %v919_v40  }
 0x123   : > { %576 = vadd.xlane.f32.xlu0 %v484_v31  ;;  %582 = vadd.xlane.f32.xlu1 %v964_v34 }
 0x126   : > { %v688_v35 = vld [vmem:[%s1223_s6 + $0x8] sm:$0xf] (%p1135_p6)  ;;  %v690_v36 = vld [vmem:[%s1223_s6 + $0xc] sm:$0xf] (%p1135_p6)  ;;  %v696_v39 = vld [vmem:[%s1223_s6 + $0x18] sm:$0xf] (%p1135_p6) }
 0x127   : > { %621 = vadd.xlane.f32.xlu0 %v611_v41  ;;  %578 = vadd.xlane.f32.xlu1 %v487_v38  ;;  %v684_v33 = vld [vmem:[%s1223_s6] sm:$0xf] (%p1135_p6)  ;;  %v686_v34 = vld [vmem:[%s1223_s6 + $0x4] sm:$0xf] (%p1135_p6)  ;;  %689 = vst [vmem:[%s668_s12 + $0x10] sm:$0xf] (%p1135_p6), %v688_v35 }
 0x128   : > { %685 = vst [vmem:[%s668_s12] sm:$0xf] (%p1135_p6), %v684_v33  ;;  %687 = vst [vmem:[%s668_s12 + $0x8] sm:$0xf] (%p1135_p6), %v686_v34  ;;  %v694_v38 = vld [vmem:[%s1223_s6 + $0x14] sm:$0xf] (%p1135_p6) }
 0x129   : > { %691 = vst [vmem:[%s668_s12 + $0x18] sm:$0xf] (%p1135_p6), %v690_v36  ;;  %v698_v40 = vld [vmem:[%s1223_s6 + $0x1c] sm:$0xf] (%p1135_p6)  ;;  %695 = vst [vmem:[%s668_s12 + $0x28] sm:$0xf] (%p1135_p6), %v694_v38 }
 0x12a   : > { %697 = vst [vmem:[%s668_s12 + $0x30] sm:$0xf] (%p1135_p6), %v696_v39  ;;  %699 = vst [vmem:[%s668_s12 + $0x38] sm:$0xf] (%p1135_p6), %v698_v40 }
 0x12b   : > { %623 = vadd.xlane.f32.xlu1 %v612_v42  ;;  %570 = vadd.xlane.f32.xlu0 %v471_v37  ;;  %v692_v37 = vld [vmem:[%s1223_s6 + $0x10] sm:$0xf] (%p1135_p6) }
 0x12c   : > { %693 = vst [vmem:[%s668_s12 + $0x20] sm:$0xf] (%p1135_p6), %v692_v37 }
 0x12f   : > { %617 = vadd.xlane.f32.xlu0 %v609_v43  ;;  %619 = vadd.xlane.f32.xlu1 %v610_v44 }
 0x133   : > { %625 = vadd.xlane.f32.xlu0 %v613_v45  ;;  %627 = vadd.xlane.f32.xlu1 %v614_v46 }
 0x137   : > { %629 = vadd.xlane.f32.xlu0 %v615_v47  ;;  %631 = vadd.xlane.f32.xlu1 %v616_v48 }
 0x1a8   : > { %v581_v51 = vpop.xlane.xlu0 %580  ;;  %v573_v52 = vpop.xlane.xlu1 %572 }
 0x1a9   : > { %v590_v53 = vadd.f32 %v581_v51, %v566_v49  ;;  %v586_v54 = vadd.f32 %v573_v52, %v562_v50 }
 0x1ab   : > { %599 = vst.msk [vmem:[%s1203_s30 + $0x30] sm:$0xff] %vm543_vm0, %v590_v53  ;;  %595 = vst.msk [vmem:[%s1203_s30 + $0x10] sm:$0xff] %vm543_vm0, %v586_v54 }
 0x1ac   : > { %v569_v57 = vpop.xlane.xlu0 %568  ;;  %v575_v58 = vpop.xlane.xlu1 %574 }
 0x1ad   : > { %v584_v59 = vadd.f32 %v569_v57, %v560_v55  ;;  %v587_v60 = vadd.f32 %v575_v58, %v563_v56 }
 0x1af   : > { %593 = vst.msk [vmem:[%s1203_s30] sm:$0xff] %vm543_vm0, %v584_v59  ;;  %596 = vst.msk [vmem:[%s1203_s30 + $0x18] sm:$0xff] %vm543_vm0, %v587_v60 }
 0x1b0   : > { %v577_v63 = vpop.xlane.xlu0 %576  ;;  %v583_v0 = vpop.xlane.xlu1 %582 }
 0x1b1   : > { %v588_v1 = vadd.f32 %v577_v63, %v564_v61  ;;  %v591_v2 = vadd.f32 %v583_v0, %v567_v62 }
 0x1b3   : > { %597 = vst.msk [vmem:[%s1203_s30 + $0x20] sm:$0xff] %vm543_vm0, %v588_v1  ;;  %600 = vst.msk [vmem:[%s1203_s30 + $0x38] sm:$0xff] %vm543_vm0, %v591_v2 }
 0x1b4   : > { %v622_v5 = vpop.xlane.xlu0 %621  ;;  %v579_v6 = vpop.xlane.xlu1 %578 }
 0x1b5   : > { %v635_v7 = vadd.f32 %v622_v5, %v603_v3  ;;  %v589_v8 = vadd.f32 %v579_v6, %v565_v4 }
 0x1b7   : > { %643 = vst.msk [vmem:[%s1234_s8 + $0x10] sm:$0xff] %vm543_vm0, %v635_v7  ;;  %598 = vst.msk [vmem:[%s1203_s30 + $0x28] sm:$0xff] %vm543_vm0, %v589_v8 }
 0x1b8   : > { %v624_v11 = vpop.xlane.xlu1 %623  ;;  %v571_v12 = vpop.xlane.xlu0 %570 }
 0x1b9   : > { %v636_v13 = vadd.f32 %v624_v11, %v604_v9  ;;  %v585_v14 = vadd.f32 %v571_v12, %v561_v10 }
 0x1bb   : > { %644 = vst.msk [vmem:[%s1234_s8 + $0x18] sm:$0xff] %vm543_vm0, %v636_v13  ;;  %594 = vst.msk [vmem:[%s1203_s30 + $0x8] sm:$0xff] %vm543_vm0, %v585_v14 }
 0x1bc   : > { %v618_v17 = vpop.xlane.xlu0 %617  ;;  %v620_v18 = vpop.xlane.xlu1 %619 }
 0x1bd   : > { %v633_v19 = vadd.f32 %v618_v17, %v601_v15  ;;  %v634_v20 = vadd.f32 %v620_v18, %v602_v16 }
 0x1bf   : > { %641 = vst.msk [vmem:[%s1234_s8] sm:$0xff] %vm543_vm0, %v633_v19  ;;  %642 = vst.msk [vmem:[%s1234_s8 + $0x8] sm:$0xff] %vm543_vm0, %v634_v20 }
 0x1c0   : > { %v626_v23 = vpop.xlane.xlu0 %625  ;;  %v628_v24 = vpop.xlane.xlu1 %627 }
 0x1c1   : > { %v637_v25 = vadd.f32 %v626_v23, %v605_v21  ;;  %v638_v26 = vadd.f32 %v628_v24, %v606_v22  ;;  %665 = sbr.rel (!%p1135_p6) target bundleno = 456 (0x1c8), region = 77 }
 0x1c3   : > { %645 = vst.msk [vmem:[%s1234_s8 + $0x20] sm:$0xff] %vm543_vm0, %v637_v25  ;;  %646 = vst.msk [vmem:[%s1234_s8 + $0x28] sm:$0xff] %vm543_vm0, %v638_v26 }
 0x1c4   : > { %v630_v29 = vpop.xlane.xlu0 %629  ;;  %v632_v30 = vpop.xlane.xlu1 %631 }
 0x1c5   : > { %v639_v31 = vadd.f32 %v630_v29, %v607_v27  ;;  %v640_v32 = vadd.f32 %v632_v30, %v608_v28 }
 0x1c7   : > { %647 = vst.msk [vmem:[%s1234_s8 + $0x30] sm:$0xff] %vm543_vm0, %v639_v31  ;;  %648 = vst.msk [vmem:[%s1234_s8 + $0x38] sm:$0xff] %vm543_vm0, %v640_v32 }
 0x1c8 PF: > { %s15_s19 = sadd.s32 1, %s1072_s19   ;;  %s1335_s15 = smov %s1060_s16 }
 0x1c9   : > { %p12_p12 = scmp.ge.s32.totalorder %s15_s19, 4   ;;  %s1336_s16 = smov %s1140_s25 }
 0x1ca   : > { %s1337_s17 = smov %s1068_s18  ;;  %s1338_s18 = smov %s1340_s20 }
 0x1cb   :  { %14 = sbr.rel (!%p12_p12) target bundleno = 3 (0x3), region = 173 }

// kernel: generator_forward.8
= control target key start
LH: loop header
LB: loop body
LE: loop exit
PB: predicated region body
PF: predicated region fallthrough
CT: control target
= control target key end

     0   :  { %s1033_s15 = smov 0   ;;  %s1035_s16 = smov 0   ;;  %s1218_s0 = inlined_call_operand.vmem [shape: bf16[32,64], index: 0, kind: input, shape index: {}]   ;;  %s1219_s1 = inlined_call_operand.vmem [shape: bf16[64,1024], index: 1, kind: input, shape index: {}]   ;;  %s1220_s2 = inlined_call_operand.vmem [shape: bf16[32,1024], index: 2, kind: output, shape index: {0}]   ;;  %s1221_s3 = inlined_call_operand.vmem [shape: f32[2,32,1], index: 3, kind: output, shape index: {1}]   ;;  %s1222_s4 = inlined_call_operand.vmem [shape: f32[2,32,1], index: 4, kind: output, shape index: {2}]  }
   0x1   :  { %s1037_s17 = smov 0   ;;  %s1039_s18 = smov 0  }
   0x2   :  { %s1041_s19 = smov 0  }
   0x3 LB: > { %s27_s20 = sadd.s32 1, %s1000_s18  ;;  %s837_s21 = sadd.s32 4294967295, %s1004_s19   ;;  %s1004_s19 = sphi %s1041_s19, %s15_s19   ;;  %s1000_s18 = sphi %s1039_s18, %s1227_s18   ;;  %s996_s17 = sphi %s1037_s17, %s1226_s17   ;;  %s992_s16 = sphi %s1035_s16, %s1225_s16   ;;  %s988_s15 = sphi %s1033_s15, %s1224_s15  }
   0x4   : > { %p29_p0 = scmp.ge.s32.totalorder %s27_s20, 2  ;;  %p64_p1 = scmp.ne.s32.totalorder %s992_s16, %s988_s15 }
   0x5   : > { %p65_p2 = scmp.eq.s32.totalorder %s1004_s19, 0  ;;  %p96_p4 = scmp.eq.s32.totalorder %s837_s21, 1 }
   0x6   : > { %s1229_s20 = smov (%p29_p0, %s27_s20), 0  ;;  %s57_s23 = sadd.s32 1, %s992_s16 }
   0x7   : > { %p66_p3 = por %p65_p2, %p64_p1  ;;  %s54_s22 = ssub.s32 %s1000_s18, %s1229_s20 }
   0x8   : > { %p55_p5 = scmp.eq.s32.totalorder %s54_s22, 0  ;;  %p1068_p6 = por %p96_p4, %p64_p1 }
   0x9   : > { %p840_p7 = scmp.ge.s32.totalorder %s1004_s19, 2 }
   0xa   : > { %s1073_s25 = scalar_select %p55_p5, %s992_s16, %s57_s23  }
   0xb   : > { %173 = sbr.rel (%p840_p7) target bundleno = 30 (0x1e), region = 20 }
  0x12   : > { %176 = sbr.rel (!%p66_p3) target bundleno = 30 (0x1e), region = 24  ;;  %s178_s26 = sand.u32 (%p66_p3), 1, %s992_s16  }
  0x13   : > { %s886_s27 = sshll.u32 (%p66_p3), %s1000_s18, 4  ;;  %s841_s28 = sshll.u32 (%p66_p3), %s178_s26, 7 }
  0x14   : > { %s1081_s5 = scalar_lea.vmem (%p66_p3), %s1219_s1, %s886_s27  ;;  %s180_s6 = scalar_lea.vmem (%p66_p3), [#allocation2], %s841_s28 }
  0x15   : > { %v197_v0 = vld [vmem:[%s1081_s5] sm:$0xff] (%p66_p3)  ;;  %v199_v1 = vld [vmem:[%s1081_s5 + $0x8] sm:$0xff] (%p66_p3) }
  0x16   : > { %v201_v2 = vld [vmem:[%s1081_s5 + $0x20] sm:$0xff] (%p66_p3)  ;;  %198 = vst [vmem:[%s180_s6] sm:$0xff] (%p66_p3), %v197_v0  ;;  %200 = vst [vmem:[%s180_s6 + $0x8] sm:$0xff] (%p66_p3), %v199_v1  ;;  %v203_v3 = vld [vmem:[%s1081_s5 + $0x28] sm:$0xff] (%p66_p3) }
  0x17   : > { %202 = vst [vmem:[%s180_s6 + $0x10] sm:$0xff] (%p66_p3), %v201_v2  ;;  %v205_v4 = vld [vmem:[%s1081_s5 + $0x40] sm:$0xff] (%p66_p3)  ;;  %v207_v5 = vld [vmem:[%s1081_s5 + $0x48] sm:$0xff] (%p66_p3)  ;;  %204 = vst [vmem:[%s180_s6 + $0x18] sm:$0xff] (%p66_p3), %v203_v3 }
  0x18   : > { %206 = vst [vmem:[%s180_s6 + $0x20] sm:$0xff] (%p66_p3), %v205_v4  ;;  %208 = vst [vmem:[%s180_s6 + $0x28] sm:$0xff] (%p66_p3), %v207_v5  ;;  %v209_v6 = vld [vmem:[%s1081_s5 + $0x60] sm:$0xff] (%p66_p3)  ;;  %v211_v7 = vld [vmem:[%s1081_s5 + $0x68] sm:$0xff] (%p66_p3) }
  0x19   : > { %v213_v8 = vld [vmem:[%s1081_s5 + $0x80] sm:$0xff]  ;;  %210 = vst [vmem:[%s180_s6 + $0x30] sm:$0xff] %v209_v6  ;;  %212 = vst [vmem:[%s180_s6 + $0x38] sm:$0xff] %v211_v7  ;;  %v215_v9 = vld [vmem:[%s1081_s5 + $0x88] sm:$0xff] }
  0x1a   : > { %214 = vst [vmem:[%s180_s6 + $0x40] sm:$0xff] %v213_v8  ;;  %v217_v10 = vld [vmem:[%s1081_s5 + $0xa0] sm:$0xff]  ;;  %v219_v11 = vld [vmem:[%s1081_s5 + $0xa8] sm:$0xff]  ;;  %216 = vst [vmem:[%s180_s6 + $0x48] sm:$0xff] %v215_v9 }
  0x1b   : > { %218 = vst [vmem:[%s180_s6 + $0x50] sm:$0xff] %v217_v10  ;;  %220 = vst [vmem:[%s180_s6 + $0x58] sm:$0xff] %v219_v11  ;;  %v221_v12 = vld [vmem:[%s1081_s5 + $0xc0] sm:$0xff]  ;;  %v223_v13 = vld [vmem:[%s1081_s5 + $0xc8] sm:$0xff] }
  0x1c   : > { %v225_v14 = vld [vmem:[%s1081_s5 + $0xe0] sm:$0xff]  ;;  %222 = vst [vmem:[%s180_s6 + $0x60] sm:$0xff] %v221_v12  ;;  %224 = vst [vmem:[%s180_s6 + $0x68] sm:$0xff] %v223_v13  ;;  %v227_v15 = vld [vmem:[%s1081_s5 + $0xe8] sm:$0xff] }
  0x1d   : > { %226 = vst [vmem:[%s180_s6 + $0x70] sm:$0xff] %v225_v14  ;;  %228 = vst [vmem:[%s180_s6 + $0x78] sm:$0xff] %v227_v15 }
  0x1e PF: > { %p844_p8 = scmp.ge.s32.totalorder %s1004_s19, 1  ;;  %p233_p9 = scmp.lt.s32.totalorder %s1004_s19, 3 }
  0x20   : > { %p234_p10 = pnand %p844_p8, %p233_p9 }
  0x21   : > { %s240_s7 = sand.u32 (!%p234_p10), 1, %s988_s15   ;;  %v1006_v16 = vmov (!%p234_p10), 0   ;;  %v964_v33 = vld [vmem:[%s1218_s0] sm:$0xff] (!%p234_p10)   ;;  %vm399_vm0 = vcmask (!%p234_p10), 523264   ;;  %v965_v34 = vld [vmem:[%s1218_s0 + $0x8] sm:$0xff] (!%p234_p10)   ;;  %p278_p11 = scmp.lt.s32.totalorder (!%p234_p10), %s996_s17, 1 }
  0x22   : > { %237 = sbr.rel (%p234_p10) target bundleno = 434 (0x1b2), region = 47  ;;  %s845_s8 = sshll.u32 (!%p234_p10), %s240_s7, 7  ;;  %438 = vmatprep.mubr.bf16.mxu0 (!%p234_p10), %v1006_v16  ;;  %491 = vmatprep.mubr.bf16.mxu1 (!%p234_p10), %v1006_v16  ;;  %vm572_vm1 = vcmask (!%p234_p10), 7168   ;;  %v1007_v35 = vmov (!%p234_p10), 0.0  }
  0x23   : > { %s242_s9 = scalar_lea.vmem (!%p234_p10), [#allocation2], %s845_s8  ;;  %s846_s27 = sshll.u32 (!%p234_p10), %s240_s7, 6 }
  0x24   : > { %v940_v17 = vld [vmem:[%s242_s9 + $0x4] ss:$16 sps:$4 sm:$0xff] (!%p234_p10)   ;;  %v942_v18 = vld [vmem:[%s242_s9 + $0xc] ss:$16 sps:$4 sm:$0xff] (!%p234_p10)   ;;  %v944_v19 = vld [vmem:[%s242_s9] ss:$16 sps:$4 sm:$0xff] (!%p234_p10)  }
  0x25   : > { %406 = vmatprep.subr.bf16.mxu0 (!%p234_p10), %v940_v17  ;;  %v945_v20 = vld [vmem:[%s242_s9 + $0x8] ss:$16 sps:$4 sm:$0xff] (!%p234_p10)   ;;  %459 = vmatprep.subr.bf16.mxu1 (!%p234_p10), %v942_v18  ;;  %v946_v21 = vld [vmem:[%s242_s9 + $0x24] ss:$16 sps:$4 sm:$0xff] (!%p234_p10)   ;;  %v948_v22 = vld [vmem:[%s242_s9 + $0x2c] ss:$16 sps:$4 sm:$0xff] (!%p234_p10)  }
  0x26   : > { %407 = vmatpush1.bf16.msra.mxu0 (!%p234_p10), %v944_v19  ;;  %460 = vmatpush1.bf16.msra.mxu1 (!%p234_p10), %v945_v20  ;;  %v950_v23 = vld [vmem:[%s242_s9 + $0x20] ss:$16 sps:$4 sm:$0xff] (!%p234_p10)   ;;  %v951_v24 = vld [vmem:[%s242_s9 + $0x28] ss:$16 sps:$4 sm:$0xff] (!%p234_p10)   ;;  %v952_v25 = vld [vmem:[%s242_s9 + $0x44] ss:$16 sps:$4 sm:$0xff] (!%p234_p10)  }
  0x27   : > { %408 = vmatprep.subr.bf16.mxu0 (!%p234_p10), %v946_v21  ;;  %461 = vmatprep.subr.bf16.mxu1 (!%p234_p10), %v948_v22  ;;  %v954_v26 = vld [vmem:[%s242_s9 + $0x4c] ss:$16 sps:$4 sm:$0xff] (!%p234_p10)   ;;  %v956_v27 = vld [vmem:[%s242_s9 + $0x40] ss:$16 sps:$4 sm:$0xff] (!%p234_p10)   ;;  %v957_v28 = vld [vmem:[%s242_s9 + $0x48] ss:$16 sps:$4 sm:$0xff] (!%p234_p10)  }
  0x28   : > { %v958_v29 = vld [vmem:[%s242_s9 + $0x64] ss:$16 sps:$4 sm:$0xff] (!%p234_p10)   ;;  %v960_v30 = vld [vmem:[%s242_s9 + $0x6c] ss:$16 sps:$4 sm:$0xff] (!%p234_p10)   ;;  %v962_v31 = vld [vmem:[%s242_s9 + $0x60] ss:$16 sps:$4 sm:$0xff] (!%p234_p10)  }
  0x29   : > { %v963_v32 = vld [vmem:[%s242_s9 + $0x68] ss:$16 sps:$4 sm:$0xff]   ;;  %s1112_s14 = scalar_select %p278_p11, %s996_s17, 1 }
  0x2a   : > { %409 = vmatpush1.bf16.msra.mxu0 %v950_v23  ;;  %462 = vmatpush1.bf16.msra.mxu1 %v951_v24  ;;  %s1136_s28 = scalar_lea.vmem [#allocation3], %s846_s27  ;;  %s897_s5 = sshll.u32 (%p1068_p6), %s996_s17, 4 }
  0x2b   : > { %410 = vmatprep.subr.bf16.mxu0 %v952_v25  ;;  %463 = vmatprep.subr.bf16.mxu1 %v954_v26  ;;  %s887_s21 = sshll.u32 %s1112_s14, 5  ;;  %s682_s8 = scalar_lea.vmem (%p1068_p6), %s1220_s2, %s897_s5 }
  0x2c   : > { %s1120_s26 = scalar_lea.vmem %s1221_s3, %s887_s21  ;;  %s1151_s30 = scalar_lea.vmem %s1222_s4, %s887_s21 }
  0x2d   : > { %573 = vst.msk [vmem:[%s1120_s26] sm:$0xff] %vm572_vm1, %v1007_v35  ;;  %574 = vst.msk [vmem:[%s1120_s26 + $0x8] sm:$0xff] %vm572_vm1, %v1007_v35 }
  0x2e   : > { %411 = vmatpush1.bf16.msra.mxu0 %v956_v27  ;;  %464 = vmatpush1.bf16.msra.mxu1 %v957_v28  ;;  %575 = vst.msk [vmem:[%s1120_s26 + $0x10] sm:$0xff] %vm572_vm1, %v1007_v35  ;;  %576 = vst.msk [vmem:[%s1120_s26 + $0x18] sm:$0xff] %vm572_vm1, %v1007_v35 }
  0x2f   : > { %412 = vmatprep.subr.bf16.mxu0 %v958_v29  ;;  %465 = vmatprep.subr.bf16.mxu1 %v960_v30  ;;  %578 = vst.msk [vmem:[%s1151_s30 + $0x8] sm:$0xff] %vm572_vm1, %v1007_v35  ;;  %577 = vst.msk [vmem:[%s1151_s30] sm:$0xff] %vm572_vm1, %v1007_v35 }
  0x30   : > { %579 = vst.msk [vmem:[%s1151_s30 + $0x10] sm:$0xff] %vm572_vm1, %v1007_v35  ;;  %580 = vst.msk [vmem:[%s1151_s30 + $0x18] sm:$0xff] %vm572_vm1, %v1007_v35 }
  0x32   : > { %413 = vmatpush1.bf16.msra.mxu0 %v962_v31  ;;  %466 = vmatpush1.bf16.msra.mxu1 %v963_v32 }
  0x35   : > { %869 = vmatmul.mubr.msk.bf16.vlgmr.msra.gmra.mrb[0].mxu0 %vm399_vm0, %v964_v33  ;;  %871 = vmatmul.mubr.msk.bf16.vlgmr.msra.gmra.mrb[0].mxu1 %vm399_vm0, %v964_v33 }
  0x36   : > { %448 = vmatprep.mubr.bf16.mxu0 %v1006_v16  ;;  %501 = vmatprep.mubr.bf16.mxu1 %v1006_v16 }
  0x3d   : > { %870 = vmatmul.mubr.msk.bf16.gmra.mrb[4].mxu0 %vm399_vm0, %v965_v34  ;;  %872 = vmatmul.mubr.msk.bf16.gmra.mrb[4].mxu1 %vm399_vm0, %v965_v34 }
 0x108   : > { %v440_v36 = vpop.f32.mrb[0].mxu0  ;;  %v493_v37 = vpop.f32.mrb[0].mxu1 }
 0x109   : > { %v618_v38 = vmul.f32 %v440_v36, %v440_v36  ;;  %v442_v39 = vpop.f32.mrb[1].mxu0  ;;  %v495_v40 = vpop.f32.mrb[1].mxu1  ;;  %v620_v47 = vmul.f32 %v493_v37, %v493_v37 }
 0x10a   : > { %v889_v41 = vpack.c.bf16 %v442_v39, %v440_v36  ;;  %v585_v42 = vadd.f32 %v442_v39, %v440_v36  ;;  %v619_v43 = vmul.f32 %v442_v39, %v442_v39  ;;  %v890_v44 = vpack.c.bf16 %v495_v40, %v493_v37  ;;  %v444_v45 = vpop.f32.mrb[2].mxu0  ;;  %v497_v46 = vpop.f32.mrb[2].mxu1 }
 0x10b   : > { %v622_v48 = vmul.f32 %v444_v45, %v444_v45  ;;  %v446_v49 = vpop.f32.mrb[3].mxu0  ;;  %v499_v50 = vpop.f32.mrb[3].mxu1  ;;  %v624_v57 = vmul.f32 %v497_v46, %v497_v46  ;;  %v621_v61 = vmul.f32 %v495_v40, %v495_v40 }
 0x10c   : > { %560 = vst [vmem:[%s1136_s28] sm:$0xff] %v889_v41  ;;  %561 = vst [vmem:[%s1136_s28 + $0x8] sm:$0xff] %v890_v44  ;;  %v891_v51 = vpack.c.bf16 %v446_v49, %v444_v45  ;;  %v590_v52 = vadd.f32 %v446_v49, %v444_v45  ;;  %v623_v53 = vmul.f32 %v446_v49, %v446_v49  ;;  %v582_v41 = vld [vmem:[%s1120_s26 + $0x8] sm:$0xff]  ;;  %v614_v45 = vld [vmem:[%s1151_s30] sm:$0xff] }
 0x10d   : > { %v892_v54 = vpack.c.bf16 %v499_v50, %v497_v46  ;;  %v586_v55 = vadd.f32 %v585_v42, %v493_v37  ;;  %v634_v56 = vadd.f32 %v619_v43, %v618_v38  ;;  %v625_v6 = vmul.f32 %v499_v50, %v499_v50  ;;  %v581_v37 = vld [vmem:[%s1120_s26] sm:$0xff] }
 0x10e   : > { %562 = vst [vmem:[%s1136_s28 + $0x10] sm:$0xff] %v891_v51  ;;  %v639_v58 = vadd.f32 %v623_v53, %v622_v48  ;;  %v591_v59 = vadd.f32 %v590_v52, %v497_v46  ;;  %v583_v46 = vld [vmem:[%s1120_s26 + $0x10] sm:$0xff]  ;;  %v584_v52 = vld [vmem:[%s1120_s26 + $0x18] sm:$0xff] }
 0x10f   : > { %563 = vst [vmem:[%s1136_s28 + $0x18] sm:$0xff] %v892_v54  ;;  %v587_v60 = vadd.f32 %v586_v55, %v495_v40  ;;  %v635_v62 = vadd.f32 %v634_v56, %v620_v47  ;;  %v615_v40 = vld [vmem:[%s1151_s30 + $0x8] sm:$0xff]  ;;  %v616_v51 = vld [vmem:[%s1151_s30 + $0x10] sm:$0xff] }
 0x110   : > { %v503_v63 = vpop.f32.mrb[4].mxu1  ;;  %v450_v0 = vpop.f32.mrb[4].mxu0  ;;  %v640_v1 = vadd.f32 %v639_v58, %v624_v57  ;;  %v592_v2 = vadd.f32 %v591_v59, %v499_v50  ;;  %v617_v57 = vld [vmem:[%s1151_s30 + $0x18] sm:$0xff] }
 0x111   : > { %588 = vadd.xlane.f32.xlu0 %v587_v60  ;;  %v626_v3 = vmul.f32 %v450_v0, %v450_v0  ;;  %v452_v4 = vpop.f32.mrb[5].mxu0  ;;  %v505_v5 = vpop.f32.mrb[5].mxu1  ;;  %v636_v7 = vadd.f32 %v635_v62, %v621_v61  ;;  %v628_v14 = vmul.f32 %v503_v63, %v503_v63 }
 0x112   : > { %v893_v8 = vpack.c.bf16 %v452_v4, %v450_v0  ;;  %v595_v9 = vadd.f32 %v452_v4, %v450_v0  ;;  %v627_v10 = vmul.f32 %v452_v4, %v452_v4  ;;  %v894_v11 = vpack.c.bf16 %v505_v5, %v503_v63  ;;  %v454_v12 = vpop.f32.mrb[6].mxu0  ;;  %v507_v13 = vpop.f32.mrb[6].mxu1 }
 0x113   : > { %v630_v15 = vmul.f32 %v454_v12, %v454_v12  ;;  %v456_v16 = vpop.f32.mrb[7].mxu0  ;;  %v509_v17 = vpop.f32.mrb[7].mxu1  ;;  %v641_v18 = vadd.f32 %v640_v1, %v625_v6  ;;  %v632_v25 = vmul.f32 %v507_v13, %v507_v13  ;;  %v629_v29 = vmul.f32 %v505_v5, %v505_v5  ;;  %v695_v60 = vld [vmem:[%s1136_s28] sm:$0xff] (%p1068_p6)  ;;  %v697_v61 = vld [vmem:[%s1136_s28 + $0x8] sm:$0xff] (%p1068_p6) }
 0x114   : > { %564 = vst [vmem:[%s1136_s28 + $0x20] sm:$0xff] %v893_v8  ;;  %565 = vst [vmem:[%s1136_s28 + $0x28] sm:$0xff] %v894_v11  ;;  %v895_v19 = vpack.c.bf16 %v456_v16, %v454_v12  ;;  %v600_v20 = vadd.f32 %v456_v16, %v454_v12  ;;  %v631_v21 = vmul.f32 %v456_v16, %v456_v16 }
 0x115   : > { %v896_v22 = vpack.c.bf16 %v509_v17, %v507_v13  ;;  %642 = vadd.xlane.f32.xlu1 %v641_v18  ;;  %593 = vadd.xlane.f32.xlu0 %v592_v2  ;;  %v596_v23 = vadd.f32 %v595_v9, %v503_v63  ;;  %v644_v24 = vadd.f32 %v627_v10, %v626_v3  ;;  %v699_v62 = vld [vmem:[%s1136_s28 + $0x10] sm:$0xff] (%p1068_p6) }
 0x116   : > { %566 = vst [vmem:[%s1136_s28 + $0x30] sm:$0xff] %v895_v19  ;;  %v649_v26 = vadd.f32 %v631_v21, %v630_v15  ;;  %v601_v27 = vadd.f32 %v600_v20, %v507_v13  ;;  %v633_v31 = vmul.f32 %v509_v17, %v509_v17  ;;  %v701_v63 = vld [vmem:[%s1136_s28 + $0x18] sm:$0xff] (%p1068_p6)  ;;  %696 = vst [vmem:[%s682_s8] sm:$0xff] (%p1068_p6), %v695_v60 }
 0x117   : > { %567 = vst [vmem:[%s1136_s28 + $0x38] sm:$0xff] %v896_v22  ;;  %v597_v28 = vadd.f32 %v596_v23, %v505_v5  ;;  %v645_v30 = vadd.f32 %v644_v24, %v628_v14  ;;  %698 = vst [vmem:[%s682_s8 + $0x8] sm:$0xff] (%p1068_p6), %v697_v61 }
 0x118   : > { %v602_v32 = vadd.f32 %v601_v27, %v509_v17  ;;  %v650_v33 = vadd.f32 %v649_v26, %v632_v25  ;;  %700 = vst [vmem:[%s682_s8 + $0x20] sm:$0xff] (%p1068_p6), %v699_v62  ;;  %702 = vst [vmem:[%s682_s8 + $0x28] sm:$0xff] (%p1068_p6), %v701_v63 }
 0x119   : > { %637 = vadd.xlane.f32.xlu0 %v636_v7  ;;  %598 = vadd.xlane.f32.xlu1 %v597_v28  ;;  %v646_v34 = vadd.f32 %v645_v30, %v629_v29 }
 0x11a   : > { %v651_v36 = vadd.f32 %v650_v33, %v633_v31 }
 0x11b   : > { %v703_v0 = vld [vmem:[%s1136_s28 + $0x20] sm:$0xff] (%p1068_p6)  ;;  %v705_v1 = vld [vmem:[%s1136_s28 + $0x28] sm:$0xff] (%p1068_p6) }
 0x11c   : > { %704 = vst [vmem:[%s682_s8 + $0x40] sm:$0xff] (%p1068_p6), %v703_v0  ;;  %706 = vst [vmem:[%s682_s8 + $0x48] sm:$0xff] (%p1068_p6), %v705_v1 }
 0x11d   : > { %647 = vadd.xlane.f32.xlu0 %v646_v34  ;;  %603 = vadd.xlane.f32.xlu1 %v602_v32  ;;  %v707_v2 = vld [vmem:[%s1136_s28 + $0x30] sm:$0xff] (%p1068_p6) }
 0x11e   : > { %v709_v3 = vld [vmem:[%s1136_s28 + $0x38] sm:$0xff] (%p1068_p6)  ;;  %708 = vst [vmem:[%s682_s8 + $0x60] sm:$0xff] (%p1068_p6), %v707_v2 }
 0x11f   : > { %710 = vst [vmem:[%s682_s8 + $0x68] sm:$0xff] (%p1068_p6), %v709_v3 }
 0x121   : > { %652 = vadd.xlane.f32.xlu1 %v651_v36 }
 0x19e   : > { %v589_v38 = vpop.xlane.xlu0 %588 }
 0x19f   : > { %v605_v39 = vadd.f32 %v589_v38, %v581_v37 }
 0x1a1   : > { %610 = vst.msk [vmem:[%s1120_s26] sm:$0xff] %vm572_vm1, %v605_v39 }
 0x1a2   : > { %v643_v42 = vpop.xlane.xlu1 %642  ;;  %v594_v43 = vpop.xlane.xlu0 %593 }
 0x1a3   : > { %v655_v44 = vadd.f32 %v643_v42, %v615_v40  ;;  %v606_v35 = vadd.f32 %v594_v43, %v582_v41 }
 0x1a5   : > { %659 = vst.msk [vmem:[%s1151_s30 + $0x8] sm:$0xff] %vm572_vm1, %v655_v44  ;;  %611 = vst.msk [vmem:[%s1120_s26 + $0x8] sm:$0xff] %vm572_vm1, %v606_v35 }
 0x1a6   : > { %v638_v47 = vpop.xlane.xlu0 %637  ;;  %v599_v48 = vpop.xlane.xlu1 %598 }
 0x1a7   : > { %v654_v49 = vadd.f32 %v638_v47, %v614_v45  ;;  %v607_v50 = vadd.f32 %v599_v48, %v583_v46 }
 0x1a9   : > { %658 = vst.msk [vmem:[%s1151_s30] sm:$0xff] %vm572_vm1, %v654_v49  ;;  %612 = vst.msk [vmem:[%s1120_s26 + $0x10] sm:$0xff] %vm572_vm1, %v607_v50 }
 0x1aa   : > { %v648_v53 = vpop.xlane.xlu0 %647  ;;  %v604_v54 = vpop.xlane.xlu1 %603 }
 0x1ab   : > { %v656_v55 = vadd.f32 %v648_v53, %v616_v51  ;;  %v608_v56 = vadd.f32 %v604_v54, %v584_v52  ;;  %678 = sbr.rel (!%p1068_p6) target bundleno = 434 (0x1b2), region = 59 }
 0x1ad   : > { %660 = vst.msk [vmem:[%s1151_s30 + $0x10] sm:$0xff] %vm572_vm1, %v656_v55  ;;  %613 = vst.msk [vmem:[%s1120_s26 + $0x18] sm:$0xff] %vm572_vm1, %v608_v56 }
 0x1ae   : > { %v653_v58 = vpop.xlane.xlu1 %652 }
 0x1af   : > { %v657_v59 = vadd.f32 %v653_v58, %v617_v57 }
 0x1b1   : > { %661 = vst.msk [vmem:[%s1151_s30 + $0x18] sm:$0xff] %vm572_vm1, %v657_v59 }
 0x1b2 PF: > { %s15_s19 = sadd.s32 1, %s1004_s19   ;;  %s1224_s15 = smov %s992_s16 }
 0x1b3   : > { %p12_p12 = scmp.ge.s32.totalorder %s15_s19, 4   ;;  %s1225_s16 = smov %s1073_s25 }
 0x1b4   : > { %s1226_s17 = smov %s1000_s18  ;;  %s1227_s18 = smov %s1229_s20 }
 0x1b5   :  { %14 = sbr.rel (!%p12_p12) target bundleno = 3 (0x3), region = 137 }

// kernel: generator_forward.9
= control target key start
LH: loop header
LB: loop body
LE: loop exit
PB: predicated region body
PF: predicated region fallthrough
CT: control target
= control target key end

     0   :  { %s600_s12 = smov 0   ;;  %s602_s13 = smov 0   ;;  %s691_s0 = inlined_call_operand.vmem [shape: bf16[12,32], index: 0, kind: input, shape index: {}]   ;;  %s692_s1 = inlined_call_operand.vmem [shape: bf16[32,3072], index: 1, kind: input, shape index: {}]   ;;  %s693_s2 = inlined_call_operand.vmem [shape: f32[12,1], index: 2, kind: input, shape index: {}]   ;;  %s694_s3 = inlined_call_operand.vmem [shape: f32[12,3072], index: 3, kind: output, shape index: {}]  }
   0x1   :  { %s604_s14 = smov 0  }
   0x2 LB: > { %s472_s15 = sadd.s32 4294967295, %s577_s14   ;;  %s617_s16 = sadd.s32 1, %s577_s14   ;;  %s577_s14 = sphi %s604_s14, %s698_s14   ;;  %s573_s13 = sphi %s602_s13, %s697_s13   ;;  %s569_s12 = sphi %s600_s12, %s696_s12  }
   0x3   : > { %s38_s17 = ssub.s32 %s577_s14, %s617_s16  ;;  %s41_s18 = sadd.s32 1, %s573_s13 }
   0x4   : > { %p39_p0 = scmp.eq.s32.totalorder %s38_s17, 0  ;;  %p48_p1 = scmp.ne.s32.totalorder %s573_s13, %s569_s12 }
   0x5   : > { %p49_p2 = scmp.eq.s32.totalorder %s577_s14, 0  ;;  %p99_p3 = scmp.eq.s32.totalorder %s472_s15, 5 }
   0x6   : > { %s628_s19 = scalar_select %p39_p0, %s573_s13, %s41_s18  }
   0x7   : > { %p50_p4 = por %p49_p2, %p48_p1  ;;  %p630_p5 = por %p99_p3, %p48_p1 }
   0x8   : > { %p475_p6 = scmp.ge.s32.totalorder %s577_s14, 6 }
   0xa   : > { %127 = sbr.rel (%p475_p6) target bundleno = 25 (0x19), region = 24 }
  0x11   : > { %130 = sbr.rel (!%p50_p4) target bundleno = 25 (0x19), region = 28  ;;  %s132_s21 = sand.u32 (%p50_p4), 1, %s573_s13  }
  0x12   : > { %s498_s22 = sshll.u32 (%p50_p4), %s577_s14, 4  ;;  %s476_s23 = sshll.u32 (%p50_p4), %s132_s21, 6 }
  0x13   : > { %s137_s26 = scalar_lea.vmem (%p50_p4), %s692_s1, %s498_s22  ;;  %s134_s27 = scalar_lea.vmem (%p50_p4), [#allocation2], %s476_s23 }
  0x14   : > { %v150_v0 = vld [vmem:[%s137_s26] sm:$0xff] (%p50_p4)  ;;  %v152_v1 = vld [vmem:[%s137_s26 + $0x8] sm:$0xff] (%p50_p4) }
  0x15   : > { %v154_v2 = vld [vmem:[%s137_s26 + $0x60] sm:$0xff] (%p50_p4)  ;;  %151 = vst [vmem:[%s134_s27] sm:$0xff] (%p50_p4), %v150_v0  ;;  %153 = vst [vmem:[%s134_s27 + $0x8] sm:$0xff] (%p50_p4), %v152_v1  ;;  %v156_v3 = vld [vmem:[%s137_s26 + $0x68] sm:$0xff] (%p50_p4) }
  0x16   : > { %155 = vst [vmem:[%s134_s27 + $0x10] sm:$0xff] (%p50_p4), %v154_v2  ;;  %v158_v4 = vld [vmem:[%s137_s26 + $0xc0] sm:$0xff] (%p50_p4)  ;;  %v160_v5 = vld [vmem:[%s137_s26 + $0xc8] sm:$0xff] (%p50_p4)  ;;  %157 = vst [vmem:[%s134_s27 + $0x18] sm:$0xff] (%p50_p4), %v156_v3 }
  0x17   : > { %159 = vst [vmem:[%s134_s27 + $0x20] sm:$0xff] (%p50_p4), %v158_v4  ;;  %161 = vst [vmem:[%s134_s27 + $0x28] sm:$0xff] (%p50_p4), %v160_v5  ;;  %v162_v6 = vld [vmem:[%s137_s26 + $0x120] sm:$0xff] (%p50_p4)  ;;  %v164_v7 = vld [vmem:[%s137_s26 + $0x128] sm:$0xff] (%p50_p4) }
  0x18   : > { %163 = vst [vmem:[%s134_s27 + $0x30] sm:$0xff] %v162_v6  ;;  %165 = vst [vmem:[%s134_s27 + $0x38] sm:$0xff] %v164_v7 }
  0x19 PF: > { %p479_p7 = scmp.ge.s32.totalorder %s577_s14, 1  ;;  %p170_p8 = scmp.lt.s32.totalorder %s577_s14, 7 }
  0x1b   : > { %p171_p9 = pnand %p479_p7, %p170_p8 }
  0x1c   : > { %s177_s28 = sand.u32 (!%p171_p9), 1, %s569_s12   ;;  %v579_v8 = vmov (!%p171_p9), 0   ;;  %v212_v9 = vld [vmem:[%s693_s2] sm:$0xff] (!%p171_p9)  ;;  %v213_v11 = vld [vmem:[%s693_s2 + $0x8] sm:$0xf] (!%p171_p9)  ;;  %vm269_vm0 = vcmask (!%p171_p9), 261120  }
  0x1d   : > { %174 = sbr.rel (%p171_p9) target bundleno = 281 (0x119), region = 51  ;;  %s643_s29 = sshll.u32 (!%p171_p9), %s177_s28, 6  ;;  %305 = vmatprep.mubr.bf16.mxu0 (!%p171_p9), %v579_v8  ;;  %348 = vmatprep.mubr.bf16.mxu1 (!%p171_p9), %v579_v8  ;;  %v538_v19 = vld [vmem:[%s691_s0] sm:$0x3f] (!%p171_p9)  }
  0x1e   : > { %525 = vset.pattern.permute.xlu0 (!%p171_p9), %v579_v8  ;;  %s179_s5 = scalar_lea.vmem (!%p171_p9), [#allocation2], %s643_s29  ;;  %s656_s10 = scalar_lea.vmem (!%p171_p9), [#allocation3], %s643_s29 }
  0x1f   : > { %v526_v10 = vld [vmem:[%s179_s5 + $0x4] ss:$16 sps:$4 sm:$0xff] (!%p171_p9)   ;;  %216 = vperm.xlu0 (!%p171_p9), %525, %v212_v9   ;;  %v528_v12 = vld [vmem:[%s179_s5 + $0xc] ss:$16 sps:$4 sm:$0xff] (!%p171_p9)   ;;  %v530_v13 = vld [vmem:[%s179_s5] ss:$16 sps:$4 sm:$0xff] (!%p171_p9)  }
  0x20   : > { %273 = vmatprep.subr.bf16.mxu0 (!%p171_p9), %v526_v10  ;;  %v531_v14 = vld [vmem:[%s179_s5 + $0x8] ss:$16 sps:$4 sm:$0xff] (!%p171_p9)   ;;  %316 = vmatprep.subr.bf16.mxu1 (!%p171_p9), %v528_v12  ;;  %v532_v15 = vld [vmem:[%s179_s5 + $0x24] ss:$16 sps:$4 sm:$0xff] (!%p171_p9)   ;;  %v534_v16 = vld [vmem:[%s179_s5 + $0x2c] ss:$16 sps:$4 sm:$0xff] (!%p171_p9)  }
  0x21   : > { %274 = vmatpush1.bf16.msra.mxu0 (!%p171_p9), %v530_v13  ;;  %317 = vmatpush1.bf16.msra.mxu1 (!%p171_p9), %v531_v14  ;;  %v536_v17 = vld [vmem:[%s179_s5 + $0x20] ss:$16 sps:$4 sm:$0xff] (!%p171_p9)   ;;  %v537_v18 = vld [vmem:[%s179_s5 + $0x28] ss:$16 sps:$4 sm:$0xff] (!%p171_p9)  }
  0x22   : > { %275 = vmatprep.subr.bf16.mxu0 (!%p171_p9), %v532_v15  ;;  %318 = vmatprep.subr.bf16.mxu1 (!%p171_p9), %v534_v16 }
  0x23   : > { %221 = vperm.xlu0 (!%p171_p9), %525, %v213_v11  }
  0x24   : > { %s499_s11 = sshll.u32 (%p630_p5), %s472_s15, 5 }
  0x25   : > { %276 = vmatpush1.bf16.msra.mxu0 %v536_v17  ;;  %319 = vmatpush1.bf16.msra.mxu1 %v537_v18  ;;  %s384_s18 = scalar_lea.vmem (%p630_p5), %s694_s3, %s499_s11 }
  0x28   : > { %491 = vmatmul.mubr.msk.bf16.vlgmr.msra.gmra.mrb[0].mxu0 %vm269_vm0, %v538_v19  ;;  %492 = vmatmul.mubr.msk.bf16.vlgmr.msra.gmra.mrb[0].mxu1 %vm269_vm0, %v538_v19 }
  0x9e   : > { %v217_v20 = vpop.permute.xlu0 %216 }
  0xa2   : > { %v222_v21 = vpop.permute.xlu0 %221 }
  0xfb   : > { %v307_v22 = vpop.f32.mrb[0].mxu0  ;;  %v350_v23 = vpop.f32.mrb[0].mxu1 }
  0xfc   : > { %v308_v24 = vadd.f32 %v307_v22, %v217_v20  ;;  %v351_v25 = vadd.f32 %v350_v23, %v217_v20  ;;  %v309_v26 = vpop.f32.mrb[1].mxu0  ;;  %v352_v27 = vpop.f32.mrb[1].mxu1 }
  0xfd   : > { %v310_v28 = vadd.f32 %v309_v26, %v217_v20  ;;  %v353_v29 = vadd.f32 %v352_v27, %v217_v20  ;;  %v311_v30 = vpop.f32.mrb[2].mxu0  ;;  %v354_v31 = vpop.f32.mrb[2].mxu1 }
  0xfe   : > { %539 = vtanh.f32 %v308_v24  ;;  %v312_v32 = vadd.f32 %v311_v30, %v222_v21  ;;  %v313_v33 = vpop.f32.mrb[3].mxu0  ;;  %v356_v34 = vpop.f32.mrb[3].mxu1  ;;  %v355_v35 = vadd.f32 %v354_v31, %v222_v21 }
  0xff   : > { %541 = vtanh.f32 %v351_v25  ;;  %v314_v36 = vadd.f32 %v313_v33, %v222_v21  ;;  %v357_v37 = vadd.f32 %v356_v34, %v222_v21 }
 0x100   : > { %543 = vtanh.f32 %v310_v28 }
 0x101   : > { %545 = vtanh.f32 %v353_v29 }
 0x102   : > { %547 = vtanh.f32 %v312_v32 }
 0x103   : > { %549 = vtanh.f32 %v355_v35 }
 0x104   : > { %551 = vtanh.f32 %v314_v36 }
 0x105   : > { %553 = vtanh.f32 %v357_v37 }
 0x108   : > { %v540_v38 = vpop.eup %539 }
 0x109   : > { %v542_v39 = vpop.eup %541  ;;  %367 = vst [vmem:[%s656_s10] sm:$0xff] %v540_v38 }
 0x10a   : > { %v544_v40 = vpop.eup %543  ;;  %369 = vst [vmem:[%s656_s10 + $0x10] sm:$0xff] %v542_v39  ;;  %381 = sbr.rel (!%p630_p5) target bundleno = 281 (0x119), region = 59 }
 0x10b   : > { %v546_v41 = vpop.eup %545  ;;  %368 = vst [vmem:[%s656_s10 + $0x8] sm:$0xff] %v544_v40 }
 0x10c   : > { %v548_v42 = vpop.eup %547  ;;  %370 = vst [vmem:[%s656_s10 + $0x18] sm:$0xff] %v546_v41 }
 0x10d   : > { %v550_v43 = vpop.eup %549  ;;  %371 = vst [vmem:[%s656_s10 + $0x20] sm:$0xf] %v548_v42 }
 0x10e   : > { %v552_v44 = vpop.eup %551  ;;  %373 = vst [vmem:[%s656_s10 + $0x30] sm:$0xf] %v550_v43 }
 0x10f   : > { %v554_v45 = vpop.eup %553  ;;  %372 = vst [vmem:[%s656_s10 + $0x28] sm:$0xf] %v552_v44 }
 0x110   : > { %374 = vst [vmem:[%s656_s10 + $0x38] sm:$0xf] %v554_v45  ;;  %v397_v46 = vld [vmem:[%s656_s10] sm:$0xff] (%p630_p5) }
 0x111   : > { %v401_v48 = vld [vmem:[%s656_s10 + $0x10] sm:$0xff]  ;;  %398 = vst [vmem:[%s384_s18] sm:$0xff] %v397_v46 }
 0x112   : > { %v399_v47 = vld [vmem:[%s656_s10 + $0x8] sm:$0xff]  ;;  %402 = vst [vmem:[%s384_s18 + $0x10] sm:$0xff] %v401_v48 }
 0x113   : > { %v403_v49 = vld [vmem:[%s656_s10 + $0x18] sm:$0xff]  ;;  %400 = vst [vmem:[%s384_s18 + $0x8] sm:$0xff] %v399_v47 }
 0x114   : > { %v405_v50 = vld [vmem:[%s656_s10 + $0x20] sm:$0xff]  ;;  %404 = vst [vmem:[%s384_s18 + $0x18] sm:$0xff] %v403_v49 }
 0x115   : > { %406 = vst [vmem:[%s384_s18 + $0xc0] sm:$0xff] %v405_v50  ;;  %v409_v52 = vld [vmem:[%s656_s10 + $0x30] sm:$0xff] }
 0x116   : > { %v407_v51 = vld [vmem:[%s656_s10 + $0x28] sm:$0xff]  ;;  %410 = vst [vmem:[%s384_s18 + $0xd0] sm:$0xff] %v409_v52 }
 0x117   : > { %408 = vst [vmem:[%s384_s18 + $0xc8] sm:$0xff] %v407_v51  ;;  %v411_v53 = vld [vmem:[%s656_s10 + $0x38] sm:$0xff] }
 0x118   : > { %412 = vst [vmem:[%s384_s18 + $0xd8] sm:$0xff] %v411_v53 }
 0x119 PF: > { %p10_p10 = scmp.ge.s32.totalorder %s617_s16, 8   ;;  %s696_s12 = smov %s573_s13 }
 0x11a   : > { %s697_s13 = smov %s628_s19  ;;  %s698_s14 = smov %s617_s16 }
 0x11b   :  { %12 = sbr.rel (!%p10_p10) target bundleno = 2 (0x2), region = 113 }

</bundles_post_ra>
